<compile_context>
chip_gen: v6e
topology: v6e:2x2x1
jax: 0.10.0
libtpu: 0.0.40
codegen_flags: <defaults>
</compile_context>

<pallas_src>
import functools
import math

import jax
import jax.numpy as jnp
from jax.experimental import pallas as pl
from jax.experimental.pallas import tpu as pltpu

CHUNK = 8   # timesteps per scan block (one f32 sublane tile)
PAD = 8     # sublane-aligned conv halo (>= d_conv)


# ----------------------------------------------------------------------------
# Fused bidirectional Mamba kernel (one batch element per grid step)
# ----------------------------------------------------------------------------
def _bimamba_kernel(hs_ref, w_in_ref, w_out_ref,
                    sp_f_ref, wproj_f_ref,
                    sp_r_ref, wproj_r_ref,
                    out_ref,
                    xpad_ref, z_ref, ys_ref,
                    dts_f_ref, dtx_f_ref, bc_f_ref,
                    dts_r_ref, dtx_r_ref, bc_r_ref,
                    dA_f_ref, dBx_f_ref, sts_f_ref,
                    dA_r_ref, dBx_r_ref, sts_r_ref,
                    *, d_inner, d_state, d_conv):
    L = hs_ref.shape[0]
    nc = L // CHUNK

    # offsets inside the packed small-param slab (all sections 8-row aligned)
    off_conv = ((d_state + 7) // 8) * 8
    off_misc = off_conv + 8
    ROW_CONVB, ROW_BDT, ROW_D = off_misc, off_misc + 1, off_misc + 2

    # ---- fused, tied in_proj: (L, D) @ (D, 2*d_inner) ----
    hs = hs_ref[...].astype(jnp.bfloat16)
    xz = jnp.dot(hs, w_in_ref[...], preferred_element_type=jnp.float32)
    z_ref[...] = xz[:, d_inner:]

    # ---- sublane-aligned zero-padded conv slab; zero only the halo tiles ----
    halo = jnp.zeros((PAD, d_inner), jnp.float32)
    xpad_ref[0:PAD, :] = halo
    xpad_ref[PAD + L:PAD + L + PAD, :] = halo
    xpad_ref[PAD:PAD + L, :] = xz[:, :d_inner]          # aligned payload store

    # ---- causal (fwd) / anti-causal (rev) depthwise conv via shifted adds ----
    xc_f = sp_f_ref[ROW_CONVB:ROW_CONVB + 1, :]
    xc_r = sp_r_ref[ROW_CONVB:ROW_CONVB + 1, :]
    for k in range(d_conv):
        s = d_conv - 1 - k
        xc_f = xc_f + sp_f_ref[off_conv + k:off_conv + k + 1, :] * \
            xpad_ref[PAD - s:PAD - s + L, :]
        xc_r = xc_r + sp_r_ref[off_conv + k:off_conv + k + 1, :] * \
            xpad_ref[PAD + s:PAD + s + L, :]
    x_f = xc_f * jax.nn.sigmoid(xc_f)     # SiLU, forward-direction conv output
    x_r = xc_r * jax.nn.sigmoid(xc_r)     # SiLU, reverse-direction conv output (orig order)

    # D-skip terms of both directions, applied vectorized outside the serial scan.
    ys_ref[...] = (sp_f_ref[ROW_D:ROW_D + 1, :] * x_f
                   + sp_r_ref[ROW_D:ROW_D + 1, :] * x_r)

    # ---- fused dt + B/C projection: one MXU pass per direction ----
    def project(x_dir, wproj_ref, sp_ref, dts_ref, dtx_ref, bc_ref):
        proj = jnp.dot(x_dir.astype(jnp.bfloat16), wproj_ref[...],
                       preferred_element_type=jnp.float32)  # (L, d_inner + 2*d_state)
        dt_raw = proj[:, :d_inner] + sp_ref[ROW_BDT:ROW_BDT + 1, :]
        dts = jnp.maximum(dt_raw, 0.0) + jnp.log1p(jnp.exp(-jnp.abs(dt_raw)))
        dts_ref[...] = dts
        dtx_ref[...] = dts * x_dir                           # precompute dt*x
        bc_ref[...] = proj[:, d_inner:]                      # (L, 2*d_state) scan layout

    project(x_f, wproj_f_ref, sp_f_ref, dts_f_ref, dtx_f_ref, bc_f_ref)
    project(x_r, wproj_r_ref, sp_r_ref, dts_r_ref, dtx_r_ref, bc_r_ref)

    A_f = sp_f_ref[0:d_state, :]    # already -exp(A_log), packed host-side
    A_r = sp_r_ref[0:d_state, :]

    # scan carries live in the snapshot scratch: fwd at [CHUNK-1], rev at [0]
    zero_state = jnp.zeros((d_state, d_inner), jnp.float32)
    sts_f_ref[CHUNK - 1] = zero_state
    sts_r_ref[0] = zero_state

    # ---- interleaved fwd/rev selective scans, blocked by CHUNK timesteps ----
    @pl.loop(0, nc)
    def _chunk(cc):
        start_f = pl.multiple_of(cc * CHUNK, CHUNK)
        start_r = pl.multiple_of((nc - 1 - cc) * CHUNK, CHUNK)

        # whole-chunk EUP/VPU work hoisted off the serial dependency chain
        def stage(start, dts_ref, dtx_ref, bc_ref, A, dA_ref, dBx_ref):
            dt_c = dts_ref[pl.ds(start, CHUNK), :]           # (CHUNK, d_inner)
            dtx_c = dtx_ref[pl.ds(start, CHUNK), :]
            bc_c = bc_ref[pl.ds(start, CHUNK), :]            # (CHUNK, 2*d_state)
            b_c = bc_c[:, :d_state]
            c_c = bc_c[:, d_state:]
            dA_ref[...] = jnp.exp(dt_c[:, None, :] * A[None, :, :])
            dBx_ref[...] = dtx_c[:, None, :] * b_c[:, :, None]
            return c_c

        c_f = stage(start_f, dts_f_ref, dtx_f_ref, bc_f_ref, A_f, dA_f_ref, dBx_f_ref)
        c_r = stage(start_r, dts_r_ref, dtx_r_ref, bc_r_ref, A_r, dA_r_ref, dBx_r_ref)

        st_f = sts_f_ref[CHUNK - 1]      # carry from previous chunk (zeros at cc == 0)
        st_r = sts_r_ref[0]

        # serial recurrence only; two independent chains interleave in the VLIW
        for j in range(CHUNK):           # statically unrolled
            st_f = dA_f_ref[j] * st_f + dBx_f_ref[j]
            sts_f_ref[j] = st_f
            i_r = CHUNK - 1 - j
            st_r = dA_r_ref[i_r] * st_r + dBx_r_ref[i_r]
            sts_r_ref[i_r] = st_r

        # vectorized multiply-by-C + d_state reduction for the whole chunk
        y_f = jnp.sum(sts_f_ref[...] * c_f[:, :, None], axis=1)   # (CHUNK, d_inner)
        y_r = jnp.sum(sts_r_ref[...] * c_r[:, :, None], axis=1)
        ys_ref[pl.ds(start_f, CHUNK), :] += y_f                    # aligned 8-row stores
        ys_ref[pl.ds(start_r, CHUNK), :] += y_r

    # gate with SiLU(z) (shared because in_proj is tied) and single tied out_proj
    z = z_ref[...]
    y_gated = ys_ref[...] * (z * jax.nn.sigmoid(z))
    out_ref[...] = jnp.dot(y_gated.astype(jnp.bfloat16), w_out_ref[...],
                           preferred_element_type=jnp.float32).astype(out_ref.dtype)


# ----------------------------------------------------------------------------
# Wrapper: BiMambaWrapper.forward(hidden_states) -> (B, L, D)
# ----------------------------------------------------------------------------
def bimamba_forward(hidden_states, params):
    shared, fwd, rev = params["shared"], params["fwd"], params["rev"]
    Bb, L, D = hidden_states.shape
    d_inner = shared["w_out"].shape[0]
    d_state = fwd["A_log_t"].shape[0]
    d_conv = fwd["conv_w"].shape[0]
    assert L % CHUNK == 0, "sequence length must be a multiple of the scan chunk (8)"
    assert d_conv <= PAD, "conv kernel must fit inside the 8-row aligned halo"

    off_conv = ((d_state + 7) // 8) * 8
    sp_rows = off_conv + 16

    def pack_small(p):   # pack tiny per-direction params into one 8-row-aligned slab
        sp = jnp.zeros((sp_rows, d_inner), jnp.float32)
        sp = sp.at[0:d_state, :].set((-jnp.exp(p["A_log_t"])).astype(jnp.float32))
        sp = sp.at[off_conv:off_conv + d_conv, :].set(p["conv_w"].astype(jnp.float32))
        sp = sp.at[off_conv + 8 + 0, :].set(p["conv_b"][0].astype(jnp.float32))
        sp = sp.at[off_conv + 8 + 1, :].set(p["b_dt"][0].astype(jnp.float32))
        sp = sp.at[off_conv + 8 + 2, :].set(p["D"][0].astype(jnp.float32))
        return sp

    def fuse_proj(p):    # dt projection and B/C projection share one MXU pass
        return jnp.concatenate([p["w_dt_full"].astype(jnp.bfloat16),
                                p["w_bc"].T.astype(jnp.bfloat16)], axis=1)

    weights = [shared["w_in"], shared["w_out"],
               pack_small(fwd), fuse_proj(fwd),
               pack_small(rev), fuse_proj(rev)]

    in_specs = [pl.BlockSpec((None, L, D), lambda b: (b, 0, 0))]
    # TODO(synk): mark these with pipeline_mode=pl.Buffered(1) once single-buffered
    # invariant weights are needed to fit v7x's 64 MiB at large d_inner.
    in_specs += [pl.BlockSpec(w.shape, lambda b: (0, 0)) for w in weights]

    scratch_shapes = [
        pltpu.VMEM((L + 2 * PAD, d_inner), jnp.float32),     # zero-padded conv input
        pltpu.VMEM((L, d_inner), jnp.float32),               # z (gate input)
        pltpu.VMEM((L, d_inner), jnp.float32),               # y accumulator (both dirs)
        pltpu.VMEM((L, d_inner), jnp.float32),               # softplus(dt)  fwd
        pltpu.VMEM((L, d_inner), jnp.float32),               # dt * x        fwd
        pltpu.VMEM((L, 2 * d_state), jnp.float32),           # [B | C]       fwd
        pltpu.VMEM((L, d_inner), jnp.float32),               # softplus(dt)  rev
        pltpu.VMEM((L, d_inner), jnp.float32),               # dt * x        rev
        pltpu.VMEM((L, 2 * d_state), jnp.float32),           # [B | C]       rev
        pltpu.VMEM((CHUNK, d_state, d_inner), jnp.float32),  # dA chunk      fwd
        pltpu.VMEM((CHUNK, d_state, d_inner), jnp.float32),  # dBx chunk     fwd
        pltpu.VMEM((CHUNK, d_state, d_inner), jnp.float32),  # state snaps   fwd
        pltpu.VMEM((CHUNK, d_state, d_inner), jnp.float32),  # dA chunk      rev
        pltpu.VMEM((CHUNK, d_state, d_inner), jnp.float32),  # dBx chunk     rev
        pltpu.VMEM((CHUNK, d_state, d_inner), jnp.float32),  # state snaps   rev
    ]

    # --- VMEM budget: blocks (double-buffered) + weights + scratch + traced temps ---
    blk_bytes = L * D * 4
    w_bytes = sum(int(w.size) * w.dtype.itemsize for w in weights)
    scratch_bytes = 4 * ((L + 2 * PAD) * d_inner
                         + 6 * L * d_inner
                         + 2 * L * 2 * d_state
                         + 6 * CHUNK * d_state * d_inner)
    temp_bytes = 4 * (L * 2 * d_inner                       # xz
                      + 2 * L * d_inner                     # x_f, x_r
                      + 2 * L * (d_inner + 2 * d_state)     # fused proj outputs
                      + 2 * L * d_inner)                    # softplus / dt*x transients
    est = 2 * 2 * blk_bytes + 2 * w_bytes + scratch_bytes + temp_bytes

    try:
        vmem_cap = int(pltpu.get_tpu_info().vmem_capacity_bytes)
    except Exception:
        vmem_cap = 64 * 1024 * 1024          # v7x per-TensorCore floor as safe fallback
    vmem_limit = int(min(max(int(1.25 * est), 32 * 1024 * 1024),
                         vmem_cap - 8 * 1024 * 1024))
    # TODO(synk): for very long sequences, additionally tile L (ascending tiles for the
    # fwd scan, a mirrored pass for rev) so per-batch scratch stays within v7x VMEM.

    kern = functools.partial(_bimamba_kernel, d_inner=d_inner,
                             d_state=d_state, d_conv=d_conv)
    return pl.pallas_call(
        kern,
        out_shape=jax.ShapeDtypeStruct((Bb, L, D), jnp.float32),
        grid=(Bb,),
        in_specs=in_specs,
        out_specs=pl.BlockSpec((None, L, D), lambda b: (b, 0, 0)),
        scratch_shapes=scratch_shapes,
        compiler_params=pltpu.CompilerParams(
            dimension_semantics=("parallel",),
            vmem_limit_bytes=vmem_limit),
    )(hidden_states, *weights)


# ----------------------------------------------------------------------------
# Pure-JAX reference (flip-based reverse branch, like the PyTorch module)
# ----------------------------------------------------------------------------
def _mamba_ref_dir(hs, shared, p):
    B_, L, _ = hs.shape
    d_inner = shared["w_out"].shape[0]
    d_conv = p["conv_w"].shape[0]
    d_state = p["A_log_t"].shape[0]

    xz = jnp.dot(hs.astype(jnp.bfloat16), shared["w_in"],
                 preferred_element_type=jnp.float32)
    x_pre, z = xz[..., :d_inner], xz[..., d_inner:]

    xc = p["conv_b"][None]
    for k in range(d_conv):
        s = d_conv - 1 - k
        shifted = jnp.pad(x_pre, ((0, 0), (s, 0), (0, 0)))[:, :L, :]
        xc = xc + p["conv_w"][k][None, None, :] * shifted
    x = xc * jax.nn.sigmoid(xc)

    dt = jnp.dot(x.astype(jnp.bfloat16), p["w_dt_full"],
                 preferred_element_type=jnp.float32) + p["b_dt"][None]
    dt = jnp.maximum(dt, 0.0) + jnp.log1p(jnp.exp(-jnp.abs(dt)))
    bc = jnp.einsum("bld,nd->bln", x.astype(jnp.bfloat16), p["w_bc"],
                    preferred_element_type=jnp.float32)
    Bm, Cm = bc[..., :d_state], bc[..., d_state:]
    A = -jnp.exp(p["A_log_t"])                                  # (d_state, d_inner)

    def step(state, inp):
        dt_t, x_t, B_t, C_t = inp
        dA = jnp.exp(dt_t[:, None, :] * A[None])
        dBx = (dt_t * x_t)[:, None, :] * B_t[:, :, None]
        state = dA * state + dBx
        y = jnp.sum(state * C_t[:, :, None], axis=1) + p["D"] * x_t
        return state, y

    init = jnp.zeros((B_, d_state, d_inner), jnp.float32)
    seq = (jnp.moveaxis(dt, 1, 0), jnp.moveaxis(x, 1, 0),
           jnp.moveaxis(Bm, 1, 0), jnp.moveaxis(Cm, 1, 0))
    _, ys = jax.lax.scan(step, init, seq)
    y = jnp.moveaxis(ys, 0, 1) * (z * jax.nn.sigmoid(z))
    return jnp.dot(y.astype(jnp.bfloat16), shared["w_out"],
                   preferred_element_type=jnp.float32)


def bimamba_ref(hs, params):
    out_f = _mamba_ref_dir(hs, params["shared"], params["fwd"])
    out_r = jnp.flip(_mamba_ref_dir(jnp.flip(hs, axis=1), params["shared"],
                                    params["rev"]), axis=1)
    return out_f + out_r


# ----------------------------------------------------------------------------
# Deterministic synthetic parameters (shapes follow Mamba defaults)
# ----------------------------------------------------------------------------
def init_params(key, d_model=32, d_state=16, d_conv=4, expand=2):
    d_inner = expand * d_model
    dt_rank = math.ceil(d_model / 16)
    keys = iter(jax.random.split(key, 32))

    def nrm(shape, scale=0.02):
        return (scale * jax.random.normal(next(keys), shape)).astype(jnp.float32)

    A_log_t = (jnp.log(jnp.arange(1, d_state + 1, dtype=jnp.float32))[:, None]
               * jnp.ones((1, d_inner), jnp.float32))

    shared = {  # in_proj / out_proj tied between the two directions
        "w_in": nrm((d_model, 2 * d_inner), 0.2).astype(jnp.bfloat16),
        "w_out": nrm((d_inner, d_model), 0.2).astype(jnp.bfloat16),
    }

    def direction():
        w_x_dt = nrm((d_inner, dt_rank))
        w_dt = nrm((dt_rank, d_inner), dt_rank ** -0.5)
        return {
            "conv_w": nrm((d_conv, d_inner), 0.1),
            "conv_b": nrm((1, d_inner), 0.1),
            "b_dt": (-3.0 + nrm((1, d_inner), 0.1)).astype(jnp.float32),
            "D": jnp.ones((1, d_inner), jnp.float32),
            "A_log_t": A_log_t,
            "w_dt_full": (w_x_dt @ w_dt).astype(jnp.bfloat16),   # x_proj(dt) . dt_proj folded
            "w_bc": nrm((2 * d_state, d_inner), 0.2).astype(jnp.bfloat16),
        }

    return {"shared": shared, "fwd": direction(), "rev": direction()}


# TODO(synk): inference_params / step-wise decoding cache (single-token update path)
# is not implemented; only the full-sequence (prefill/training) forward is.

if __name__ == "__main__":
    key = jax.random.PRNGKey(0)
    pkey, xkey = jax.random.split(key)

    d_model, B, L = 32, 2, 16
    params = init_params(pkey, d_model=d_model)
    hidden_states = (0.5 * jax.random.normal(xkey, (B, L, d_model))).astype(jnp.float32)

    out = jax.block_until_ready(bimamba_forward(hidden_states, params))

    assert out.shape == (B, L, d_model)
    assert bool(jnp.all(jnp.isfinite(out)))

    ref = jax.block_until_ready(bimamba_ref(hidden_states, params))
    assert jnp.allclose(out, ref, atol=1e-2, rtol=1e-2), (
        f"max abs diff {float(jnp.max(jnp.abs(out - ref)))}")

    print("KERNEL_OK")
</pallas_src>

<mosaic_0001>
module attributes {stable_mosaic.version = 11 : i64} {
  func.func @_bimamba_kernel(%arg0: i32, %arg1: memref<1x16x32xf32, #tpu.memory_space<vmem>>, %arg2: memref<32x128xbf16, #tpu.memory_space<vmem>>, %arg3: memref<64x32xbf16, #tpu.memory_space<vmem>>, %arg4: memref<32x64xf32, #tpu.memory_space<vmem>>, %arg5: memref<64x96xbf16, #tpu.memory_space<vmem>>, %arg6: memref<32x64xf32, #tpu.memory_space<vmem>>, %arg7: memref<64x96xbf16, #tpu.memory_space<vmem>>, %arg8: memref<1x16x32xf32, #tpu.memory_space<vmem>>, %arg9: memref<32x64xf32, #tpu.memory_space<vmem>>, %arg10: memref<16x64xf32, #tpu.memory_space<vmem>>, %arg11: memref<16x64xf32, #tpu.memory_space<vmem>>, %arg12: memref<16x64xf32, #tpu.memory_space<vmem>>, %arg13: memref<16x64xf32, #tpu.memory_space<vmem>>, %arg14: memref<16x32xf32, #tpu.memory_space<vmem>>, %arg15: memref<16x64xf32, #tpu.memory_space<vmem>>, %arg16: memref<16x64xf32, #tpu.memory_space<vmem>>, %arg17: memref<16x32xf32, #tpu.memory_space<vmem>>, %arg18: memref<8x16x64xf32, #tpu.memory_space<vmem>>, %arg19: memref<8x16x64xf32, #tpu.memory_space<vmem>>, %arg20: memref<8x16x64xf32, #tpu.memory_space<vmem>>, %arg21: memref<8x16x64xf32, #tpu.memory_space<vmem>>, %arg22: memref<8x16x64xf32, #tpu.memory_space<vmem>>, %arg23: memref<8x16x64xf32, #tpu.memory_space<vmem>>) attributes {dimension_semantics = [#tpu.dimension_semantics<parallel>], iteration_bounds = array<i64: 2>, scalar_prefetch = 0 : i64, scratch_operands = 15 : i64, tpu.core_type = #tpu.core_type<tc>, window_params = [{transform_indices = @transform_0, window_bounds = array<i64: 1, 16, 32>}, {pipeline_mode = #tpu.pipeline_mode<synchronous>, transform_indices = @transform_1, window_bounds = array<i64: 32, 128>}, {pipeline_mode = #tpu.pipeline_mode<synchronous>, transform_indices = @transform_2, window_bounds = array<i64: 64, 32>}, {pipeline_mode = #tpu.pipeline_mode<synchronous>, transform_indices = @transform_3, window_bounds = array<i64: 32, 64>}, {pipeline_mode = #tpu.pipeline_mode<synchronous>, transform_indices = @transform_4, window_bounds = array<i64: 64, 96>}, {pipeline_mode = #tpu.pipeline_mode<synchronous>, transform_indices = @transform_5, window_bounds = array<i64: 32, 64>}, {pipeline_mode = #tpu.pipeline_mode<synchronous>, transform_indices = @transform_6, window_bounds = array<i64: 64, 96>}, {transform_indices = @transform_7, window_bounds = array<i64: 1, 16, 32>}]} {
    %c0 = arith.constant 0 : index
    %c0_0 = arith.constant 0 : index
    %c0_1 = arith.constant 0 : index
    %0 = vector.load %arg1[%c0, %c0_0, %c0_1] : memref<1x16x32xf32, #tpu.memory_space<vmem>>, vector<1x16x32xf32>
    %1 = vector.shape_cast %0 : vector<1x16x32xf32> to vector<16x32xf32>
    %2 = arith.truncf %1 : vector<16x32xf32> to vector<16x32xbf16>
    %c0_2 = arith.constant 0 : index
    %c0_3 = arith.constant 0 : index
    %3 = vector.load %arg2[%c0_2, %c0_3] : memref<32x128xbf16, #tpu.memory_space<vmem>>, vector<32x128xbf16>
    %cst = arith.constant dense<0.000000e+00> : vector<16x128xf32>
    %4 = tpu.matmul %2, %3, %cst {dimension_numbers = #tpu.dot_dimension_numbers<[1], [0], [0], [1], [0, 0, 1, 1], [], []>} : vector<16x32xbf16>, vector<32x128xbf16>, vector<16x128xf32> -> vector<16x128xf32>
    %5 = vector.extract_strided_slice %4 {offsets = [0, 64], sizes = [16, 64], strides = [1, 1]} : vector<16x128xf32> to vector<16x64xf32>
    %c0_4 = arith.constant 0 : index
    %c0_5 = arith.constant 0 : index
    %6 = vector.load %arg10[%c0_4, %c0_5] : memref<16x64xf32, #tpu.memory_space<vmem>>, vector<16x64xf32>
    tpu.vector_store %arg10[%c0_4, %c0_5], %5 {strides = array<i32>} : memref<16x64xf32, #tpu.memory_space<vmem>>, vector<16x64xf32>,
    %cst_6 = arith.constant 0.000000e+00 : f32
    %7 = vector.broadcast %cst_6 : f32 to vector<8x64xf32>
    %c0_7 = arith.constant 0 : index
    %c0_8 = arith.constant 0 : index
    %8 = vector.load %arg9[%c0_7, %c0_8] : memref<32x64xf32, #tpu.memory_space<vmem>>, vector<8x64xf32>
    tpu.vector_store %arg9[%c0_7, %c0_8], %7 {strides = array<i32>} : memref<32x64xf32, #tpu.memory_space<vmem>>, vector<8x64xf32>,
    %c24 = arith.constant 24 : index
    %c0_9 = arith.constant 0 : index
    %9 = vector.load %arg9[%c24, %c0_9] : memref<32x64xf32, #tpu.memory_space<vmem>>, vector<8x64xf32>
    tpu.vector_store %arg9[%c24, %c0_9], %7 {strides = array<i32>} : memref<32x64xf32, #tpu.memory_space<vmem>>, vector<8x64xf32>,
    %10 = vector.extract_strided_slice %4 {offsets = [0, 0], sizes = [16, 64], strides = [1, 1]} : vector<16x128xf32> to vector<16x64xf32>
    %c8 = arith.constant 8 : index
    %c0_10 = arith.constant 0 : index
    %11 = vector.load %arg9[%c8, %c0_10] : memref<32x64xf32, #tpu.memory_space<vmem>>, vector<16x64xf32>
    tpu.vector_store %arg9[%c8, %c0_10], %10 {strides = array<i32>} : memref<32x64xf32, #tpu.memory_space<vmem>>, vector<16x64xf32>,
    %c24_11 = arith.constant 24 : index
    %c0_12 = arith.constant 0 : index
    %12 = vector.load %arg4[%c24_11, %c0_12] : memref<32x64xf32, #tpu.memory_space<vmem>>, vector<1x64xf32>
    %c24_13 = arith.constant 24 : index
    %c0_14 = arith.constant 0 : index
    %13 = vector.load %arg6[%c24_13, %c0_14] : memref<32x64xf32, #tpu.memory_space<vmem>>, vector<1x64xf32>
    %c16 = arith.constant 16 : index
    %c0_15 = arith.constant 0 : index
    %14 = vector.load %arg4[%c16, %c0_15] : memref<32x64xf32, #tpu.memory_space<vmem>>, vector<1x64xf32>
    %c5 = arith.constant 5 : index
    %c0_16 = arith.constant 0 : index
    %15 = vector.load %arg9[%c5, %c0_16] : memref<32x64xf32, #tpu.memory_space<vmem>>, vector<16x64xf32>
    %16 = vector.broadcast %14 : vector<1x64xf32> to vector<16x64xf32>
    %17 = arith.mulf %16, %15 : vector<16x64xf32>
    %18 = vector.broadcast %12 : vector<1x64xf32> to vector<16x64xf32>
    %19 = arith.addf %18, %17 : vector<16x64xf32>
    %c16_17 = arith.constant 16 : index
    %c0_18 = arith.constant 0 : index
    %20 = vector.load %arg6[%c16_17, %c0_18] : memref<32x64xf32, #tpu.memory_space<vmem>>, vector<1x64xf32>
    %c11 = arith.constant 11 : index
    %c0_19 = arith.constant 0 : index
    %21 = vector.load %arg9[%c11, %c0_19] : memref<32x64xf32, #tpu.memory_space<vmem>>, vector<16x64xf32>
    %22 = vector.broadcast %20 : vector<1x64xf32> to vector<16x64xf32>
    %23 = arith.mulf %22, %21 : vector<16x64xf32>
    %24 = vector.broadcast %13 : vector<1x64xf32> to vector<16x64xf32>
    %25 = arith.addf %24, %23 : vector<16x64xf32>
    %c17 = arith.constant 17 : index
    %c0_20 = arith.constant 0 : index
    %26 = vector.load %arg4[%c17, %c0_20] : memref<32x64xf32, #tpu.memory_space<vmem>>, vector<1x64xf32>
    %c6 = arith.constant 6 : index
    %c0_21 = arith.constant 0 : index
    %27 = vector.load %arg9[%c6, %c0_21] : memref<32x64xf32, #tpu.memory_space<vmem>>, vector<16x64xf32>
    %28 = vector.broadcast %26 : vector<1x64xf32> to vector<16x64xf32>
    %29 = arith.mulf %28, %27 : vector<16x64xf32>
    %30 = arith.addf %19, %29 : vector<16x64xf32>
    %c17_22 = arith.constant 17 : index
    %c0_23 = arith.constant 0 : index
    %31 = vector.load %arg6[%c17_22, %c0_23] : memref<32x64xf32, #tpu.memory_space<vmem>>, vector<1x64xf32>
    %c10 = arith.constant 10 : index
    %c0_24 = arith.constant 0 : index
    %32 = vector.load %arg9[%c10, %c0_24] : memref<32x64xf32, #tpu.memory_space<vmem>>, vector<16x64xf32>
    %33 = vector.broadcast %31 : vector<1x64xf32> to vector<16x64xf32>
    %34 = arith.mulf %33, %32 : vector<16x64xf32>
    %35 = arith.addf %25, %34 : vector<16x64xf32>
    %c18 = arith.constant 18 : index
    %c0_25 = arith.constant 0 : index
    %36 = vector.load %arg4[%c18, %c0_25] : memref<32x64xf32, #tpu.memory_space<vmem>>, vector<1x64xf32>
    %c7 = arith.constant 7 : index
    %c0_26 = arith.constant 0 : index
    %37 = vector.load %arg9[%c7, %c0_26] : memref<32x64xf32, #tpu.memory_space<vmem>>, vector<16x64xf32>
    %38 = vector.broadcast %36 : vector<1x64xf32> to vector<16x64xf32>
    %39 = arith.mulf %38, %37 : vector<16x64xf32>
    %40 = arith.addf %30, %39 : vector<16x64xf32>
    %c18_27 = arith.constant 18 : index
    %c0_28 = arith.constant 0 : index
    %41 = vector.load %arg6[%c18_27, %c0_28] : memref<32x64xf32, #tpu.memory_space<vmem>>, vector<1x64xf32>
    %c9 = arith.constant 9 : index
    %c0_29 = arith.constant 0 : index
    %42 = vector.load %arg9[%c9, %c0_29] : memref<32x64xf32, #tpu.memory_space<vmem>>, vector<16x64xf32>
    %43 = vector.broadcast %41 : vector<1x64xf32> to vector<16x64xf32>
    %44 = arith.mulf %43, %42 : vector<16x64xf32>
    %45 = arith.addf %35, %44 : vector<16x64xf32>
    %c19 = arith.constant 19 : index
    %c0_30 = arith.constant 0 : index
    %46 = vector.load %arg4[%c19, %c0_30] : memref<32x64xf32, #tpu.memory_space<vmem>>, vector<1x64xf32>
    %c8_31 = arith.constant 8 : index
    %c0_32 = arith.constant 0 : index
    %47 = vector.load %arg9[%c8_31, %c0_32] : memref<32x64xf32, #tpu.memory_space<vmem>>, vector<16x64xf32>
    %48 = vector.broadcast %46 : vector<1x64xf32> to vector<16x64xf32>
    %49 = arith.mulf %48, %47 : vector<16x64xf32>
    %50 = arith.addf %40, %49 : vector<16x64xf32>
    %c19_33 = arith.constant 19 : index
    %c0_34 = arith.constant 0 : index
    %51 = vector.load %arg6[%c19_33, %c0_34] : memref<32x64xf32, #tpu.memory_space<vmem>>, vector<1x64xf32>
    %c8_35 = arith.constant 8 : index
    %c0_36 = arith.constant 0 : index
    %52 = vector.load %arg9[%c8_35, %c0_36] : memref<32x64xf32, #tpu.memory_space<vmem>>, vector<16x64xf32>
    %53 = vector.broadcast %51 : vector<1x64xf32> to vector<16x64xf32>
    %54 = arith.mulf %53, %52 : vector<16x64xf32>
    %55 = arith.addf %45, %54 : vector<16x64xf32>
    %56 = arith.negf %50 : vector<16x64xf32>
    %57 = math.exp %56 : vector<16x64xf32>
    %cst_37 = arith.constant 1.000000e+00 : f32
    %58 = vector.broadcast %cst_37 : f32 to vector<16x64xf32>
    %59 = arith.addf %58, %57 : vector<16x64xf32>
    %60 = arith.divf %58, %59 : vector<16x64xf32>
    %61 = arith.mulf %50, %60 : vector<16x64xf32>
    %62 = arith.negf %55 : vector<16x64xf32>
    %63 = math.exp %62 : vector<16x64xf32>
    %cst_38 = arith.constant 1.000000e+00 : f32
    %64 = vector.broadcast %cst_38 : f32 to vector<16x64xf32>
    %65 = arith.addf %64, %63 : vector<16x64xf32>
    %66 = arith.divf %64, %65 : vector<16x64xf32>
    %67 = arith.mulf %55, %66 : vector<16x64xf32>
    %c26 = arith.constant 26 : index
    %c0_39 = arith.constant 0 : index
    %68 = vector.load %arg4[%c26, %c0_39] : memref<32x64xf32, #tpu.memory_space<vmem>>, vector<1x64xf32>
    %69 = vector.broadcast %68 : vector<1x64xf32> to vector<16x64xf32>
    %70 = arith.mulf %69, %61 : vector<16x64xf32>
    %c26_40 = arith.constant 26 : index
    %c0_41 = arith.constant 0 : index
    %71 = vector.load %arg6[%c26_40, %c0_41] : memref<32x64xf32, #tpu.memory_space<vmem>>, vector<1x64xf32>
    %72 = vector.broadcast %71 : vector<1x64xf32> to vector<16x64xf32>
    %73 = arith.mulf %72, %67 : vector<16x64xf32>
    %74 = arith.addf %70, %73 : vector<16x64xf32>
    %c0_42 = arith.constant 0 : index
    %c0_43 = arith.constant 0 : index
    %75 = vector.load %arg11[%c0_42, %c0_43] : memref<16x64xf32, #tpu.memory_space<vmem>>, vector<16x64xf32>
    tpu.vector_store %arg11[%c0_42, %c0_43], %74 {strides = array<i32>} : memref<16x64xf32, #tpu.memory_space<vmem>>, vector<16x64xf32>,
    %76 = arith.truncf %61 : vector<16x64xf32> to vector<16x64xbf16>
    %c0_44 = arith.constant 0 : index
    %c0_45 = arith.constant 0 : index
    %77 = vector.load %arg5[%c0_44, %c0_45] : memref<64x96xbf16, #tpu.memory_space<vmem>>, vector<64x96xbf16>
    %cst_46 = arith.constant dense<0.000000e+00> : vector<16x96xf32>
    %78 = tpu.matmul %76, %77, %cst_46 {dimension_numbers = #tpu.dot_dimension_numbers<[1], [0], [0], [1], [0, 0, 1, 1], [], []>} : vector<16x64xbf16>, vector<64x96xbf16>, vector<16x96xf32> -> vector<16x96xf32>
    %79 = vector.extract_strided_slice %78 {offsets = [0, 0], sizes = [16, 64], strides = [1, 1]} : vector<16x96xf32> to vector<16x64xf32>
    %c25 = arith.constant 25 : index
    %c0_47 = arith.constant 0 : index
    %80 = vector.load %arg4[%c25, %c0_47] : memref<32x64xf32, #tpu.memory_space<vmem>>, vector<1x64xf32>
    %81 = vector.broadcast %80 : vector<1x64xf32> to vector<16x64xf32>
    %82 = arith.addf %79, %81 : vector<16x64xf32>
    %cst_48 = arith.constant 0.000000e+00 : f32
    %83 = vector.broadcast %cst_48 : f32 to vector<16x64xf32>
    %84 = arith.maximumf %82, %83 : vector<16x64xf32>
    %85 = math.absf %82 : vector<16x64xf32>
    %cst_49 = arith.constant 0.000000e+00 : f32
    %86 = vector.broadcast %cst_49 : f32 to vector<16x64xf32>
    %87 = arith.subf %86, %85 : vector<16x64xf32>
    %88 = math.exp %87 : vector<16x64xf32>
    %89 = math.log1p %88 : vector<16x64xf32>
    %90 = arith.addf %84, %89 : vector<16x64xf32>
    %c0_50 = arith.constant 0 : index
    %c0_51 = arith.constant 0 : index
    %91 = vector.load %arg12[%c0_50, %c0_51] : memref<16x64xf32, #tpu.memory_space<vmem>>, vector<16x64xf32>
    tpu.vector_store %arg12[%c0_50, %c0_51], %90 {strides = array<i32>} : memref<16x64xf32, #tpu.memory_space<vmem>>, vector<16x64xf32>,
    %92 = arith.mulf %90, %61 : vector<16x64xf32>
    %c0_52 = arith.constant 0 : index
    %c0_53 = arith.constant 0 : index
    %93 = vector.load %arg13[%c0_52, %c0_53] : memref<16x64xf32, #tpu.memory_space<vmem>>, vector<16x64xf32>
    tpu.vector_store %arg13[%c0_52, %c0_53], %92 {strides = array<i32>} : memref<16x64xf32, #tpu.memory_space<vmem>>, vector<16x64xf32>,
    %94 = vector.extract_strided_slice %78 {offsets = [0, 64], sizes = [16, 32], strides = [1, 1]} : vector<16x96xf32> to vector<16x32xf32>
    %c0_54 = arith.constant 0 : index
    %c0_55 = arith.constant 0 : index
    %95 = vector.load %arg14[%c0_54, %c0_55] : memref<16x32xf32, #tpu.memory_space<vmem>>, vector<16x32xf32>
    tpu.vector_store %arg14[%c0_54, %c0_55], %94 {strides = array<i32>} : memref<16x32xf32, #tpu.memory_space<vmem>>, vector<16x32xf32>,
    %96 = arith.truncf %67 : vector<16x64xf32> to vector<16x64xbf16>
    %c0_56 = arith.constant 0 : index
    %c0_57 = arith.constant 0 : index
    %97 = vector.load %arg7[%c0_56, %c0_57] : memref<64x96xbf16, #tpu.memory_space<vmem>>, vector<64x96xbf16>
    %cst_58 = arith.constant dense<0.000000e+00> : vector<16x96xf32>
    %98 = tpu.matmul %96, %97, %cst_58 {dimension_numbers = #tpu.dot_dimension_numbers<[1], [0], [0], [1], [0, 0, 1, 1], [], []>} : vector<16x64xbf16>, vector<64x96xbf16>, vector<16x96xf32> -> vector<16x96xf32>
    %99 = vector.extract_strided_slice %98 {offsets = [0, 0], sizes = [16, 64], strides = [1, 1]} : vector<16x96xf32> to vector<16x64xf32>
    %c25_59 = arith.constant 25 : index
    %c0_60 = arith.constant 0 : index
    %100 = vector.load %arg6[%c25_59, %c0_60] : memref<32x64xf32, #tpu.memory_space<vmem>>, vector<1x64xf32>
    %101 = vector.broadcast %100 : vector<1x64xf32> to vector<16x64xf32>
    %102 = arith.addf %99, %101 : vector<16x64xf32>
    %cst_61 = arith.constant 0.000000e+00 : f32
    %103 = vector.broadcast %cst_61 : f32 to vector<16x64xf32>
    %104 = arith.maximumf %102, %103 : vector<16x64xf32>
    %105 = math.absf %102 : vector<16x64xf32>
    %cst_62 = arith.constant 0.000000e+00 : f32
    %106 = vector.broadcast %cst_62 : f32 to vector<16x64xf32>
    %107 = arith.subf %106, %105 : vector<16x64xf32>
    %108 = math.exp %107 : vector<16x64xf32>
    %109 = math.log1p %108 : vector<16x64xf32>
    %110 = arith.addf %104, %109 : vector<16x64xf32>
    %c0_63 = arith.constant 0 : index
    %c0_64 = arith.constant 0 : index
    %111 = vector.load %arg15[%c0_63, %c0_64] : memref<16x64xf32, #tpu.memory_space<vmem>>, vector<16x64xf32>
    tpu.vector_store %arg15[%c0_63, %c0_64], %110 {strides = array<i32>} : memref<16x64xf32, #tpu.memory_space<vmem>>, vector<16x64xf32>,
    %112 = arith.mulf %110, %67 : vector<16x64xf32>
    %c0_65 = arith.constant 0 : index
    %c0_66 = arith.constant 0 : index
    %113 = vector.load %arg16[%c0_65, %c0_66] : memref<16x64xf32, #tpu.memory_space<vmem>>, vector<16x64xf32>
    tpu.vector_store %arg16[%c0_65, %c0_66], %112 {strides = array<i32>} : memref<16x64xf32, #tpu.memory_space<vmem>>, vector<16x64xf32>,
    %114 = vector.extract_strided_slice %98 {offsets = [0, 64], sizes = [16, 32], strides = [1, 1]} : vector<16x96xf32> to vector<16x32xf32>
    %c0_67 = arith.constant 0 : index
    %c0_68 = arith.constant 0 : index
    %115 = vector.load %arg17[%c0_67, %c0_68] : memref<16x32xf32, #tpu.memory_space<vmem>>, vector<16x32xf32>
    tpu.vector_store %arg17[%c0_67, %c0_68], %114 {strides = array<i32>} : memref<16x32xf32, #tpu.memory_space<vmem>>, vector<16x32xf32>,
    %c0_69 = arith.constant 0 : index
    %c0_70 = arith.constant 0 : index
    %116 = vector.load %arg4[%c0_69, %c0_70] : memref<32x64xf32, #tpu.memory_space<vmem>>, vector<16x64xf32>
    %c0_71 = arith.constant 0 : index
    %c0_72 = arith.constant 0 : index
    %117 = vector.load %arg6[%c0_71, %c0_72] : memref<32x64xf32, #tpu.memory_space<vmem>>, vector<16x64xf32>
    %cst_73 = arith.constant 0.000000e+00 : f32
    %118 = vector.broadcast %cst_73 : f32 to vector<16x64xf32>
    %c7_74 = arith.constant 7 : index
    %c0_75 = arith.constant 0 : index
    %c0_76 = arith.constant 0 : index
    %119 = vector.load %arg20[%c7_74, %c0_75, %c0_76] : memref<8x16x64xf32, #tpu.memory_space<vmem>>, vector<1x16x64xf32>
    %120 = vector.shape_cast %119 : vector<1x16x64xf32> to vector<16x64xf32>
    %121 = vector.shape_cast %118 : vector<16x64xf32> to vector<1x16x64xf32>
    tpu.vector_store %arg20[%c7_74, %c0_75, %c0_76], %121 {strides = array<i32>} : memref<8x16x64xf32, #tpu.memory_space<vmem>>, vector<1x16x64xf32>,
    %c0_77 = arith.constant 0 : index
    %c0_78 = arith.constant 0 : index
    %c0_79 = arith.constant 0 : index
    %122 = vector.load %arg23[%c0_77, %c0_78, %c0_79] : memref<8x16x64xf32, #tpu.memory_space<vmem>>, vector<1x16x64xf32>
    %123 = vector.shape_cast %122 : vector<1x16x64xf32> to vector<16x64xf32>
    %124 = vector.shape_cast %118 : vector<16x64xf32> to vector<1x16x64xf32>
    tpu.vector_store %arg23[%c0_77, %c0_78, %c0_79], %124 {strides = array<i32>} : memref<8x16x64xf32, #tpu.memory_space<vmem>>, vector<1x16x64xf32>,
    %c0_i32 = arith.constant 0 : i32
    %c2_i32 = arith.constant 2 : i32
    %125 = arith.addi %c0_i32, %c2_i32 : i32
    %c1_i32 = arith.constant 1 : i32
    scf.for %arg24 = %c0_i32 to %125 step %c1_i32  : i32 {
      %c1_i32_92 = arith.constant 1 : i32
      %141 = arith.muli %arg24, %c1_i32_92 : i32
      %c0_i32_93 = arith.constant 0 : i32
      %142 = arith.addi %c0_i32_93, %141 : i32
      %c8_i32 = arith.constant 8 : i32
      %143 = arith.muli %142, %c8_i32 : i32
      %144 = tpu.assume_multiple %143, 8 : i32
      %c1_i32_94 = arith.constant 1 : i32
      %145 = arith.subi %c1_i32_94, %142 : i32
      %c8_i32_95 = arith.constant 8 : i32
      %146 = arith.muli %145, %c8_i32_95 : i32
      %147 = tpu.assume_multiple %146, 8 : i32
      %148 = arith.index_cast %144 : i32 to index
      %c0_96 = arith.constant 0 : index
      %149 = vector.load %arg12[%148, %c0_96] : memref<16x64xf32, #tpu.memory_space<vmem>>, vector<8x64xf32>
      %150 = arith.index_cast %144 : i32 to index
      %c0_97 = arith.constant 0 : index
      %151 = vector.load %arg13[%150, %c0_97] : memref<16x64xf32, #tpu.memory_space<vmem>>, vector<8x64xf32>
      %152 = arith.index_cast %144 : i32 to index
      %c0_98 = arith.constant 0 : index
      %153 = vector.load %arg14[%152, %c0_98] : memref<16x32xf32, #tpu.memory_space<vmem>>, vector<8x32xf32>
      %154 = vector.extract_strided_slice %153 {offsets = [0, 0], sizes = [8, 16], strides = [1, 1]} : vector<8x32xf32> to vector<8x16xf32>
      %155 = vector.extract_strided_slice %153 {offsets = [0, 16], sizes = [8, 16], strides = [1, 1]} : vector<8x32xf32> to vector<8x16xf32>
      %156 = vector.shape_cast %149 : vector<8x64xf32> to vector<8x1x64xf32>
      %157 = vector.shape_cast %116 : vector<16x64xf32> to vector<1x16x64xf32>
      %158 = vector.broadcast %156 : vector<8x1x64xf32> to vector<8x16x64xf32>
      %159 = vector.broadcast %157 : vector<1x16x64xf32> to vector<8x16x64xf32>
      %160 = arith.mulf %158, %159 : vector<8x16x64xf32>
      %161 = math.exp %160 : vector<8x16x64xf32>
      %c0_99 = arith.constant 0 : index
      %c0_100 = arith.constant 0 : index
      %c0_101 = arith.constant 0 : index
      %162 = vector.load %arg18[%c0_99, %c0_100, %c0_101] : memref<8x16x64xf32, #tpu.memory_space<vmem>>, vector<8x16x64xf32>
      tpu.vector_store %arg18[%c0_99, %c0_100, %c0_101], %161 {strides = array<i32>} : memref<8x16x64xf32, #tpu.memory_space<vmem>>, vector<8x16x64xf32>,
      %163 = vector.shape_cast %151 : vector<8x64xf32> to vector<8x1x64xf32>
      %164 = vector.shape_cast %154 : vector<8x16xf32> to vector<8x16x1xf32>
      %165 = vector.broadcast %163 : vector<8x1x64xf32> to vector<8x16x64xf32>
      %166 = vector.broadcast %164 : vector<8x16x1xf32> to vector<8x16x64xf32>
      %167 = arith.mulf %165, %166 : vector<8x16x64xf32>
      %c0_102 = arith.constant 0 : index
      %c0_103 = arith.constant 0 : index
      %c0_104 = arith.constant 0 : index
      %168 = vector.load %arg19[%c0_102, %c0_103, %c0_104] : memref<8x16x64xf32, #tpu.memory_space<vmem>>, vector<8x16x64xf32>
      tpu.vector_store %arg19[%c0_102, %c0_103, %c0_104], %167 {strides = array<i32>} : memref<8x16x64xf32, #tpu.memory_space<vmem>>, vector<8x16x64xf32>,
      %169 = arith.index_cast %147 : i32 to index
      %c0_105 = arith.constant 0 : index
      %170 = vector.load %arg15[%169, %c0_105] : memref<16x64xf32, #tpu.memory_space<vmem>>, vector<8x64xf32>
      %171 = arith.index_cast %147 : i32 to index
      %c0_106 = arith.constant 0 : index
      %172 = vector.load %arg16[%171, %c0_106] : memref<16x64xf32, #tpu.memory_space<vmem>>, vector<8x64xf32>
      %173 = arith.index_cast %147 : i32 to index
      %c0_107 = arith.constant 0 : index
      %174 = vector.load %arg17[%173, %c0_107] : memref<16x32xf32, #tpu.memory_space<vmem>>, vector<8x32xf32>
      %175 = vector.extract_strided_slice %174 {offsets = [0, 0], sizes = [8, 16], strides = [1, 1]} : vector<8x32xf32> to vector<8x16xf32>
      %176 = vector.extract_strided_slice %174 {offsets = [0, 16], sizes = [8, 16], strides = [1, 1]} : vector<8x32xf32> to vector<8x16xf32>
      %177 = vector.shape_cast %170 : vector<8x64xf32> to vector<8x1x64xf32>
      %178 = vector.shape_cast %117 : vector<16x64xf32> to vector<1x16x64xf32>
      %179 = vector.broadcast %177 : vector<8x1x64xf32> to vector<8x16x64xf32>
      %180 = vector.broadcast %178 : vector<1x16x64xf32> to vector<8x16x64xf32>
      %181 = arith.mulf %179, %180 : vector<8x16x64xf32>
      %182 = math.exp %181 : vector<8x16x64xf32>
      %c0_108 = arith.constant 0 : index
      %c0_109 = arith.constant 0 : index
      %c0_110 = arith.constant 0 : index
      %183 = vector.load %arg21[%c0_108, %c0_109, %c0_110] : memref<8x16x64xf32, #tpu.memory_space<vmem>>, vector<8x16x64xf32>
      tpu.vector_store %arg21[%c0_108, %c0_109, %c0_110], %182 {strides = array<i32>} : memref<8x16x64xf32, #tpu.memory_space<vmem>>, vector<8x16x64xf32>,
      %184 = vector.shape_cast %172 : vector<8x64xf32> to vector<8x1x64xf32>
      %185 = vector.shape_cast %175 : vector<8x16xf32> to vector<8x16x1xf32>
      %186 = vector.broadcast %184 : vector<8x1x64xf32> to vector<8x16x64xf32>
      %187 = vector.broadcast %185 : vector<8x16x1xf32> to vector<8x16x64xf32>
      %188 = arith.mulf %186, %187 : vector<8x16x64xf32>
      %c0_111 = arith.constant 0 : index
      %c0_112 = arith.constant 0 : index
      %c0_113 = arith.constant 0 : index
      %189 = vector.load %arg22[%c0_111, %c0_112, %c0_113] : memref<8x16x64xf32, #tpu.memory_space<vmem>>, vector<8x16x64xf32>
      tpu.vector_store %arg22[%c0_111, %c0_112, %c0_113], %188 {strides = array<i32>} : memref<8x16x64xf32, #tpu.memory_space<vmem>>, vector<8x16x64xf32>,
      %c7_114 = arith.constant 7 : index
      %c0_115 = arith.constant 0 : index
      %c0_116 = arith.constant 0 : index
      %190 = vector.load %arg20[%c7_114, %c0_115, %c0_116] : memref<8x16x64xf32, #tpu.memory_space<vmem>>, vector<1x16x64xf32>
      %191 = vector.shape_cast %190 : vector<1x16x64xf32> to vector<16x64xf32>
      %c0_117 = arith.constant 0 : index
      %c0_118 = arith.constant 0 : index
      %c0_119 = arith.constant 0 : index
      %192 = vector.load %arg23[%c0_117, %c0_118, %c0_119] : memref<8x16x64xf32, #tpu.memory_space<vmem>>, vector<1x16x64xf32>
      %193 = vector.shape_cast %192 : vector<1x16x64xf32> to vector<16x64xf32>
      %c0_120 = arith.constant 0 : index
      %c0_121 = arith.constant 0 : index
      %c0_122 = arith.constant 0 : index
      %194 = vector.load %arg18[%c0_120, %c0_121, %c0_122] : memref<8x16x64xf32, #tpu.memory_space<vmem>>, vector<1x16x64xf32>
      %195 = vector.shape_cast %194 : vector<1x16x64xf32> to vector<16x64xf32>
      %196 = arith.mulf %195, %191 : vector<16x64xf32>
      %c0_123 = arith.constant 0 : index
      %c0_124 = arith.constant 0 : index
      %c0_125 = arith.constant 0 : index
      %197 = vector.load %arg19[%c0_123, %c0_124, %c0_125] : memref<8x16x64xf32, #tpu.memory_space<vmem>>, vector<1x16x64xf32>
      %198 = vector.shape_cast %197 : vector<1x16x64xf32> to vector<16x64xf32>
      %199 = arith.addf %196, %198 : vector<16x64xf32>
      %c0_126 = arith.constant 0 : index
      %c0_127 = arith.constant 0 : index
      %c0_128 = arith.constant 0 : index
      %200 = vector.load %arg20[%c0_126, %c0_127, %c0_128] : memref<8x16x64xf32, #tpu.memory_space<vmem>>, vector<1x16x64xf32>
      %201 = vector.shape_cast %200 : vector<1x16x64xf32> to vector<16x64xf32>
      %202 = vector.shape_cast %199 : vector<16x64xf32> to vector<1x16x64xf32>
      tpu.vector_store %arg20[%c0_126, %c0_127, %c0_128], %202 {strides = array<i32>} : memref<8x16x64xf32, #tpu.memory_space<vmem>>, vector<1x16x64xf32>,
      %c7_129 = arith.constant 7 : index
      %c0_130 = arith.constant 0 : index
      %c0_131 = arith.constant 0 : index
      %203 = vector.load %arg21[%c7_129, %c0_130, %c0_131] : memref<8x16x64xf32, #tpu.memory_space<vmem>>, vector<1x16x64xf32>
      %204 = vector.shape_cast %203 : vector<1x16x64xf32> to vector<16x64xf32>
      %205 = arith.mulf %204, %193 : vector<16x64xf32>
      %c7_132 = arith.constant 7 : index
      %c0_133 = arith.constant 0 : index
      %c0_134 = arith.constant 0 : index
      %206 = vector.load %arg22[%c7_132, %c0_133, %c0_134] : memref<8x16x64xf32, #tpu.memory_space<vmem>>, vector<1x16x64xf32>
      %207 = vector.shape_cast %206 : vector<1x16x64xf32> to vector<16x64xf32>
      %208 = arith.addf %205, %207 : vector<16x64xf32>
      %c7_135 = arith.constant 7 : index
      %c0_136 = arith.constant 0 : index
      %c0_137 = arith.constant 0 : index
      %209 = vector.load %arg23[%c7_135, %c0_136, %c0_137] : memref<8x16x64xf32, #tpu.memory_space<vmem>>, vector<1x16x64xf32>
      %210 = vector.shape_cast %209 : vector<1x16x64xf32> to vector<16x64xf32>
      %211 = vector.shape_cast %208 : vector<16x64xf32> to vector<1x16x64xf32>
      tpu.vector_store %arg23[%c7_135, %c0_136, %c0_137], %211 {strides = array<i32>} : memref<8x16x64xf32, #tpu.memory_space<vmem>>, vector<1x16x64xf32>,
      %c1 = arith.constant 1 : index
      %c0_138 = arith.constant 0 : index
      %c0_139 = arith.constant 0 : index
      %212 = vector.load %arg18[%c1, %c0_138, %c0_139] : memref<8x16x64xf32, #tpu.memory_space<vmem>>, vector<1x16x64xf32>
      %213 = vector.shape_cast %212 : vector<1x16x64xf32> to vector<16x64xf32>
      %214 = arith.mulf %213, %199 : vector<16x64xf32>
      %c1_140 = arith.constant 1 : index
      %c0_141 = arith.constant 0 : index
      %c0_142 = arith.constant 0 : index
      %215 = vector.load %arg19[%c1_140, %c0_141, %c0_142] : memref<8x16x64xf32, #tpu.memory_space<vmem>>, vector<1x16x64xf32>
      %216 = vector.shape_cast %215 : vector<1x16x64xf32> to vector<16x64xf32>
      %217 = arith.addf %214, %216 : vector<16x64xf32>
      %c1_143 = arith.constant 1 : index
      %c0_144 = arith.constant 0 : index
      %c0_145 = arith.constant 0 : index
      %218 = vector.load %arg20[%c1_143, %c0_144, %c0_145] : memref<8x16x64xf32, #tpu.memory_space<vmem>>, vector<1x16x64xf32>
      %219 = vector.shape_cast %218 : vector<1x16x64xf32> to vector<16x64xf32>
      %220 = vector.shape_cast %217 : vector<16x64xf32> to vector<1x16x64xf32>
      tpu.vector_store %arg20[%c1_143, %c0_144, %c0_145], %220 {strides = array<i32>} : memref<8x16x64xf32, #tpu.memory_space<vmem>>, vector<1x16x64xf32>,
      %c6_146 = arith.constant 6 : index
      %c0_147 = arith.constant 0 : index
      %c0_148 = arith.constant 0 : index
      %221 = vector.load %arg21[%c6_146, %c0_147, %c0_148] : memref<8x16x64xf32, #tpu.memory_space<vmem>>, vector<1x16x64xf32>
      %222 = vector.shape_cast %221 : vector<1x16x64xf32> to vector<16x64xf32>
      %223 = arith.mulf %222, %208 : vector<16x64xf32>
      %c6_149 = arith.constant 6 : index
      %c0_150 = arith.constant 0 : index
      %c0_151 = arith.constant 0 : index
      %224 = vector.load %arg22[%c6_149, %c0_150, %c0_151] : memref<8x16x64xf32, #tpu.memory_space<vmem>>, vector<1x16x64xf32>
      %225 = vector.shape_cast %224 : vector<1x16x64xf32> to vector<16x64xf32>
      %226 = arith.addf %223, %225 : vector<16x64xf32>
      %c6_152 = arith.constant 6 : index
      %c0_153 = arith.constant 0 : index
      %c0_154 = arith.constant 0 : index
      %227 = vector.load %arg23[%c6_152, %c0_153, %c0_154] : memref<8x16x64xf32, #tpu.memory_space<vmem>>, vector<1x16x64xf32>
      %228 = vector.shape_cast %227 : vector<1x16x64xf32> to vector<16x64xf32>
      %229 = vector.shape_cast %226 : vector<16x64xf32> to vector<1x16x64xf32>
      tpu.vector_store %arg23[%c6_152, %c0_153, %c0_154], %229 {strides = array<i32>} : memref<8x16x64xf32, #tpu.memory_space<vmem>>, vector<1x16x64xf32>,
      %c2 = arith.constant 2 : index
      %c0_155 = arith.constant 0 : index
      %c0_156 = arith.constant 0 : index
      %230 = vector.load %arg18[%c2, %c0_155, %c0_156] : memref<8x16x64xf32, #tpu.memory_space<vmem>>, vector<1x16x64xf32>
      %231 = vector.shape_cast %230 : vector<1x16x64xf32> to vector<16x64xf32>
      %232 = arith.mulf %231, %217 : vector<16x64xf32>
      %c2_157 = arith.constant 2 : index
      %c0_158 = arith.constant 0 : index
      %c0_159 = arith.constant 0 : index
      %233 = vector.load %arg19[%c2_157, %c0_158, %c0_159] : memref<8x16x64xf32, #tpu.memory_space<vmem>>, vector<1x16x64xf32>
      %234 = vector.shape_cast %233 : vector<1x16x64xf32> to vector<16x64xf32>
      %235 = arith.addf %232, %234 : vector<16x64xf32>
      %c2_160 = arith.constant 2 : index
      %c0_161 = arith.constant 0 : index
      %c0_162 = arith.constant 0 : index
      %236 = vector.load %arg20[%c2_160, %c0_161, %c0_162] : memref<8x16x64xf32, #tpu.memory_space<vmem>>, vector<1x16x64xf32>
      %237 = vector.shape_cast %236 : vector<1x16x64xf32> to vector<16x64xf32>
      %238 = vector.shape_cast %235 : vector<16x64xf32> to vector<1x16x64xf32>
      tpu.vector_store %arg20[%c2_160, %c0_161, %c0_162], %238 {strides = array<i32>} : memref<8x16x64xf32, #tpu.memory_space<vmem>>, vector<1x16x64xf32>,
      %c5_163 = arith.constant 5 : index
      %c0_164 = arith.constant 0 : index
      %c0_165 = arith.constant 0 : index
      %239 = vector.load %arg21[%c5_163, %c0_164, %c0_165] : memref<8x16x64xf32, #tpu.memory_space<vmem>>, vector<1x16x64xf32>
      %240 = vector.shape_cast %239 : vector<1x16x64xf32> to vector<16x64xf32>
      %241 = arith.mulf %240, %226 : vector<16x64xf32>
      %c5_166 = arith.constant 5 : index
      %c0_167 = arith.constant 0 : index
      %c0_168 = arith.constant 0 : index
      %242 = vector.load %arg22[%c5_166, %c0_167, %c0_168] : memref<8x16x64xf32, #tpu.memory_space<vmem>>, vector<1x16x64xf32>
      %243 = vector.shape_cast %242 : vector<1x16x64xf32> to vector<16x64xf32>
      %244 = arith.addf %241, %243 : vector<16x64xf32>
      %c5_169 = arith.constant 5 : index
      %c0_170 = arith.constant 0 : index
      %c0_171 = arith.constant 0 : index
      %245 = vector.load %arg23[%c5_169, %c0_170, %c0_171] : memref<8x16x64xf32, #tpu.memory_space<vmem>>, vector<1x16x64xf32>
      %246 = vector.shape_cast %245 : vector<1x16x64xf32> to vector<16x64xf32>
      %247 = vector.shape_cast %244 : vector<16x64xf32> to vector<1x16x64xf32>
      tpu.vector_store %arg23[%c5_169, %c0_170, %c0_171], %247 {strides = array<i32>} : memref<8x16x64xf32, #tpu.memory_space<vmem>>, vector<1x16x64xf32>,
      %c3 = arith.constant 3 : index
      %c0_172 = arith.constant 0 : index
      %c0_173 = arith.constant 0 : index
      %248 = vector.load %arg18[%c3, %c0_172, %c0_173] : memref<8x16x64xf32, #tpu.memory_space<vmem>>, vector<1x16x64xf32>
      %249 = vector.shape_cast %248 : vector<1x16x64xf32> to vector<16x64xf32>
      %250 = arith.mulf %249, %235 : vector<16x64xf32>
      %c3_174 = arith.constant 3 : index
      %c0_175 = arith.constant 0 : index
      %c0_176 = arith.constant 0 : index
      %251 = vector.load %arg19[%c3_174, %c0_175, %c0_176] : memref<8x16x64xf32, #tpu.memory_space<vmem>>, vector<1x16x64xf32>
      %252 = vector.shape_cast %251 : vector<1x16x64xf32> to vector<16x64xf32>
      %253 = arith.addf %250, %252 : vector<16x64xf32>
      %c3_177 = arith.constant 3 : index
      %c0_178 = arith.constant 0 : index
      %c0_179 = arith.constant 0 : index
      %254 = vector.load %arg20[%c3_177, %c0_178, %c0_179] : memref<8x16x64xf32, #tpu.memory_space<vmem>>, vector<1x16x64xf32>
      %255 = vector.shape_cast %254 : vector<1x16x64xf32> to vector<16x64xf32>
      %256 = vector.shape_cast %253 : vector<16x64xf32> to vector<1x16x64xf32>
      tpu.vector_store %arg20[%c3_177, %c0_178, %c0_179], %256 {strides = array<i32>} : memref<8x16x64xf32, #tpu.memory_space<vmem>>, vector<1x16x64xf32>,
      %c4 = arith.constant 4 : index
      %c0_180 = arith.constant 0 : index
      %c0_181 = arith.constant 0 : index
      %257 = vector.load %arg21[%c4, %c0_180, %c0_181] : memref<8x16x64xf32, #tpu.memory_space<vmem>>, vector<1x16x64xf32>
      %258 = vector.shape_cast %257 : vector<1x16x64xf32> to vector<16x64xf32>
      %259 = arith.mulf %258, %244 : vector<16x64xf32>
      %c4_182 = arith.constant 4 : index
      %c0_183 = arith.constant 0 : index
      %c0_184 = arith.constant 0 : index
      %260 = vector.load %arg22[%c4_182, %c0_183, %c0_184] : memref<8x16x64xf32, #tpu.memory_space<vmem>>, vector<1x16x64xf32>
      %261 = vector.shape_cast %260 : vector<1x16x64xf32> to vector<16x64xf32>
      %262 = arith.addf %259, %261 : vector<16x64xf32>
      %c4_185 = arith.constant 4 : index
      %c0_186 = arith.constant 0 : index
      %c0_187 = arith.constant 0 : index
      %263 = vector.load %arg23[%c4_185, %c0_186, %c0_187] : memref<8x16x64xf32, #tpu.memory_space<vmem>>, vector<1x16x64xf32>
      %264 = vector.shape_cast %263 : vector<1x16x64xf32> to vector<16x64xf32>
      %265 = vector.shape_cast %262 : vector<16x64xf32> to vector<1x16x64xf32>
      tpu.vector_store %arg23[%c4_185, %c0_186, %c0_187], %265 {strides = array<i32>} : memref<8x16x64xf32, #tpu.memory_space<vmem>>, vector<1x16x64xf32>,
      %c4_188 = arith.constant 4 : index
      %c0_189 = arith.constant 0 : index
      %c0_190 = arith.constant 0 : index
      %266 = vector.load %arg18[%c4_188, %c0_189, %c0_190] : memref<8x16x64xf32, #tpu.memory_space<vmem>>, vector<1x16x64xf32>
      %267 = vector.shape_cast %266 : vector<1x16x64xf32> to vector<16x64xf32>
      %268 = arith.mulf %267, %253 : vector<16x64xf32>
      %c4_191 = arith.constant 4 : index
      %c0_192 = arith.constant 0 : index
      %c0_193 = arith.constant 0 : index
      %269 = vector.load %arg19[%c4_191, %c0_192, %c0_193] : memref<8x16x64xf32, #tpu.memory_space<vmem>>, vector<1x16x64xf32>
      %270 = vector.shape_cast %269 : vector<1x16x64xf32> to vector<16x64xf32>
      %271 = arith.addf %268, %270 : vector<16x64xf32>
      %c4_194 = arith.constant 4 : index
      %c0_195 = arith.constant 0 : index
      %c0_196 = arith.constant 0 : index
      %272 = vector.load %arg20[%c4_194, %c0_195, %c0_196] : memref<8x16x64xf32, #tpu.memory_space<vmem>>, vector<1x16x64xf32>
      %273 = vector.shape_cast %272 : vector<1x16x64xf32> to vector<16x64xf32>
      %274 = vector.shape_cast %271 : vector<16x64xf32> to vector<1x16x64xf32>
      tpu.vector_store %arg20[%c4_194, %c0_195, %c0_196], %274 {strides = array<i32>} : memref<8x16x64xf32, #tpu.memory_space<vmem>>, vector<1x16x64xf32>,
      %c3_197 = arith.constant 3 : index
      %c0_198 = arith.constant 0 : index
      %c0_199 = arith.constant 0 : index
      %275 = vector.load %arg21[%c3_197, %c0_198, %c0_199] : memref<8x16x64xf32, #tpu.memory_space<vmem>>, vector<1x16x64xf32>
      %276 = vector.shape_cast %275 : vector<1x16x64xf32> to vector<16x64xf32>
      %277 = arith.mulf %276, %262 : vector<16x64xf32>
      %c3_200 = arith.constant 3 : index
      %c0_201 = arith.constant 0 : index
      %c0_202 = arith.constant 0 : index
      %278 = vector.load %arg22[%c3_200, %c0_201, %c0_202] : memref<8x16x64xf32, #tpu.memory_space<vmem>>, vector<1x16x64xf32>
      %279 = vector.shape_cast %278 : vector<1x16x64xf32> to vector<16x64xf32>
      %280 = arith.addf %277, %279 : vector<16x64xf32>
      %c3_203 = arith.constant 3 : index
      %c0_204 = arith.constant 0 : index
      %c0_205 = arith.constant 0 : index
      %281 = vector.load %arg23[%c3_203, %c0_204, %c0_205] : memref<8x16x64xf32, #tpu.memory_space<vmem>>, vector<1x16x64xf32>
      %282 = vector.shape_cast %281 : vector<1x16x64xf32> to vector<16x64xf32>
      %283 = vector.shape_cast %280 : vector<16x64xf32> to vector<1x16x64xf32>
      tpu.vector_store %arg23[%c3_203, %c0_204, %c0_205], %283 {strides = array<i32>} : memref<8x16x64xf32, #tpu.memory_space<vmem>>, vector<1x16x64xf32>,
      %c5_206 = arith.constant 5 : index
      %c0_207 = arith.constant 0 : index
      %c0_208 = arith.constant 0 : index
      %284 = vector.load %arg18[%c5_206, %c0_207, %c0_208] : memref<8x16x64xf32, #tpu.memory_space<vmem>>, vector<1x16x64xf32>
      %285 = vector.shape_cast %284 : vector<1x16x64xf32> to vector<16x64xf32>
      %286 = arith.mulf %285, %271 : vector<16x64xf32>
      %c5_209 = arith.constant 5 : index
      %c0_210 = arith.constant 0 : index
      %c0_211 = arith.constant 0 : index
      %287 = vector.load %arg19[%c5_209, %c0_210, %c0_211] : memref<8x16x64xf32, #tpu.memory_space<vmem>>, vector<1x16x64xf32>
      %288 = vector.shape_cast %287 : vector<1x16x64xf32> to vector<16x64xf32>
      %289 = arith.addf %286, %288 : vector<16x64xf32>
      %c5_212 = arith.constant 5 : index
      %c0_213 = arith.constant 0 : index
      %c0_214 = arith.constant 0 : index
      %290 = vector.load %arg20[%c5_212, %c0_213, %c0_214] : memref<8x16x64xf32, #tpu.memory_space<vmem>>, vector<1x16x64xf32>
      %291 = vector.shape_cast %290 : vector<1x16x64xf32> to vector<16x64xf32>
      %292 = vector.shape_cast %289 : vector<16x64xf32> to vector<1x16x64xf32>
      tpu.vector_store %arg20[%c5_212, %c0_213, %c0_214], %292 {strides = array<i32>} : memref<8x16x64xf32, #tpu.memory_space<vmem>>, vector<1x16x64xf32>,
      %c2_215 = arith.constant 2 : index
      %c0_216 = arith.constant 0 : index
      %c0_217 = arith.constant 0 : index
      %293 = vector.load %arg21[%c2_215, %c0_216, %c0_217] : memref<8x16x64xf32, #tpu.memory_space<vmem>>, vector<1x16x64xf32>
      %294 = vector.shape_cast %293 : vector<1x16x64xf32> to vector<16x64xf32>
      %295 = arith.mulf %294, %280 : vector<16x64xf32>
      %c2_218 = arith.constant 2 : index
      %c0_219 = arith.constant 0 : index
      %c0_220 = arith.constant 0 : index
      %296 = vector.load %arg22[%c2_218, %c0_219, %c0_220] : memref<8x16x64xf32, #tpu.memory_space<vmem>>, vector<1x16x64xf32>
      %297 = vector.shape_cast %296 : vector<1x16x64xf32> to vector<16x64xf32>
      %298 = arith.addf %295, %297 : vector<16x64xf32>
      %c2_221 = arith.constant 2 : index
      %c0_222 = arith.constant 0 : index
      %c0_223 = arith.constant 0 : index
      %299 = vector.load %arg23[%c2_221, %c0_222, %c0_223] : memref<8x16x64xf32, #tpu.memory_space<vmem>>, vector<1x16x64xf32>
      %300 = vector.shape_cast %299 : vector<1x16x64xf32> to vector<16x64xf32>
      %301 = vector.shape_cast %298 : vector<16x64xf32> to vector<1x16x64xf32>
      tpu.vector_store %arg23[%c2_221, %c0_222, %c0_223], %301 {strides = array<i32>} : memref<8x16x64xf32, #tpu.memory_space<vmem>>, vector<1x16x64xf32>,
      %c6_224 = arith.constant 6 : index
      %c0_225 = arith.constant 0 : index
      %c0_226 = arith.constant 0 : index
      %302 = vector.load %arg18[%c6_224, %c0_225, %c0_226] : memref<8x16x64xf32, #tpu.memory_space<vmem>>, vector<1x16x64xf32>
      %303 = vector.shape_cast %302 : vector<1x16x64xf32> to vector<16x64xf32>
      %304 = arith.mulf %303, %289 : vector<16x64xf32>
      %c6_227 = arith.constant 6 : index
      %c0_228 = arith.constant 0 : index
      %c0_229 = arith.constant 0 : index
      %305 = vector.load %arg19[%c6_227, %c0_228, %c0_229] : memref<8x16x64xf32, #tpu.memory_space<vmem>>, vector<1x16x64xf32>
      %306 = vector.shape_cast %305 : vector<1x16x64xf32> to vector<16x64xf32>
      %307 = arith.addf %304, %306 : vector<16x64xf32>
      %c6_230 = arith.constant 6 : index
      %c0_231 = arith.constant 0 : index
      %c0_232 = arith.constant 0 : index
      %308 = vector.load %arg20[%c6_230, %c0_231, %c0_232] : memref<8x16x64xf32, #tpu.memory_space<vmem>>, vector<1x16x64xf32>
      %309 = vector.shape_cast %308 : vector<1x16x64xf32> to vector<16x64xf32>
      %310 = vector.shape_cast %307 : vector<16x64xf32> to vector<1x16x64xf32>
      tpu.vector_store %arg20[%c6_230, %c0_231, %c0_232], %310 {strides = array<i32>} : memref<8x16x64xf32, #tpu.memory_space<vmem>>, vector<1x16x64xf32>,
      %c1_233 = arith.constant 1 : index
      %c0_234 = arith.constant 0 : index
      %c0_235 = arith.constant 0 : index
      %311 = vector.load %arg21[%c1_233, %c0_234, %c0_235] : memref<8x16x64xf32, #tpu.memory_space<vmem>>, vector<1x16x64xf32>
      %312 = vector.shape_cast %311 : vector<1x16x64xf32> to vector<16x64xf32>
      %313 = arith.mulf %312, %298 : vector<16x64xf32>
      %c1_236 = arith.constant 1 : index
      %c0_237 = arith.constant 0 : index
      %c0_238 = arith.constant 0 : index
      %314 = vector.load %arg22[%c1_236, %c0_237, %c0_238] : memref<8x16x64xf32, #tpu.memory_space<vmem>>, vector<1x16x64xf32>
      %315 = vector.shape_cast %314 : vector<1x16x64xf32> to vector<16x64xf32>
      %316 = arith.addf %313, %315 : vector<16x64xf32>
      %c1_239 = arith.constant 1 : index
      %c0_240 = arith.constant 0 : index
      %c0_241 = arith.constant 0 : index
      %317 = vector.load %arg23[%c1_239, %c0_240, %c0_241] : memref<8x16x64xf32, #tpu.memory_space<vmem>>, vector<1x16x64xf32>
      %318 = vector.shape_cast %317 : vector<1x16x64xf32> to vector<16x64xf32>
      %319 = vector.shape_cast %316 : vector<16x64xf32> to vector<1x16x64xf32>
      tpu.vector_store %arg23[%c1_239, %c0_240, %c0_241], %319 {strides = array<i32>} : memref<8x16x64xf32, #tpu.memory_space<vmem>>, vector<1x16x64xf32>,
      %c7_242 = arith.constant 7 : index
      %c0_243 = arith.constant 0 : index
      %c0_244 = arith.constant 0 : index
      %320 = vector.load %arg18[%c7_242, %c0_243, %c0_244] : memref<8x16x64xf32, #tpu.memory_space<vmem>>, vector<1x16x64xf32>
      %321 = vector.shape_cast %320 : vector<1x16x64xf32> to vector<16x64xf32>
      %322 = arith.mulf %321, %307 : vector<16x64xf32>
      %c7_245 = arith.constant 7 : index
      %c0_246 = arith.constant 0 : index
      %c0_247 = arith.constant 0 : index
      %323 = vector.load %arg19[%c7_245, %c0_246, %c0_247] : memref<8x16x64xf32, #tpu.memory_space<vmem>>, vector<1x16x64xf32>
      %324 = vector.shape_cast %323 : vector<1x16x64xf32> to vector<16x64xf32>
      %325 = arith.addf %322, %324 : vector<16x64xf32>
      %c7_248 = arith.constant 7 : index
      %c0_249 = arith.constant 0 : index
      %c0_250 = arith.constant 0 : index
      %326 = vector.load %arg20[%c7_248, %c0_249, %c0_250] : memref<8x16x64xf32, #tpu.memory_space<vmem>>, vector<1x16x64xf32>
      %327 = vector.shape_cast %326 : vector<1x16x64xf32> to vector<16x64xf32>
      %328 = vector.shape_cast %325 : vector<16x64xf32> to vector<1x16x64xf32>
      tpu.vector_store %arg20[%c7_248, %c0_249, %c0_250], %328 {strides = array<i32>} : memref<8x16x64xf32, #tpu.memory_space<vmem>>, vector<1x16x64xf32>,
      %c0_251 = arith.constant 0 : index
      %c0_252 = arith.constant 0 : index
      %c0_253 = arith.constant 0 : index
      %329 = vector.load %arg21[%c0_251, %c0_252, %c0_253] : memref<8x16x64xf32, #tpu.memory_space<vmem>>, vector<1x16x64xf32>
      %330 = vector.shape_cast %329 : vector<1x16x64xf32> to vector<16x64xf32>
      %331 = arith.mulf %330, %316 : vector<16x64xf32>
      %c0_254 = arith.constant 0 : index
      %c0_255 = arith.constant 0 : index
      %c0_256 = arith.constant 0 : index
      %332 = vector.load %arg22[%c0_254, %c0_255, %c0_256] : memref<8x16x64xf32, #tpu.memory_space<vmem>>, vector<1x16x64xf32>
      %333 = vector.shape_cast %332 : vector<1x16x64xf32> to vector<16x64xf32>
      %334 = arith.addf %331, %333 : vector<16x64xf32>
      %c0_257 = arith.constant 0 : index
      %c0_258 = arith.constant 0 : index
      %c0_259 = arith.constant 0 : index
      %335 = vector.load %arg23[%c0_257, %c0_258, %c0_259] : memref<8x16x64xf32, #tpu.memory_space<vmem>>, vector<1x16x64xf32>
      %336 = vector.shape_cast %335 : vector<1x16x64xf32> to vector<16x64xf32>
      %337 = vector.shape_cast %334 : vector<16x64xf32> to vector<1x16x64xf32>
      tpu.vector_store %arg23[%c0_257, %c0_258, %c0_259], %337 {strides = array<i32>} : memref<8x16x64xf32, #tpu.memory_space<vmem>>, vector<1x16x64xf32>,
      %c0_260 = arith.constant 0 : index
      %c0_261 = arith.constant 0 : index
      %c0_262 = arith.constant 0 : index
      %338 = vector.load %arg20[%c0_260, %c0_261, %c0_262] : memref<8x16x64xf32, #tpu.memory_space<vmem>>, vector<8x16x64xf32>
      %339 = vector.shape_cast %155 : vector<8x16xf32> to vector<8x16x1xf32>
      %340 = vector.broadcast %339 : vector<8x16x1xf32> to vector<8x16x64xf32>
      %341 = arith.mulf %338, %340 : vector<8x16x64xf32>
      %cst_263 = arith.constant dense<0.000000e+00> : vector<8x64xf32>
      %342 = vector.multi_reduction <add>, %341, %cst_263 [1] : vector<8x16x64xf32> to vector<8x64xf32>
      %c0_264 = arith.constant 0 : index
      %c0_265 = arith.constant 0 : index
      %c0_266 = arith.constant 0 : index
      %343 = vector.load %arg23[%c0_264, %c0_265, %c0_266] : memref<8x16x64xf32, #tpu.memory_space<vmem>>, vector<8x16x64xf32>
      %344 = vector.shape_cast %176 : vector<8x16xf32> to vector<8x16x1xf32>
      %345 = vector.broadcast %344 : vector<8x16x1xf32> to vector<8x16x64xf32>
      %346 = arith.mulf %343, %345 : vector<8x16x64xf32>
      %cst_267 = arith.constant dense<0.000000e+00> : vector<8x64xf32>
      %347 = vector.multi_reduction <add>, %346, %cst_267 [1] : vector<8x16x64xf32> to vector<8x64xf32>
      %348 = arith.index_cast %144 : i32 to index
      %c0_268 = arith.constant 0 : index
      %349 = vector.load %arg11[%348, %c0_268] : memref<16x64xf32, #tpu.memory_space<vmem>>, vector<8x64xf32>
      %350 = arith.addf %349, %342 : vector<8x64xf32>
      %351 = arith.index_cast %144 : i32 to index
      %c0_269 = arith.constant 0 : index
      %352 = vector.load %arg11[%351, %c0_269] : memref<16x64xf32, #tpu.memory_space<vmem>>, vector<8x64xf32>
      tpu.vector_store %arg11[%351, %c0_269], %350 {strides = array<i32>} : memref<16x64xf32, #tpu.memory_space<vmem>>, vector<8x64xf32>,
      %353 = arith.index_cast %147 : i32 to index
      %c0_270 = arith.constant 0 : index
      %354 = vector.load %arg11[%353, %c0_270] : memref<16x64xf32, #tpu.memory_space<vmem>>, vector<8x64xf32>
      %355 = arith.addf %354, %347 : vector<8x64xf32>
      %356 = arith.index_cast %147 : i32 to index
      %c0_271 = arith.constant 0 : index
      %357 = vector.load %arg11[%356, %c0_271] : memref<16x64xf32, #tpu.memory_space<vmem>>, vector<8x64xf32>
      tpu.vector_store %arg11[%356, %c0_271], %355 {strides = array<i32>} : memref<16x64xf32, #tpu.memory_space<vmem>>, vector<8x64xf32>,
    }
    %c2_i32_80 = arith.constant 2 : i32
    %c0_81 = arith.constant 0 : index
    %c0_82 = arith.constant 0 : index
    %126 = vector.load %arg10[%c0_81, %c0_82] : memref<16x64xf32, #tpu.memory_space<vmem>>, vector<16x64xf32>
    %c0_83 = arith.constant 0 : index
    %c0_84 = arith.constant 0 : index
    %127 = vector.load %arg11[%c0_83, %c0_84] : memref<16x64xf32, #tpu.memory_space<vmem>>, vector<16x64xf32>
    %128 = arith.negf %126 : vector<16x64xf32>
    %129 = math.exp %128 : vector<16x64xf32>
    %cst_85 = arith.constant 1.000000e+00 : f32
    %130 = vector.broadcast %cst_85 : f32 to vector<16x64xf32>
    %131 = arith.addf %130, %129 : vector<16x64xf32>
    %132 = arith.divf %130, %131 : vector<16x64xf32>
    %133 = arith.mulf %126, %132 : vector<16x64xf32>
    %134 = arith.mulf %127, %133 : vector<16x64xf32>
    %135 = arith.truncf %134 : vector<16x64xf32> to vector<16x64xbf16>
    %c0_86 = arith.constant 0 : index
    %c0_87 = arith.constant 0 : index
    %136 = vector.load %arg3[%c0_86, %c0_87] : memref<64x32xbf16, #tpu.memory_space<vmem>>, vector<64x32xbf16>
    %cst_88 = arith.constant dense<0.000000e+00> : vector<16x32xf32>
    %137 = tpu.matmul %135, %136, %cst_88 {dimension_numbers = #tpu.dot_dimension_numbers<[1], [0], [0], [1], [0, 0, 1, 1], [], []>} : vector<16x64xbf16>, vector<64x32xbf16>, vector<16x32xf32> -> vector<16x32xf32>
    %c0_89 = arith.constant 0 : index
    %c0_90 = arith.constant 0 : index
    %c0_91 = arith.constant 0 : index
    %138 = vector.load %arg8[%c0_89, %c0_90, %c0_91] : memref<1x16x32xf32, #tpu.memory_space<vmem>>, vector<1x16x32xf32>
    %139 = vector.shape_cast %138 : vector<1x16x32xf32> to vector<16x32xf32>
    %140 = vector.shape_cast %137 : vector<16x32xf32> to vector<1x16x32xf32>
    tpu.vector_store %arg8[%c0_89, %c0_90, %c0_91], %140 {strides = array<i32>} : memref<1x16x32xf32, #tpu.memory_space<vmem>>, vector<1x16x32xf32>,
    return
  }
  func.func @transform_0(%arg0: i32) -> (i32, i32, i32) {
    %c0_i32 = arith.constant 0 : i32
    %c0_i32_0 = arith.constant 0 : i32
    %c0_i32_1 = arith.constant 0 : i32
    return %arg0, %c0_i32, %c0_i32_0 : i32, i32, i32
  }
  func.func @transform_1(%arg0: i32) -> (i32, i32) {
    %c0_i32 = arith.constant 0 : i32
    %c0_i32_0 = arith.constant 0 : i32
    %c0_i32_1 = arith.constant 0 : i32
    return %c0_i32, %c0_i32_0 : i32, i32
  }
  func.func @transform_2(%arg0: i32) -> (i32, i32) {
    %c0_i32 = arith.constant 0 : i32
    %c0_i32_0 = arith.constant 0 : i32
    %c0_i32_1 = arith.constant 0 : i32
    return %c0_i32, %c0_i32_0 : i32, i32
  }
  func.func @transform_3(%arg0: i32) -> (i32, i32) {
    %c0_i32 = arith.constant 0 : i32
    %c0_i32_0 = arith.constant 0 : i32
    %c0_i32_1 = arith.constant 0 : i32
    return %c0_i32, %c0_i32_0 : i32, i32
  }
  func.func @transform_4(%arg0: i32) -> (i32, i32) {
    %c0_i32 = arith.constant 0 : i32
    %c0_i32_0 = arith.constant 0 : i32
    %c0_i32_1 = arith.constant 0 : i32
    return %c0_i32, %c0_i32_0 : i32, i32
  }
  func.func @transform_5(%arg0: i32) -> (i32, i32) {
    %c0_i32 = arith.constant 0 : i32
    %c0_i32_0 = arith.constant 0 : i32
    %c0_i32_1 = arith.constant 0 : i32
    return %c0_i32, %c0_i32_0 : i32, i32
  }
  func.func @transform_6(%arg0: i32) -> (i32, i32) {
    %c0_i32 = arith.constant 0 : i32
    %c0_i32_0 = arith.constant 0 : i32
    %c0_i32_1 = arith.constant 0 : i32
    return %c0_i32, %c0_i32_0 : i32, i32
  }
  func.func @transform_7(%arg0: i32) -> (i32, i32, i32) {
    %c0_i32 = arith.constant 0 : i32
    %c0_i32_0 = arith.constant 0 : i32
    %c0_i32_1 = arith.constant 0 : i32
    return %arg0, %c0_i32, %c0_i32_0 : i32, i32, i32
  }
}

</mosaic_0001>

<bundles_post_ra>
// kernel: tpu_custom_call.1
= control target key start
LH: loop header
LB: loop body
LE: loop exit
PB: predicated region body
PF: predicated region fallthrough
CT: control target
= control target key end

     0   :  { %12 = vsyncpa [#allocation18], 0  ;;  %s3741_s0 = inlined_call_operand.vmem [shape: f32[2,16,32], index: 0, kind: input, shape index: {}]   ;;  %s3742_s1 = inlined_call_operand.vmem [shape: bf16[32,128], index: 1, kind: input, shape index: {}]   ;;  %s3743_s2 = inlined_call_operand.vmem [shape: bf16[64,32], index: 2, kind: input, shape index: {}]   ;;  %s3744_s3 = inlined_call_operand.hbm [shape: f32[32,64], index: 3, kind: input, shape index: {}]   ;;  %s3745_s4 = inlined_call_operand.hbm [shape: bf16[64,96], index: 4, kind: input, shape index: {}]   ;;  %s3746_s5 = inlined_call_operand.hbm [shape: f32[32,64], index: 5, kind: input, shape index: {}]   ;;  %s3747_s6 = inlined_call_operand.hbm [shape: bf16[64,96], index: 6, kind: input, shape index: {}]   ;;  %s3748_s7 = inlined_call_operand.hbm [shape: f32[2,16,32], index: 7, kind: output, shape index: {}]  }
   0x1   :  { %13 = vsyncpa [#allocation21], 0 }
   0x2   :  { %14 = vsyncpa [#allocation24], 0 }
   0x3   :  { %15 = vsyncpa [#allocation19], 0 }
   0x4   :  { %17 = vsyncpa [#allocation19 + $0x1], 0  ;;  %s2985_s24 = smov 0   ;;  %s2987_s25 = smov 0  }
   0x5   :  { %s2989_s26 = smov 0   ;;  %s2991_s27 = smov 0  }
   0x6 LB: > { %s3006_s28 = sadd.s32 4294967295, %s2924_s27   ;;  %s2401_s29 = sadd.s32 4294967294, %s2924_s27   ;;  %s2924_s27 = sphi %s2991_s27, %s3770_s27   ;;  %s2920_s26 = sphi %s2989_s26, %s3769_s26   ;;  %s2916_s25 = sphi %s2987_s25, %s3768_s25   ;;  %s2912_s24 = sphi %s2985_s24, %s3767_s24  }
   0x7   : > { %s3010_s30 = sadd.s32 1, %s2924_s27   ;;  %s182_s8 = sadd.s32 1, %s2920_s26 }
   0x8   : > { %s179_s9 = ssub.s32 %s2924_s27, %s3010_s30  ;;  %p192_p0 = scmp.ne.s32.totalorder %s2920_s26, %s2916_s25 }
   0x9   : > { %p180_p1 = scmp.eq.s32.totalorder %s179_s9, 0  ;;  %p193_p2 = scmp.eq.s32.totalorder %s3006_s28, 1 }
   0xa   : > { %p198_p3 = scmp.ne.s32.totalorder %s2916_s25, %s2912_s24  ;;  %p199_p4 = scmp.eq.s32.totalorder %s2401_s29, 1 }
   0xb   : > { %s3021_s10 = scalar_select %p180_p1, %s2920_s26, %s182_s8  }
   0xc   : > { %p3023_p5 = por %p193_p2, %p192_p0  ;;  %p3027_p6 = por %p199_p4, %p198_p3 }
   0xd   : > { %p2402_p7 = scmp.ge.s32.totalorder %s2924_s27, 1  ;;  %p206_p8 = scmp.lt.s32.totalorder %s2924_s27, 3 }
   0xe   : > { %s3753_s11 = scalar_select %p3023_p5, 1, 0 }
   0xf   : > { %s3754_s12 = scalar_select %p3027_p6, 1, 0 }
  0x10   : > { %p3750_p9 = scmp.eq.s32.totalorder %s3006_s28, 0  ;;  %p3034_p10 = pnand %p2402_p7, %p206_p8 }
  0x11   : > { %s2930_s14 = smov [#allocation20]   ;;  %s2931_s17 = smov [#allocation17]  }
  0x12   : > { %s3755_s13 = scalar_select %p3034_p10, 1, 0 }
  0x13   : > { %s237_s15 = sshll.u32 %s2930_s14, 4  ;;  %p2543_p11 = pneg %p3034_p10  ;;  %s238_s15 = int_to_ptr.vmem [resolvable:$true] %s237_s15 }
  0x14   : > { %s224_s18 = sshll.u32 %s2931_s17, 4  ;;  %s2755_s19 = scalar_lea.vmem %s238_s15, 512  ;;  %s225_s18 = int_to_ptr.vmem [resolvable:$true] %s224_s18 }
  0x15   : > { %p3042_p12 = pnand %p3750_p9, %p2543_p11  ;;  %p2756_p0 = scmp.ne.s32.totalorder %s238_s15, %s2755_s19 }
  0x16   : > { %p2763_p3 = scmp.lt.s32.totalorder %s238_s15, %s238_s15  ;;  %p2764_p4 = scmp.lt.s32.totalorder %s2755_s19, %s2755_s19 }
  0x17   : > { %p2746_p13 = pneg %p3042_p12 }
  0x18   : > { %p2765_p7 = por %p2764_p4, %p2763_p3 }
  0x19   : > { %p2758_p1 = pnand %p2756_p0, %p2746_p13 }
  0x1b   : > { %p2759_p2 = pneg %p2758_p1 }
  0x1d   : > { %p2766_p8 = pnand %p2765_p7, %p2759_p2 }
  0x1f   : > { %2769 = shalt.err (!%p2766_p8)
}
  0x20   : > { %s3749_s20 = smov 64   ;;  %s2933_s21 = smov 4  }
  0x21   : > { %2549 = dma.hbm_to_vmem [thread:$0]  (!%p3042_p12), %s3745_s4, 512, %s238_s15, [#allocation21], %s3749_s20, %s3749_s20, %s2933_s21  }
  0x22   : > { %s2781_s29 = scalar_lea.vmem %s225_s18, 512  ;;  %p2789_p2 = scmp.lt.s32.totalorder %s225_s18, %s225_s18 }
  0x23   : > { %p2782_p11 = scmp.ne.s32.totalorder %s225_s18, %s2781_s29  ;;  %p2790_p3 = scmp.lt.s32.totalorder %s2781_s29, %s2781_s29 }
  0x25   : > { %p2784_p0 = pnand %p2782_p11, %p2746_p13  ;;  %p2791_p4 = por %p2790_p3, %p2789_p2 }
  0x27   : > { %p2785_p1 = pneg %p2784_p0 }
  0x29   : > { %p2792_p7 = pnand %p2791_p4, %p2785_p1 }
  0x2b   : > { %2795 = shalt.err (!%p2792_p7)
}
  0x2c   : > { %s2934_s8 = smov 128   ;;  %s2935_s9 = smov 8  }
  0x2d   : > { %2546 = dma.hbm_to_vmem [thread:$0]  (!%p3042_p12), %s3744_s3, 512, %s225_s18, [#allocation18], %s2934_s8, %s2934_s8, %s2935_s9  }
  0x2e   : > { %s2936_s15 = smov [#allocation22]   ;;  %s2937_s22 = smov [#allocation23]  }
  0x2f   : > { %s250_s19 = sshll.u32 %s2936_s15, 4  ;;  %s263_s23 = sshll.u32 %s2937_s22, 4  ;;  %s251_s19 = int_to_ptr.vmem [resolvable:$true] %s250_s19  ;;  %s264_s23 = int_to_ptr.vmem [resolvable:$true] %s263_s23 }
  0x30   : > { %s2807_s20 = scalar_lea.vmem %s251_s19, 512  ;;  %p2815_p1 = scmp.lt.s32.totalorder %s251_s19, %s251_s19 }
  0x31   : > { %p2808_p8 = scmp.ne.s32.totalorder %s251_s19, %s2807_s20  ;;  %p2816_p2 = scmp.lt.s32.totalorder %s2807_s20, %s2807_s20 }
  0x33   : > { %p2810_p11 = pnand %p2808_p8, %p2746_p13  ;;  %p2817_p3 = por %p2816_p2, %p2815_p1 }
  0x35   : > { %p2811_p0 = pneg %p2810_p11 }
  0x37   : > { %p2818_p4 = pnand %p2817_p3, %p2811_p0 }
  0x39   : > { %2821 = shalt.err (!%p2818_p4)
}
  0x3a   : > { %2552 = dma.hbm_to_vmem [thread:$0]  (!%p3042_p12), %s3746_s5, 512, %s251_s19, [#allocation21], %s2934_s8, %s2934_s8, %s2935_s9  }
  0x3b   : > { %s2833_s14 = scalar_lea.vmem %s264_s23, 512  ;;  %p2841_p8 = scmp.lt.s32.totalorder %s264_s23, %s264_s23 }
  0x3c   : > { %p2834_p7 = scmp.ne.s32.totalorder %s264_s23, %s2833_s14  ;;  %p2842_p11 = scmp.lt.s32.totalorder %s2833_s14, %s2833_s14 }
  0x3e   : > { %p2836_p9 = pnand %p2834_p7, %p2746_p13  ;;  %p2843_p5 = por %p2842_p11, %p2841_p8 }
  0x40   : > { %p2837_p6 = pneg %p2836_p9 }
  0x42   : > { %p2844_p10 = pnand %p2843_p5, %p2837_p6 }
  0x44   : > { %2847 = shalt.err (!%p2844_p10)
}
  0x45   : > { %s3757_s20 = smov 64   ;;  %p3758_p0 = scmp.ne.s32.totalorder %s3755_s13, 0 }
  0x46   : > { %2555 = dma.hbm_to_vmem [thread:$0]  (!%p3042_p12), %s3747_s6, 512, %s264_s23, [#allocation24], %s3757_s20, %s3757_s20, %s2933_s21  }
  0x47   : > { %287 = sbr.rel (%p3758_p0) target bundleno = 1169 (0x491), region = 48  ;;  %p3759_p13 = scmp.eq.s32.totalorder (!%p3758_p0), %s3006_s28, 0 }
  0x4c   : > { %2895 = dma.done.wait (%p3759_p13), [#allocation18], 512   ;;  %p3760_p9 = pmov %p3759_p13 }
  0x4e   : > { %2897 = vsyncadd (%p3760_p9), [#allocation18], 4294966784  ;;  %p3761_p5 = pmov %p3760_p9 }
  0x50   : > { %2899 = dma.done.wait (%p3761_p5), [#allocation21], 1024   ;;  %p3762_p6 = pmov %p3761_p5 }
  0x51   : > { %p3763_p10 = pmov %p3761_p5 }
  0x52   : > { %2901 = vsyncadd (%p3762_p6), [#allocation21], 4294966272 }
  0x53   : > { %2903 = dma.done.wait (%p3763_p10), [#allocation24], 512   ;;  %p3764_p12 = pmov %p3761_p5 }
  0x54   : > { %s328_s13 = sand.u32 1, %s2916_s25   ;;  %p331_p1 = scmp.lt.s32.totalorder %s3006_s28, 1  ;;  %v2938_v0 = vmov 0.0   ;;  %vm2939_vm0 = vmmov 0   ;;  %v3113_v1 = vld [vmem:[#allocation17] sm:$0xff]  ;;  %v3115_v2 = vld [vmem:[#allocation17 + $0x8] sm:$0xff] }
  0x55   : > { %2905 = vsyncadd (%p3764_p12), [#allocation24], 4294966784  ;;  %s3104_s16 = sshll.u32 %s328_s13, 4  ;;  %2481 = vmatprep.subr.bf16.mxu0 %v2938_v0  ;;  %2485 = vmatprep.mubr.msk.bf16.mxu0 %vm2939_vm0, %v2938_v0  ;;  %v3117_v3 = vld [vmem:[#allocation22] sm:$0xff]  ;;  %v3122_v4 = vld [vmem:[#allocation22 + $0x8] sm:$0xff]  ;;  %vm356_vm1 = vcmask 261120  }
  0x56   : > { %2489 = vmatprep.subr.bf16.mxu1 %v2938_v0  ;;  %2497 = vmatprep.mubr.msk.bf16.mxu1 %vm2939_vm0, %v2938_v0  ;;  %s332_s21 = scalar_select %p331_p1, %s3006_s28, 1  ;;  %v2623_v5 = vld [vmem:[%s3742_s1 + $0x8] sm:$0xff]   ;;  %v2624_v6 = vld [vmem:[%s3742_s1] sm:$0xff]   ;;  %vm409_vm2 = vcmask 523264   ;;  %v2625_v10 = vld [vmem:[#allocation20 + $0x18] sm:$0xff]  }
  0x57   : > { %2482 = vmatpush3.bf16.msra.mxu0 %v2623_v5  ;;  %823 = vst.msk [vmem:[#allocation13 + $0x70] sm:$0xff] %vm409_vm2, %v2938_v0  ;;  %824 = vst.msk [vmem:[#allocation13 + $0x78] sm:$0xff] %vm409_vm2, %v2938_v0  ;;  %v2626_v11 = vld [vmem:[#allocation23 + $0x18] sm:$0xff]   ;;  %2490 = vmatpush3.bf16.msra.mxu1 %v2625_v10  ;;  %v2627_v12 = vld [vmem:[#allocation20 + $0x10] sm:$0xff]   ;;  %s2940_s20 = smov 64   ;;  %s3216_s17 = scalar_lea.vmem [#allocation25], %s3104_s16 }
  0x58   : > { %s2461_s8 = sshll.u32 %s332_s21, 4  ;;  %2483 = vmatprep.subr.bf16.mxu0 %v2938_v0  ;;  %825 = vst.msk [vmem:[#allocation16] sm:$0xff] %vm409_vm2, %v2938_v0  ;;  %826 = vst.msk [vmem:[#allocation16 + $0x8] sm:$0xff] %vm409_vm2, %v2938_v0  ;;  %v2628_v13 = vld [vmem:[#allocation23 + $0x10] sm:$0xff]   ;;  %2491 = vmatprep.subr.bf16.mxu1 %v2938_v0  ;;  %v2629_v14 = vld [vmem:[#allocation20 + $0x8] sm:$0xff]   ;;  %s3218_s15 = smov 0  }
  0x59   : > { %s335_s22 = scalar_lea.vmem %s3741_s0, %s2461_s8  ;;  %412 = vst.msk [vmem:[#allocation2] sm:$0xff] %vm409_vm2, %v2938_v0  ;;  %413 = vst.msk [vmem:[#allocation2 + $0x18] sm:$0xff] %vm409_vm2, %v2938_v0  ;;  %v2630_v15 = vld [vmem:[#allocation23 + $0x8] sm:$0xff]   ;;  %v2631_v16 = vld [vmem:[#allocation20] sm:$0xff]  }
  0x5a   : > { %v337_v7 = vld [vmem:[%s335_s22] sm:$0xff]  ;;  %v338_v8 = vld [vmem:[%s335_s22 + $0x8] sm:$0xff]  ;;  %v2419_v22 = vld [vmem:[#allocation17 + $0x10] ss:$0 sm:$0xff] }
  0x5b   : > { %v339_v9 = vpack.c.bf16 %v338_v8, %v337_v7  ;;  %2484 = vmatpush3.bf16.msra.mxu0 %v2624_v6  ;;  %2492 = vmatpush3.bf16.msra.mxu1 %v2627_v12  ;;  %v2632_v17 = vld [vmem:[#allocation23] sm:$0xff]   ;;  %v2420_v23 = vld [vmem:[#allocation17 + $0x18] ss:$0 sm:$0xff]  ;;  %v2423_v25 = vld [vmem:[#allocation17 + $0x11] ss:$0 sm:$0xff] }
  0x5c   : > { %2501 = vmatprep.subr.bf16.mxu0 %v2938_v0  ;;  %2493 = vmatprep.subr.bf16.mxu1 %v2938_v0  ;;  %v2425_v28 = vld [vmem:[#allocation17 + $0x12] ss:$0 sm:$0xff]  ;;  %v2427_v32 = vld [vmem:[#allocation17 + $0x13] ss:$0 sm:$0xff]  ;;  %v2421_v33 = vld [vmem:[#allocation22 + $0x10] ss:$0 sm:$0xff] }
  0x5d   : > { %v2424_v34 = vld [vmem:[#allocation22 + $0x11] ss:$0 sm:$0xff]  ;;  %v2422_v41 = vld [vmem:[#allocation22 + $0x18] ss:$0 sm:$0xff]  ;;  %v2426_v53 = vld [vmem:[#allocation22 + $0x12] ss:$0 sm:$0xff] }
  0x5e   : > { %2486 = vmatmul.mubr.msk.bf16.vlgmr.msra.gmra.mxu0 %vm356_vm1, %v339_v9  ;;  %v2428_v5 = vld [vmem:[#allocation22 + $0x13] ss:$0 sm:$0xff] }
  0x5f   : > { %2509 = vmatprep.mubr.msk.bf16.mxu0 %vm2939_vm0, %v2938_v0  ;;  %2502 = vmatpush3.bf16.msra.mxu0 %v2626_v11 }
  0x60   : > { %2503 = vmatprep.subr.bf16.mxu0 %v2938_v0  ;;  %2494 = vmatpush3.bf16.msra.mxu1 %v2629_v14 }
  0x61   : > { %2495 = vmatprep.subr.bf16.mxu1 %v2938_v0 }
  0x63   : > { %2504 = vmatpush3.bf16.msra.mxu0 %v2628_v13 }
  0x64   : > { %2505 = vmatprep.subr.bf16.mxu0 %v2938_v0  ;;  %2496 = vmatpush3.bf16.msra.mxu1 %v2631_v16 }
  0x67   : > { %2506 = vmatpush3.bf16.msra.mxu0 %v2630_v15 }
  0x68   : > { %2507 = vmatprep.subr.bf16.mxu0 %v2938_v0 }
  0x6b   : > { %2508 = vmatpush3.bf16.msra.mxu0 %v2632_v17 }
 0x11e   : > { %v394_v18 = vpop.f32.mrf.mxu0 }
 0x11f   : > { %414 = vst.msk [vmem:[#allocation2 + $0x8] sm:$0xff] %vm409_vm2, %v394_v18  ;;  %403 = vrot.lane.b32.xlu0 %v394_v18, %s2940_s20 }
 0x120   : > { %v2487_v19 = vpop.f32.mrf.mxu0 }
 0x122   : > { %v397_v20 = vpop.f32.mrf.mxu0 }
 0x123   : > { %415 = vst.msk [vmem:[#allocation2 + $0x10] sm:$0xff] %vm409_vm2, %v397_v20  ;;  %405 = vrot.lane.b32.xlu0 %v397_v20, %s2940_s20 }
 0x124   : > { %v2488_v21 = vpop.f32.mrf.mxu0 }
 0x126   : > { %v419_v24 = vld [vmem:[#allocation2 + $0x5] sm:$0xff] }
 0x127   : > { %v449_v26 = vld [vmem:[#allocation2 + $0x6] sm:$0xff]  ;;  %v425_v27 = vmul.f32 %v2419_v22, %v419_v24 }
 0x128   : > { %v471_v29 = vld [vmem:[#allocation2 + $0x7] sm:$0xff]  ;;  %v455_v31 = vmul.f32 %v2423_v25, %v449_v26 }
 0x129   : > { %v431_v30 = vadd.f32 %v2420_v23, %v425_v27  ;;  %v493_v37 = vld [vmem:[#allocation2 + $0x8] sm:$0xff]  ;;  %v477_v40 = vmul.f32 %v2425_v28, %v471_v29 }
 0x12a   : > { %v420_v35 = vld [vmem:[#allocation2 + $0xd] sm:$0xff]  ;;  %v499_v52 = vmul.f32 %v2427_v32, %v493_v37  ;;  %v508_v13 = vmul.f32 %v2428_v5, %v493_v37  ;;  %v2434_v37 = vld [vmem:[#allocation22 + $0x1a] ss:$0 sm:$0xff] }
 0x12b   : > { %v450_v36 = vld [vmem:[#allocation2 + $0xe] sm:$0xff]  ;;  %v426_v38 = vmul.f32 %v2419_v22, %v420_v35  ;;  %v457_v39 = vadd.f32 %v455_v31, %v431_v30 }
 0x12c   : > { %v434_v42 = vld [vmem:[#allocation2 + $0xb] sm:$0xff]  ;;  %v435_v43 = vld [vmem:[#allocation2 + $0x13] sm:$0xff]  ;;  %v456_v50 = vmul.f32 %v2423_v25, %v450_v36 }
 0x12d   : > { %v472_v44 = vld [vmem:[#allocation2 + $0xf] sm:$0xff]  ;;  %v440_v45 = vmul.f32 %v2421_v33, %v434_v42  ;;  %v441_v46 = vmul.f32 %v2421_v33, %v435_v43  ;;  %v432_v49 = vadd.f32 %v2420_v23, %v426_v38  ;;  %v479_v51 = vadd.f32 %v477_v40, %v457_v39  ;;  %v2433_v36 = vld [vmem:[#allocation17 + $0x1a] ss:$0 sm:$0xff] }
 0x12e   : > { %v460_v47 = vld [vmem:[#allocation2 + $0xa] sm:$0xff]  ;;  %v461_v48 = vld [vmem:[#allocation2 + $0x12] sm:$0xff]  ;;  %v478_v62 = vmul.f32 %v2425_v28, %v472_v44 }
 0x12f   : > { %v482_v54 = vld [vmem:[#allocation2 + $0x9] sm:$0xff]  ;;  %v483_v55 = vld [vmem:[#allocation2 + $0x11] sm:$0xff]  ;;  %v446_v57 = vadd.f32 %v2422_v41, %v440_v45  ;;  %v447_v58 = vadd.f32 %v2422_v41, %v441_v46  ;;  %v466_v59 = vmul.f32 %v2424_v34, %v460_v47  ;;  %v467_v60 = vmul.f32 %v2424_v34, %v461_v48 }
 0x130   : > { %v494_v56 = vld [vmem:[#allocation2 + $0x10] sm:$0xff]  ;;  %v458_v61 = vadd.f32 %v456_v50, %v432_v49  ;;  %v501_v63 = vadd.f32 %v499_v52, %v479_v51  ;;  %v488_v8 = vmul.f32 %v2426_v53, %v482_v54  ;;  %v489_v9 = vmul.f32 %v2426_v53, %v483_v55  ;;  %v2440_v51 = vld [vmem:[#allocation17 + $0x19] ss:$0 sm:$0xff] }
 0x131   : > { %v468_v6 = vadd.f32 %v466_v59, %v446_v57  ;;  %v469_v7 = vadd.f32 %v467_v60, %v447_v58  ;;  %v500_v11 = vmul.f32 %v2427_v32, %v494_v56  ;;  %v509_v14 = vmul.f32 %v2428_v5, %v494_v56  ;;  %v2446_v53 = vld [vmem:[#allocation22 + $0x19] ss:$0 sm:$0xff] }
 0x132   : > { %v480_v10 = vadd.f32 %v478_v62, %v458_v61  ;;  %v2429_v12 = vmul.f32 -1.442695, %v501_v63 }
 0x133   : > { %v490_v15 = vadd.f32 %v488_v8, %v468_v6  ;;  %v491_v16 = vadd.f32 %v489_v9, %v469_v7 }
 0x134   : > { %v502_v17 = vadd.f32 %v500_v11, %v480_v10  ;;  %2633 = vpow2.f32 %v2429_v12 }
 0x135   : > { %v510_v18 = vadd.f32 %v508_v13, %v490_v15  ;;  %v511_v19 = vadd.f32 %v509_v14, %v491_v16 }
 0x136   : > { %v2430_v20 = vmul.f32 -1.442695, %v502_v17 }
 0x137   : > { %v2431_v21 = vmul.f32 -1.442695, %v510_v18  ;;  %v2432_v22 = vmul.f32 -1.442695, %v511_v19 }
 0x138   : > { %2635 = vpow2.f32 %v2430_v20 }
 0x139   : > { %2637 = vpow2.f32 %v2431_v21 }
 0x13a   : > { %2639 = vpow2.f32 %v2432_v22 }
 0x141   : > { %v2634_v23 = vpop.eup %2633 }
 0x142   : > { %v518_v24 = vadd.f32 1.0, %v2634_v23 }
 0x144   : > { %2641 = vrcp.f32 %v518_v24 }
 0x145   : > { %v2636_v25 = vpop.eup %2635 }
 0x146   : > { %v2638_v26 = vpop.eup %2637  ;;  %v519_v27 = vadd.f32 1.0, %v2636_v25 }
 0x147   : > { %v2640_v28 = vpop.eup %2639  ;;  %v532_v29 = vadd.f32 1.0, %v2638_v26 }
 0x148   : > { %2643 = vrcp.f32 %v519_v27  ;;  %v533_v30 = vadd.f32 1.0, %v2640_v28 }
 0x149   : > { %2645 = vrcp.f32 %v532_v29 }
 0x14a   : > { %2647 = vrcp.f32 %v533_v30 }
 0x151   : > { %v2642_v31 = vpop.eup %2641 }
 0x152   : > { %v3157_v33 = vmul.f32 %v2642_v31, %v501_v63 }
 0x154   : > { %v545_v43 = vmul.f32 %v2433_v36, %v3157_v33 }
 0x155   : > { %v2644_v32 = vpop.eup %2643 }
 0x156   : > { %v2646_v34 = vpop.eup %2645  ;;  %v3159_v35 = vmul.f32 %v2644_v32, %v502_v17 }
 0x157   : > { %v2648_v38 = vpop.eup %2647  ;;  %v3161_v39 = vmul.f32 %v2646_v34, %v510_v18 }
 0x158   : > { %v546_v40 = vmul.f32 %v2433_v36, %v3159_v35  ;;  %v558_v41 = vpack.c.bf16 %v3159_v35, %v3157_v33  ;;  %v3166_v42 = vmul.f32 %v2648_v38, %v511_v19 }
 0x159   : > { %v552_v44 = vmul.f32 %v2434_v37, %v3161_v39 }
 0x15a   : > { %2498 = vmatmul.mubr.msk.bf16.vlgmr.msra.gmra.mxu1 %vm409_vm2, %v558_v41  ;;  %v553_v45 = vmul.f32 %v2434_v37, %v3166_v42  ;;  %v688_v46 = vpack.c.bf16 %v3166_v42, %v3161_v39 }
 0x15b   : > { %v554_v47 = vadd.f32 %v552_v44, %v545_v43 }
 0x15c   : > { %v555_v48 = vadd.f32 %v553_v45, %v546_v40  ;;  %2510 = vmatmul.mubr.msk.bf16.vlgmr.msra.gmra.mxu0 %vm409_vm2, %v688_v46 }
 0x15d   : > { %556 = vst.msk [vmem:[#allocation4] sm:$0xff] %vm409_vm2, %v554_v47 }
 0x15e   : > { %557 = vst.msk [vmem:[#allocation4 + $0x8] sm:$0xff] %vm409_vm2, %v555_v48 }
 0x191   : > { %v404_v49 = vpop.permute.xlu0 %403 }
 0x192   : > { %410 = vst.msk [vmem:[#allocation3] sm:$0xff] %vm409_vm2, %v404_v49 }
 0x195   : > { %v406_v50 = vpop.permute.xlu0 %405 }
 0x196   : > { %411 = vst.msk [vmem:[#allocation3 + $0x8] sm:$0xff] %vm409_vm2, %v406_v50 }
 0x21a   : > { %v628_v52 = vpop.f32.mrf.mxu1 }
 0x21b   : > { %v3179_v54 = vadd.f32 %v2440_v51, %v628_v52  ;;  %680 = vrot.lane.b32.xlu1 %v628_v52, %s2940_s20 }
 0x21c   : > { %v758_v55 = vpop.f32.mrf.mxu0  ;;  %v2499_v56 = vpop.f32.mrf.mxu1 }
 0x21d   : > { %v644_v57 = vand.u32 2147483647, %v3179_v54  ;;  %v3183_v58 = vadd.f32 %v2446_v53, %v758_v55  ;;  %810 = vrot.lane.b32.xlu0 %v758_v55, %s2940_s20  ;;  %v642_v43 = vmax.f32 %v3179_v54, 0.0 }
 0x21e   : > { %v2511_v59 = vpop.f32.mrf.mxu0  ;;  %v631_v60 = vpop.f32.mrf.mxu1 }
 0x21f   : > { %v646_v61 = vsub.f32 0.0, %v644_v57  ;;  %v774_v62 = vand.u32 2147483647, %v3183_v58  ;;  %v3187_v63 = vadd.f32 %v2440_v51, %v631_v60  ;;  %682 = vrot.lane.b32.xlu1 %v631_v60, %s2940_s20  ;;  %v772_v50 = vmax.f32 %v3183_v58, 0.0 }
 0x220   : > { %v761_v5 = vpop.f32.mrf.mxu0  ;;  %v2500_v6 = vpop.f32.mrf.mxu1 }
 0x221   : > { %v648_v7 = vmul.f32 1.442695, %v646_v61  ;;  %v776_v8 = vsub.f32 0.0, %v774_v62  ;;  %v645_v9 = vand.u32 2147483647, %v3187_v63  ;;  %v3191_v10 = vadd.f32 %v2446_v53, %v761_v5 }
 0x222   : > { %v2512_v11 = vpop.f32.mrf.mxu0  ;;  %v643_v59 = vmax.f32 %v3187_v63, 0.0 }
 0x223   : > { %2649 = vpow2.f32 %v648_v7  ;;  %v778_v12 = vmul.f32 1.442695, %v776_v8  ;;  %v647_v13 = vsub.f32 0.0, %v645_v9  ;;  %812 = vrot.lane.b32.xlu1 %v761_v5, %s2940_s20  ;;  %v775_v14 = vand.u32 2147483647, %v3191_v10 }
 0x224   : > { %v773_v7 = vmax.f32 %v3191_v10, 0.0 }
 0x225   : > { %2651 = vpow2.f32 %v778_v12  ;;  %v650_v15 = vmul.f32 1.442695, %v647_v13  ;;  %v777_v16 = vsub.f32 0.0, %v775_v14 }
 0x227   : > { %2653 = vpow2.f32 %v650_v15  ;;  %v780_v17 = vmul.f32 1.442695, %v777_v16 }
 0x229   : > { %2655 = vpow2.f32 %v780_v17 }
 0x230   : > { %v2650_v18 = vpop.eup %2649 }
 0x231   : > { %v652_v19 = vadd.f32 1.0, %v2650_v18  ;;  %v655_v26 = vmul.f32 -0.5, %v2650_v18  ;;  %v658_v30 = vand.u32 2147483647, %v2650_v18 }
 0x232   : > { %v2652_v20 = vpop.eup %2651 }
 0x233   : > { %2657 = vlog2.f32 %v652_v19  ;;  %v782_v21 = vadd.f32 1.0, %v2652_v20  ;;  %v785_v27 = vmul.f32 -0.5, %v2652_v20  ;;  %v656_v28 = vadd.f32 1.0, %v655_v26 }
 0x234   : > { %v2654_v22 = vpop.eup %2653  ;;  %v788_v34 = vand.u32 2147483647, %v2652_v20  ;;  %vm659_vm3 = vcmp.lt.f32.partialorder %v658_v30, 0.0004427343 }
 0x235   : > { %2659 = vlog2.f32 %v782_v21  ;;  %v661_v23 = vadd.f32 1.0, %v2654_v22  ;;  %v664_v29 = vmul.f32 -0.5, %v2654_v22  ;;  %v786_v31 = vadd.f32 1.0, %v785_v27 }
 0x236   : > { %v2656_v24 = vpop.eup %2655  ;;  %v657_v38 = vmul.f32 %v2650_v18, %v656_v28  ;;  %v667_v44 = vand.u32 2147483647, %v2654_v22  ;;  %vm789_vm4 = vcmp.lt.f32.partialorder %v788_v34, 0.0004427343 }
 0x237   : > { %2661 = vlog2.f32 %v661_v23  ;;  %v791_v25 = vadd.f32 1.0, %v2656_v24  ;;  %v794_v36 = vmul.f32 -0.5, %v2656_v24  ;;  %v665_v40 = vadd.f32 1.0, %v664_v29 }
 0x238   : > { %v787_v47 = vmul.f32 %v2652_v20, %v786_v31  ;;  %v797_v56 = vand.u32 2147483647, %v2656_v24  ;;  %vm668_vm5 = vcmp.lt.f32.partialorder %v667_v44, 0.0004427343 }
 0x239   : > { %2663 = vlog2.f32 %v791_v25  ;;  %v795_v51 = vadd.f32 1.0, %v794_v36  ;;  %v666_v55 = vmul.f32 %v2654_v22, %v665_v40 }
 0x23a   : > { %vm798_vm6 = vcmp.lt.f32.partialorder %v797_v56, 0.0004427343 }
 0x23b   : > { %v796_v6 = vmul.f32 %v2656_v24, %v795_v51 }
 0x240   : > { %v2658_v32 = vpop.eup %2657 }
 0x241   : > { %v654_v37 = vmul.f32 0.6931472, %v2658_v32 }
 0x242   : > { %v2660_v41 = vpop.eup %2659 }
 0x243   : > { %v660_v45 = vsel %vm659_vm3, %v657_v38, %v654_v37  ;;  %v784_v46 = vmul.f32 0.6931472, %v2660_v41 }
 0x244   : > { %v2662_v48 = vpop.eup %2661  ;;  %v670_v49 = vadd.f32 %v660_v45, %v642_v43 }
 0x245   : > { %v790_v52 = vsel %vm789_vm4, %v787_v47, %v784_v46  ;;  %v663_v53 = vmul.f32 0.6931472, %v2662_v48 }
 0x246   : > { %672 = vst.msk [vmem:[#allocation5] sm:$0xff] %vm409_vm2, %v670_v49  ;;  %v674_v57 = vmul.f32 %v670_v49, %v3157_v33  ;;  %v800_v54 = vadd.f32 %v790_v52, %v772_v50  ;;  %v2664_v60 = vpop.eup %2663 }
 0x247   : > { %v669_v61 = vsel %vm668_vm5, %v666_v55, %v663_v53  ;;  %v793_v5 = vmul.f32 0.6931472, %v2664_v60 }
 0x248   : > { %676 = vst.msk [vmem:[#allocation6] sm:$0xff] %vm409_vm2, %v674_v57  ;;  %802 = vst.msk [vmem:[#allocation8] sm:$0xff] %vm409_vm2, %v800_v54  ;;  %v804_v58 = vmul.f32 %v800_v54, %v3161_v39  ;;  %v671_v62 = vadd.f32 %v669_v61, %v643_v59 }
 0x249   : > { %v799_v63 = vsel %vm798_vm6, %v796_v6, %v793_v5 }
 0x24a   : > { %806 = vst.msk [vmem:[#allocation9] sm:$0xff] %vm409_vm2, %v804_v58  ;;  %673 = vst.msk [vmem:[#allocation5 + $0x8] sm:$0xff] %vm409_vm2, %v671_v62  ;;  %v675_v33 = vmul.f32 %v671_v62, %v3159_v35  ;;  %v801_v8 = vadd.f32 %v799_v63, %v773_v7 }
 0x24c   : > { %677 = vst.msk [vmem:[#allocation6 + $0x8] sm:$0xff] %vm409_vm2, %v675_v33  ;;  %803 = vst.msk [vmem:[#allocation8 + $0x8] sm:$0xff] %vm409_vm2, %v801_v8  ;;  %v805_v39 = vmul.f32 %v801_v8, %v3166_v42 }
 0x24e   : > { %807 = vst.msk [vmem:[#allocation9 + $0x8] sm:$0xff] %vm409_vm2, %v805_v39 }
 0x28d   : > { %v681_v9 = vpop.permute.xlu1 %680 }
 0x28e   : > { %686 = vst.msk [vmem:[#allocation7] sm:$0xff] %vm356_vm1, %v681_v9 }
 0x28f   : > { %v811_v10 = vpop.permute.xlu0 %810 }
 0x290   : > { %816 = vst.msk [vmem:[#allocation10] sm:$0xff] %vm356_vm1, %v811_v10 }
 0x291   : > { %v683_v11 = vpop.permute.xlu1 %682 }
 0x292   : > { %687 = vst.msk [vmem:[#allocation7 + $0x8] sm:$0xff] %vm356_vm1, %v683_v11 }
 0x295   : > { %v813_v35 = vpop.permute.xlu1 %812 }
 0x296   : > { %817 = vst.msk [vmem:[#allocation10 + $0x8] sm:$0xff] %vm356_vm1, %v813_v35 }
 0x297 LB: >> { %v847_v42 = vlaneseq  ;;  %v2941_v12 = vmov 1966171168   ;;  %s3224_s21 = sshll.u32 %s2928_s15, 3  ;;  %s834_s16 = ssub.s32 1, %s2928_s15  ;;  %vm2127_vm7 = vcmask 1041409   ;;  %vm2129_vm8 = vcmask 1042434   ;;  %s2928_s15 = sphi %s3218_s15, %s832_s15  }
 0x298   : >> { %v845_v13 = vunpack.c.l.s4 %v2941_v12  ;;  %s840_s8 = scalar_lea.vmem [#allocation7], %s3224_s21  ;;  %s836_s9 = scalar_lea.vmem [#allocation5], %s3224_s21  ;;  %vm2131_vm9 = vcmask 1043459   ;;  %vm2133_vm10 = vcmask 1044484   ;;  %vm2135_vm11 = vcmask 1045509  }
 0x299   : >> { %v3226_v14 = vshrl.u32 %v847_v42, 7  ;;  %v3230_v16 = vld [vmem:[%s840_s8] sm:$0xff]  ;;  %s3237_s19 = sshll.u32 %s834_s16, 3  ;;  %s838_s18 = scalar_lea.vmem [#allocation6], %s3224_s21  ;;  %vm2137_vm12 = vcmask 1046534   ;;  %vm2139_vm13 = vcmask 1047559  }
 0x29a   : >> { %v846_v15 = vunpack.c.0.s8 %v845_v13  ;;  %v837_v19 = vld [vmem:[%s836_s9] sm:$0xff]  ;;  %s1206_s22 = scalar_lea.vmem [#allocation8], %s3237_s19  ;;  %s1210_s23 = scalar_lea.vmem [#allocation10], %s3237_s19 }
 0x29b   : >> { %v3233_v17 = vsub.s32 0, %v3226_v14  ;;  %v1059_v18 = vsub.s32 1, %v3226_v14  ;;  %v843_v21 = vcombine.high %v837_v19, %v837_v19  ;;  %v1207_v24 = vld [vmem:[%s1206_s22] sm:$0xff]  ;;  %v1125_v27 = vsub.s32 7, %v3226_v14  ;;  %s1208_s29 = scalar_lea.vmem [#allocation9], %s3237_s19  ;;  %s2117_s14 = scalar_lea.vmem [#allocation4], %s3224_s21 }
 0x29c   : >> { %v3240_v20 = vsub.s32 %v846_v15, %v3226_v14  ;;  %v1070_v28 = vsub.s32 2, %v3226_v14  ;;  %v1213_v30 = vcombine.high %v1207_v24, %v1207_v24  ;;  %v1114_v38 = vsub.s32 6, %v3226_v14  ;;  %s2144_s20 = scalar_lea.vmem [#allocation4], %s3237_s19  ;;  %s832_s15 = sadd.s32 1, %s2928_s15  }
 0x29d   : >> { %v3245_v22 = vrot.slane %v3230_v16, %v1059_v18  ;;  %v3249_v23 = vrot.slane %v3230_v16, %v3233_v17  ;;  %v3259_v29 = vld [vmem:[%s1210_s23] sm:$0xff]  ;;  %v1081_v40 = vsub.s32 3, %v3226_v14  ;;  %v1103_v49 = vsub.s32 5, %v3226_v14  ;;  %p829_p2 = scmp.ge.s32.totalorder %s832_s15, 2  }
 0x29e   : >> { %v850_v25 = vrot.slane %v837_v19, %v3240_v20  ;;  %v857_v26 = vrot.slane %v843_v21, %v3240_v20  ;;  %v1220_v37 = vrot.slane %v1207_v24, %v3240_v20  ;;  %v3270_v44 = vrot.slane %v3259_v29, %v1125_v27  ;;  %2513 = vmatprep.subr.bf16.mxu1 (%p829_p2), %v2938_v0  ;;  %p3765_p4 = scmp.ne.s32.totalorder (%p829_p2), %s3753_s11, 0  ;;  %s2942_s8 = smov (%p829_p2), [#allocation25]  }
 0x29f   : >> { %1062 = vbcast.lane.b32.xlu1 %v3245_v22, 256  ;;  %1051 = vbcast.lane.b32.xlu0 %v3249_v23, 256  ;;  %v3275_v45 = vrot.slane %v3230_v16, %v1070_v28  ;;  %v1227_v48 = vrot.slane %v1213_v30, %v3240_v20  ;;  %v3289_v57 = vrot.slane %v3259_v29, %v1114_v38  ;;  %v1092_v54 = vsub.s32 4, %v3226_v14  ;;  %s2852_s9 = sshll.u32 (%p829_p2), %s2942_s8, 4  ;;  %s2853_s9 = int_to_ptr.vmem [resolvable:$false] %s2852_s9 }
 0x2a0   : >> { %v858_v31 = vcombine.high %v850_v25, %v850_v25  ;;  %v859_v32 = vcombine.high %v857_v26, %v857_v26  ;;  %v866_v34 = vrot.slane %v850_v25, %v3240_v20  ;;  %v873_v36 = vrot.slane %v857_v26, %v3240_v20  ;;  %2521 = vmatprep.mubr.msk.bf16.mxu1 (%p829_p2), %vm2939_vm0, %v2938_v0  ;;  %s2854_s15 = scalar_lea.vmem (%p829_p2), %s2853_s9, 512 }
 0x2a1   : >> { %v1228_v6 = vcombine.high %v1220_v37, %v1220_v37  ;;  %v1236_v7 = vrot.slane %v1220_v37, %v3240_v20  ;;  %v1229_v8 = vcombine.high %v1227_v48, %v1227_v48  ;;  %v3306_v39 = vrot.slane %v3230_v16, %v1081_v40 }
 0x2a2   : >> { %v880_v41 = vrot.slane %v858_v31, %v3240_v20  ;;  %v888_v43 = vcombine.high %v866_v34, %v866_v34  ;;  %v887_v46 = vrot.slane %v859_v32, %v3240_v20  ;;  %v895_v47 = vrot.slane %v866_v34, %v3233_v17 }
 0x2a3   : >> { %1066 = vbcast.lane.b32.xlu1 %v3245_v22, 264  ;;  %1055 = vbcast.lane.b32.xlu0 %v3249_v23, 264  ;;  %v889_v50 = vcombine.high %v873_v36, %v873_v36  ;;  %v911_v56 = vrot.slane %v873_v36, %v3233_v17  ;;  %v1250_v31 = vrot.slane %v1228_v6, %v3240_v20 }
 0x2a4   : >> { %v890_v51 = vcombine.high %v880_v41, %v880_v41  ;;  %v899_v52 = vrot.slane %v880_v41, %v3233_v17  ;;  %v903_v53 = vrot.slane %v888_v43, %v3233_v17  ;;  %v891_v55 = vcombine.high %v887_v46, %v887_v46 }
 0x2a5   : >> { %v932_v60 = vmul.f32 %v895_v47, %v3113_v1  ;;  %v933_v61 = vmul.f32 %v895_v47, %v3115_v2  ;;  %v915_v62 = vrot.slane %v887_v46, %v3233_v17  ;;  %v919_v33 = vrot.slane %v889_v50, %v3233_v17 }
 0x2a6   : >> { %v907_v59 = vrot.slane %v890_v51, %v3233_v17  ;;  %v934_v58 = vmul.f32 %v899_v52, %v3113_v1  ;;  %v935_v5 = vmul.f32 %v899_v52, %v3115_v2  ;;  %v936_v63 = vmul.f32 %v903_v53, %v3113_v1 }
 0x2a7   : >> { %1502 = vbcast.lane.b32.xlu1 %v3270_v44, 264  ;;  %1498 = vbcast.lane.b32.xlu0 %v3270_v44, 256  ;;  %v923_v9 = vrot.slane %v891_v55, %v3233_v17  ;;  %v937_v10 = vmul.f32 %v903_v53, %v3115_v2  ;;  %v940_v11 = vmul.f32 %v911_v56, %v3113_v1  ;;  %v948_v12 = vmul.f32 1.442695, %v932_v60 }
 0x2a8   : >> { %v941_v35 = vmul.f32 %v911_v56, %v3115_v2  ;;  %v938_v42 = vmul.f32 %v907_v59, %v3113_v1  ;;  %v950_v13 = vmul.f32 1.442695, %v933_v61  ;;  %v952_v15 = vmul.f32 1.442695, %v934_v58 }
 0x2a9   : >> { %v939_v19 = vmul.f32 %v907_v59, %v3115_v2  ;;  %v942_v21 = vmul.f32 %v915_v62, %v3113_v1  ;;  %v943_v24 = vmul.f32 %v915_v62, %v3115_v2  ;;  %v954_v25 = vmul.f32 1.442695, %v935_v5 }
 0x2aa   : >> { %v944_v26 = vmul.f32 %v919_v33, %v3113_v1  ;;  %2668 = vpow2.f32 %v948_v12  ;;  %v956_v30 = vmul.f32 1.442695, %v936_v63  ;;  %v945_v32 = vmul.f32 %v919_v33, %v3115_v2 }
 0x2ab   : >> { %v946_v34 = vmul.f32 %v923_v9, %v3113_v1  ;;  %2670 = vpow2.f32 %v950_v13  ;;  %v958_v36 = vmul.f32 1.442695, %v937_v10  ;;  %v947_v37 = vmul.f32 %v923_v9, %v3115_v2  ;;  %1077 = vbcast.lane.b32.xlu1 %v3275_v45, 264  ;;  %1073 = vbcast.lane.b32.xlu0 %v3275_v45, 256  ;;  %v2734_v1 = vld [vmem:[%s3743_s2 + $0x8] sm:$0xff] (%p829_p2)   ;;  %v2735_v2 = vld [vmem:[%s3743_s2] sm:$0xff] (%p829_p2)  }
 0x2ac   : >> { %2672 = vpow2.f32 %v952_v15  ;;  %v960_v41 = vmul.f32 1.442695, %v938_v42  ;;  %v1243_v43 = vrot.slane %v1227_v48, %v3240_v20  ;;  %v962_v46 = vmul.f32 1.442695, %v939_v19 }
 0x2ad   : >> { %2674 = vpow2.f32 %v954_v25  ;;  %v1257_v47 = vrot.slane %v1229_v8, %v3240_v20  ;;  %v1258_v50 = vcombine.high %v1236_v7, %v1236_v7  ;;  %v964_v51 = vmul.f32 1.442695, %v940_v11 }
 0x2ae   : >> { %2676 = vpow2.f32 %v956_v30  ;;  %v966_v52 = vmul.f32 1.442695, %v941_v35  ;;  %v1260_v53 = vcombine.high %v1250_v31, %v1250_v31  ;;  %v968_v55 = vmul.f32 1.442695, %v942_v21 }
 0x2af   : >> { %2678 = vpow2.f32 %v958_v36  ;;  %v970_v56 = vmul.f32 1.442695, %v943_v24  ;;  %v1265_v59 = vrot.slane %v1236_v7, %v3233_v17  ;;  %v972_v48 = vmul.f32 1.442695, %v944_v26  ;;  %1491 = vbcast.lane.b32.xlu1 %v3289_v57, 264  ;;  %1487 = vbcast.lane.b32.xlu0 %v3289_v57, 256 }
 0x2b0   : >> { %2680 = vpow2.f32 %v960_v41  ;;  %v1259_v60 = vcombine.high %v1243_v43, %v1243_v43  ;;  %v1269_v61 = vrot.slane %v1250_v31, %v3233_v17  ;;  %v974_v58 = vmul.f32 1.442695, %v945_v32 }
 0x2b1   : >> { %2682 = vpow2.f32 %v962_v46  ;;  %v1261_v62 = vcombine.high %v1257_v47, %v1257_v47  ;;  %v1273_v5 = vrot.slane %v1258_v50, %v3233_v17  ;;  %v976_v6 = vmul.f32 1.442695, %v946_v34 }
 0x2b2   : >> { %2684 = vpow2.f32 %v964_v51  ;;  %v978_v33 = vmul.f32 1.442695, %v947_v37  ;;  %v1277_v63 = vrot.slane %v1260_v53, %v3233_v17  ;;  %v1281_v7 = vrot.slane %v1243_v43, %v3233_v17 }
 0x2b3   : >> { %2686 = vpow2.f32 %v966_v52  ;;  %v1302_v8 = vmul.f32 %v1265_v59, %v3117_v3  ;;  %v1303_v9 = vmul.f32 %v1265_v59, %v3122_v4  ;;  %v1285_v10 = vrot.slane %v1257_v47, %v3233_v17  ;;  %1088 = vbcast.lane.b32.xlu1 %v3306_v39, 264  ;;  %1084 = vbcast.lane.b32.xlu0 %v3306_v39, 256 }
 0x2b4   : >> { %2688 = vpow2.f32 %v968_v55  ;;  %v1289_v11 = vrot.slane %v1259_v60, %v3233_v17  ;;  %v1304_v35 = vmul.f32 %v1269_v61, %v3117_v3  ;;  %v1293_v42 = vrot.slane %v1261_v62, %v3233_v17  ;;  %v839_v62 = vld [vmem:[%s838_s18] sm:$0xff]  ;;  %s2462_s18 = sshll.u32 (%p829_p2), %s3006_s28, 8  ;;  %s3701_s28 = scalar_lea.sflag (%p829_p2), [#allocation19], %s328_s13 }
 0x2b5   : >> { %2690 = vpow2.f32 %v970_v56  ;;  %v1305_v12 = vmul.f32 %v1269_v61, %v3122_v4  ;;  %v1306_v13 = vmul.f32 %v1273_v5, %v3117_v3  ;;  %v1307_v15 = vmul.f32 %v1273_v5, %v3122_v4  ;;  %v1209_v5 = vld [vmem:[%s1208_s29] sm:$0xff]  ;;  %s2277_s29 = sshll.u32 (%p829_p2), %s3216_s17, 4  ;;  %s3693_s21 = scalar_lea.hbm (%p829_p2), %s3748_s7, %s2462_s18  ;;  %s3695_s29 = int_to_ptr.vmem [resolvable:$true] %s2277_s29 }
 0x2b6   : >> { %2692 = vpow2.f32 %v972_v48  ;;  %v1308_v19 = vmul.f32 %v1277_v63, %v3117_v3  ;;  %v1309_v21 = vmul.f32 %v1277_v63, %v3122_v4  ;;  %v1310_v25 = vmul.f32 %v1281_v7, %v3117_v3  ;;  %s2848_s16 = scalar_lea.vmem (%p829_p2), %s3695_s29, 256  ;;  %p2855_p11 = scmp.lt.s32.totalorder (%p829_p2), %s3695_s29, %s2853_s9 }
 0x2b7   : >> { %v2669_v24 = vpop.eup %2668  ;;  %2694 = vpow2.f32 %v974_v58  ;;  %v1318_v26 = vmul.f32 1.442695, %v1302_v8  ;;  %v1320_v30 = vmul.f32 1.442695, %v1303_v9  ;;  %v1311_v32 = vmul.f32 %v1281_v7, %v3122_v4  ;;  %p2849_p3 = scmp.ne.s32.totalorder (%p829_p2), %s3695_s29, %s2848_s16  ;;  %p2856_p0 = scmp.lt.s32.totalorder (%p829_p2), %s2854_s15, %s2848_s16 }
 0x2b8   : >> { %v2671_v31 = vpop.eup %2670  ;;  %2696 = vpow2.f32 %v976_v6  ;;  %980 = vst.msk [vmem:[#allocation11] sm:$0xff] %vm409_vm2, %v2669_v24  ;;  %v1312_v34 = vmul.f32 %v1285_v10, %v3117_v3  ;;  %v1322_v36 = vmul.f32 1.442695, %v1304_v35  ;;  %v1313_v41 = vmul.f32 %v1285_v10, %v3122_v4 }
 0x2b9   : >> { %v2673_v37 = vpop.eup %2672  ;;  %2698 = vpow2.f32 %v978_v33  ;;  %981 = vst.msk [vmem:[#allocation11 + $0x8] sm:$0xff] %vm409_vm2, %v2671_v31  ;;  %v1314_v43 = vmul.f32 %v1289_v11, %v3117_v3  ;;  %v1324_v46 = vmul.f32 1.442695, %v1305_v12  ;;  %v1315_v50 = vmul.f32 %v1289_v11, %v3122_v4  ;;  %p2850_p7 = pnand (%p829_p2), %p2849_p3, %p3765_p4  ;;  %p2857_p13 = por (%p829_p2), %p2856_p0, %p2855_p11 }
 0x2ba   : >> { %v2675_v47 = vpop.eup %2674  ;;  %982 = vst.msk [vmem:[#allocation11 + $0x10] sm:$0xff] %vm409_vm2, %v2673_v37  ;;  %v1316_v51 = vmul.f32 %v1293_v42, %v3117_v3  ;;  %2700 = vpow2.f32 %v1318_v26  ;;  %v1326_v52 = vmul.f32 1.442695, %v1306_v13  ;;  %v1317_v55 = vmul.f32 %v1293_v42, %v3122_v4 }
 0x2bb   : >> { %v2677_v53 = vpop.eup %2676  ;;  %983 = vst.msk [vmem:[#allocation11 + $0x18] sm:$0xff] %vm409_vm2, %v2675_v47  ;;  %2702 = vpow2.f32 %v1320_v30  ;;  %v1328_v56 = vmul.f32 1.442695, %v1307_v15  ;;  %v1330_v59 = vmul.f32 1.442695, %v1308_v19  ;;  %v3361_v58 = vrot.slane %v3259_v29, %v1103_v49  ;;  %p2851_p8 = pneg (%p829_p2), %p2850_p7 }
 0x2bc   : >> { %v2679_v48 = vpop.eup %2678  ;;  %984 = vst.msk [vmem:[#allocation11 + $0x20] sm:$0xff] %vm409_vm2, %v2677_v53  ;;  %2704 = vpow2.f32 %v1322_v36  ;;  %v1332_v60 = vmul.f32 1.442695, %v1309_v21  ;;  %v1334_v61 = vmul.f32 1.442695, %v1310_v25  ;;  %v3372_v11 = vrot.slane %v3230_v16, %v1092_v54 }
 0x2bd   : >> { %v2681_v6 = vpop.eup %2680  ;;  %985 = vst.msk [vmem:[#allocation11 + $0x28] sm:$0xff] %vm409_vm2, %v2679_v48  ;;  %2706 = vpow2.f32 %v1324_v46  ;;  %v1336_v33 = vmul.f32 1.442695, %v1311_v32  ;;  %v1338_v63 = vmul.f32 1.442695, %v1312_v34  ;;  %1480 = vbcast.lane.b32.xlu1 %v3361_v58, 264  ;;  %v1004_v13 = vrot.slane %v839_v62, %v3240_v20  ;;  %p2858_p9 = pnand (%p829_p2), %p2857_p13, %p2851_p8 }
 0x2be   : >> { %v1340_v7 = vmul.f32 1.442695, %v1313_v41  ;;  %v2683_v8 = vpop.eup %2682  ;;  %986 = vst.msk [vmem:[#allocation11 + $0x30] sm:$0xff] %vm409_vm2, %v2681_v6  ;;  %2708 = vpow2.f32 %v1326_v52  ;;  %v1342_v9 = vmul.f32 1.442695, %v1314_v43  ;;  %1476 = vbcast.lane.b32.xlu0 %v3361_v58, 256  ;;  %v3380_v19 = vrot.slane %v3259_v29, %v1092_v54 }
 0x2bf   : >> { %v1344_v10 = vmul.f32 1.442695, %v1315_v50  ;;  %v2685_v35 = vpop.eup %2684  ;;  %987 = vst.msk [vmem:[#allocation11 + $0x38] sm:$0xff] %vm409_vm2, %v2683_v8  ;;  %2710 = vpow2.f32 %v1328_v56  ;;  %v1346_v42 = vmul.f32 1.442695, %v1316_v51  ;;  %v1367_v21 = vcombine.high %v1209_v5, %v1209_v5 }
 0x2c0   : >> { %v1348_v12 = vmul.f32 1.442695, %v1317_v55  ;;  %v2687_v15 = vpop.eup %2686  ;;  %988 = vst.msk [vmem:[#allocation11 + $0x40] sm:$0xff] %vm409_vm2, %v2685_v35  ;;  %2712 = vpow2.f32 %v1330_v59  ;;  %v997_v24 = vcombine.high %v839_v62, %v839_v62  ;;  %v3386_v26 = vrot.slane %v3230_v16, %v1103_v49 }
 0x2c1   : >> { %v2689_v25 = vpop.eup %2688  ;;  %989 = vst.msk [vmem:[#allocation11 + $0x48] sm:$0xff] %vm409_vm2, %v2687_v15  ;;  %2714 = vpow2.f32 %v1332_v60  ;;  %v1012_v30 = vcombine.high %v1004_v13, %v1004_v13  ;;  %v1020_v31 = vrot.slane %v1004_v13, %v3240_v20  ;;  %1099 = vbcast.lane.b32.xlu1 %v3372_v11, 264  ;;  %v1381_v54 = vrot.slane %v1367_v21, %v3240_v20 }
 0x2c2   : >> { %v2691_v32 = vpop.eup %2690  ;;  %990 = vst.msk [vmem:[#allocation11 + $0x50] sm:$0xff] %vm409_vm2, %v2689_v25  ;;  %2716 = vpow2.f32 %v1334_v61  ;;  %1095 = vbcast.lane.b32.xlu0 %v3372_v11, 256  ;;  %v1011_v34 = vrot.slane %v997_v24, %v3240_v20  ;;  %v1374_v36 = vrot.slane %v1209_v5, %v3240_v20 }
 0x2c3   : >> { %v2693_v37 = vpop.eup %2692  ;;  %991 = vst.msk [vmem:[#allocation11 + $0x58] sm:$0xff] %vm409_vm2, %v2691_v32  ;;  %2718 = vpow2.f32 %v1336_v33  ;;  %v1034_v49 = vrot.slane %v1012_v30, %v3240_v20  ;;  %v3398_v41 = vrot.slane %v1020_v31, %v3233_v17  ;;  %v1042_v43 = vcombine.high %v1020_v31, %v1020_v31 }
 0x2c4   : >> { %v2695_v46 = vpop.eup %2694  ;;  %992 = vst.msk [vmem:[#allocation11 + $0x60] sm:$0xff] %vm409_vm2, %v2693_v37  ;;  %2720 = vpow2.f32 %v1338_v63  ;;  %v1383_v47 = vcombine.high %v1381_v54, %v1381_v54  ;;  %v1397_v50 = vrot.slane %v1381_v54, %v3240_v20  ;;  %v1027_v51 = vrot.slane %v1011_v34, %v3240_v20 }
 0x2c5   : >> { %v2697_v52 = vpop.eup %2696  ;;  %993 = vst.msk [vmem:[#allocation11 + $0x68] sm:$0xff] %vm409_vm2, %v2695_v46  ;;  %2722 = vpow2.f32 %v1340_v7  ;;  %v3405_v53 = vrot.slane %v1034_v49, %v3233_v17  ;;  %v3408_v55 = vrot.slane %v1042_v43, %v3233_v17  ;;  %v1044_v56 = vcombine.high %v1034_v49, %v1034_v49  ;;  %1469 = vbcast.lane.b32.xlu1 %v3380_v19, 264 }
 0x2c6   : >> { %v2699_v59 = vpop.eup %2698  ;;  %994 = vst.msk [vmem:[#allocation11 + $0x70] sm:$0xff] %vm409_vm2, %v2697_v52  ;;  %2724 = vpow2.f32 %v1342_v9  ;;  %1465 = vbcast.lane.b32.xlu0 %v3380_v19, 256  ;;  %v1411_v48 = vrot.slane %v1383_v47, %v3240_v20  ;;  %v1413_v60 = vcombine.high %v1397_v50, %v1397_v50  ;;  %v3415_v61 = vrot.slane %v1027_v51, %v3233_v17 }
 0x2c7   : >> { %v2701_v62 = vpop.eup %2700  ;;  %995 = vst.msk [vmem:[#allocation11 + $0x78] sm:$0xff] %vm409_vm2, %v2699_v59  ;;  %2726 = vpow2.f32 %v1344_v10  ;;  %v3419_v5 = vrot.slane %v1044_v56, %v3233_v17  ;;  %v3422_v6 = vrot.slane %v1397_v50, %v3233_v17  ;;  %v1013_v33 = vcombine.high %v1011_v34, %v1011_v34 }
 0x2c8   : >> { %v2703_v63 = vpop.eup %2702  ;;  %2728 = vpow2.f32 %v1346_v42  ;;  %1350 = vst.msk [vmem:[#allocation14] sm:$0xff] %vm409_vm2, %v2701_v62  ;;  %v1415_v7 = vcombine.high %v1411_v48, %v1411_v48  ;;  %v3426_v8 = vrot.slane %v1413_v60, %v3233_v17  ;;  %v3429_v9 = vrot.slane %v1411_v48, %v3233_v17 }
 0x2c9   : >> { %v2705_v35 = vpop.eup %2704  ;;  %2730 = vpow2.f32 %v1348_v12  ;;  %1351 = vst.msk [vmem:[#allocation14 + $0x8] sm:$0xff] %vm409_vm2, %v2703_v63  ;;  %v1041_v10 = vrot.slane %v1013_v33, %v3240_v20  ;;  %v1382_v13 = vcombine.high %v1374_v36, %v1374_v36  ;;  %v1043_v15 = vcombine.high %v1027_v51, %v1027_v51  ;;  %1110 = vbcast.lane.b32.xlu1 %v3386_v26, 264 }
 0x2ca   : >> { %v2707_v21 = vpop.eup %2706  ;;  %1352 = vst.msk [vmem:[#allocation14 + $0x10] sm:$0xff] %vm409_vm2, %v2705_v35  ;;  %1106 = vbcast.lane.b32.xlu0 %v3386_v26, 256  ;;  %v3439_v42 = vrot.slane %v3259_v29, %v1081_v40  ;;  %v3442_v12 = vrot.slane %v1415_v7, %v3233_v17  ;;  %v1390_v24 = vrot.slane %v1374_v36, %v3240_v20 }
 0x2cb   : >> { %v2709_v25 = vpop.eup %2708  ;;  %1353 = vst.msk [vmem:[#allocation14 + $0x18] sm:$0xff] %vm409_vm2, %v2707_v21  ;;  %v3447_v30 = vrot.slane %v1041_v10, %v3233_v17  ;;  %v1404_v31 = vrot.slane %v1382_v13, %v3240_v20  ;;  %v3451_v32 = vrot.slane %v1043_v15, %v3233_v17  ;;  %v1045_v54 = vcombine.high %v1041_v10, %v1041_v10  ;;  %v1581_v10 = vld [vmem:[#allocation11 + $0x8] sm:$0xff] }
 0x2cc   : >> { %v2711_v34 = vpop.eup %2710  ;;  %1354 = vst.msk [vmem:[#allocation14 + $0x20] sm:$0xff] %vm409_vm2, %v2709_v25  ;;  %v1412_v40 = vcombine.high %v1390_v24, %v1390_v24  ;;  %v1115_v20 = vrot.slane %v3230_v16, %v1114_v38  ;;  %v1441_v38 = vrot.slane %v3259_v29, %v1070_v28  ;;  %v3482_v60 = vrot.slane %v1390_v24, %v3233_v17  ;;  %v1604_v24 = vld [vmem:[#allocation11 + $0x10] sm:$0xff]  ;;  %v1579_v25 = vld [vmem:[#allocation16 + $0x8] sm:$0xff] }
 0x2cd   : >> { %v2713_v37 = vpop.eup %2712  ;;  %1355 = vst.msk [vmem:[#allocation14 + $0x28] sm:$0xff] %vm409_vm2, %v2711_v34  ;;  %v1414_v36 = vcombine.high %v1404_v31, %v1404_v31  ;;  %v3456_v49 = vrot.slane %v1045_v54, %v3233_v17  ;;  %1458 = vbcast.lane.b32.xlu1 %v3439_v42, 264  ;;  %v3472_v51 = vrot.slane %v1404_v31, %v3233_v17  ;;  %v1578_v34 = vld [vmem:[#allocation16] sm:$0xff] }
 0x2ce   : >> { %v2715_v43 = vpop.eup %2714  ;;  %1356 = vst.msk [vmem:[#allocation14 + $0x30] sm:$0xff] %vm409_vm2, %v2713_v37  ;;  %1454 = vbcast.lane.b32.xlu0 %v3439_v42, 256  ;;  %v3465_v46 = vrot.slane %v1412_v40, %v3233_v17  ;;  %v1126_v28 = vrot.slane %v3230_v16, %v1125_v27  ;;  %v1430_v7 = vrot.slane %v3259_v29, %v1059_v18 }
 0x2cf   : >> { %v2717_v47 = vpop.eup %2716  ;;  %1357 = vst.msk [vmem:[#allocation14 + $0x38] sm:$0xff] %vm409_vm2, %v2715_v43  ;;  %v3469_v50 = vrot.slane %v1414_v36, %v3233_v17  ;;  %v1419_v35 = vrot.slane %v3259_v29, %v3233_v17 }
 0x2d0   : >> { %v2719_v52 = vpop.eup %2718  ;;  %1358 = vst.msk [vmem:[#allocation14 + $0x40] sm:$0xff] %vm409_vm2, %v2717_v47 }
 0x2d1   : >> { %v2721_v56 = vpop.eup %2720  ;;  %1359 = vst.msk [vmem:[#allocation14 + $0x48] sm:$0xff] %vm409_vm2, %v2719_v52  ;;  %1121 = vbcast.lane.b32.xlu1 %v1115_v20, 264 }
 0x2d2   : >> { %v2723_v59 = vpop.eup %2722  ;;  %1360 = vst.msk [vmem:[#allocation14 + $0x50] sm:$0xff] %vm409_vm2, %v2721_v56  ;;  %1117 = vbcast.lane.b32.xlu0 %v1115_v20, 256 }
 0x2d3   : >> { %v2725_v48 = vpop.eup %2724  ;;  %1361 = vst.msk [vmem:[#allocation14 + $0x58] sm:$0xff] %vm409_vm2, %v2723_v59 }
 0x2d4   : >> { %v2727_v62 = vpop.eup %2726  ;;  %1362 = vst.msk [vmem:[#allocation14 + $0x60] sm:$0xff] %vm409_vm2, %v2725_v48 }
 0x2d5   : >> { %v2729_v33 = vpop.eup %2728  ;;  %1363 = vst.msk [vmem:[#allocation14 + $0x68] sm:$0xff] %vm409_vm2, %v2727_v62  ;;  %1447 = vbcast.lane.b32.xlu1 %v1441_v38, 264 }
 0x2d6   : >> { %v2731_v63 = vpop.eup %2730  ;;  %1364 = vst.msk [vmem:[#allocation14 + $0x70] sm:$0xff] %vm409_vm2, %v2729_v33  ;;  %1443 = vbcast.lane.b32.xlu0 %v1441_v38, 256 }
 0x2d7   : >> { %1365 = vst.msk [vmem:[#allocation14 + $0x78] sm:$0xff] %vm409_vm2, %v2731_v63 }
 0x2d9   : >> { %1132 = vbcast.lane.b32.xlu1 %v1126_v28, 264 }
 0x2da   : >> { %1128 = vbcast.lane.b32.xlu0 %v1126_v28, 256 }
 0x2dd   : >> { %1436 = vbcast.lane.b32.xlu1 %v1430_v7, 264  ;;  %v1591_v40 = vld [vmem:[#allocation14 + $0x70] sm:$0xff] }
 0x2de   : >> { %1432 = vbcast.lane.b32.xlu0 %v1430_v7, 256  ;;  %v1592_v31 = vld [vmem:[#allocation14 + $0x78] sm:$0xff]  ;;  %v1593_v47 = vmul.f32 %v1591_v40, %v1578_v34 }
 0x2e1   : >> { %1425 = vbcast.lane.b32.xlu1 %v1419_v35, 264 }
 0x2e2   : >> { %1421 = vbcast.lane.b32.xlu0 %v1419_v35, 256 }
 0x2e5   : >> { %1803 = vbcast.lane.b32.xlu1 %v3249_v23, 280 }
 0x2e6   : >> { %1799 = vbcast.lane.b32.xlu0 %v3249_v23, 272  ;;  %v1580_v23 = vld [vmem:[#allocation11] sm:$0xff] }
 0x2e9   : >> { %1811 = vbcast.lane.b32.xlu1 %v3245_v22, 280 }
 0x2ea   : >> { %1807 = vbcast.lane.b32.xlu0 %v3245_v22, 272  ;;  %v1576_v22 = vld [vmem:[#allocation13 + $0x70] sm:$0xff] }
 0x2ed   : >> { %1819 = vbcast.lane.b32.xlu1 %v3275_v45, 280 }
 0x2ee   : >> { %1815 = vbcast.lane.b32.xlu0 %v3275_v45, 272 }
 0x2f1   : >> { %1827 = vbcast.lane.b32.xlu1 %v3306_v39, 280 }
 0x2f2   : >> { %1823 = vbcast.lane.b32.xlu0 %v3306_v39, 272 }
 0x2f5   : >> { %1835 = vbcast.lane.b32.xlu1 %v3372_v11, 280 }
 0x2f6   : >> { %1831 = vbcast.lane.b32.xlu0 %v3372_v11, 272  ;;  %v1582_v11 = vmul.f32 %v1580_v23, %v1576_v22 }
 0x2f9   : >> { %1843 = vbcast.lane.b32.xlu1 %v3386_v26, 280 }
 0x2fa   : >> { %1839 = vbcast.lane.b32.xlu0 %v3386_v26, 272  ;;  %v1577_v26 = vld [vmem:[#allocation13 + $0x78] sm:$0xff] }
 0x2fd   : >> { %1851 = vbcast.lane.b32.xlu1 %v1115_v20, 280 }
 0x2fe   : >> { %1847 = vbcast.lane.b32.xlu0 %v1115_v20, 272 }
 0x301   : >> { %1859 = vbcast.lane.b32.xlu1 %v1126_v28, 280 }
 0x302   : >> { %1855 = vbcast.lane.b32.xlu0 %v1126_v28, 272 }
 0x305   : >> { %1971 = vbcast.lane.b32.xlu1 %v1419_v35, 280 }
 0x306   : >> { %1967 = vbcast.lane.b32.xlu0 %v1419_v35, 272  ;;  %v1631_v35 = vld [vmem:[#allocation11 + $0x28] sm:$0xff] }
 0x309   : >> { %1979 = vbcast.lane.b32.xlu1 %v1430_v7, 280 }
 0x30a   : >> { %1975 = vbcast.lane.b32.xlu0 %v1430_v7, 272 }
 0x30d   : >> { %1987 = vbcast.lane.b32.xlu1 %v1441_v38, 280 }
 0x30e   : >> { %1983 = vbcast.lane.b32.xlu0 %v1441_v38, 272 }
 0x311   : >> { %v1063_v14 = vpop.permute.xlu1 %1062  ;;  %v1052_v16 = vpop.permute.xlu0 %1051  ;;  %1995 = vbcast.lane.b32.xlu1 %v3439_v42, 280 }
 0x312   : >> { %v1176_v17 = vmul.f32 %v3405_v53, %v1063_v14  ;;  %v1174_v18 = vmul.f32 %v3398_v41, %v1052_v16  ;;  %1991 = vbcast.lane.b32.xlu0 %v3439_v42, 272 }
 0x314   : >> { %1192 = vst.msk [vmem:[#allocation12 + $0x10] sm:$0xff] %vm409_vm2, %v1176_v17  ;;  %1190 = vst.msk [vmem:[#allocation12] sm:$0xff] %vm409_vm2, %v1174_v18 }
 0x315   : >> { %v1067_v27 = vpop.permute.xlu1 %1066  ;;  %v1056_v29 = vpop.permute.xlu0 %1055  ;;  %2003 = vbcast.lane.b32.xlu1 %v3380_v19, 280 }
 0x316   : >> { %v1177_v45 = vmul.f32 %v3405_v53, %v1067_v27  ;;  %v1175_v39 = vmul.f32 %v3398_v41, %v1056_v29  ;;  %1999 = vbcast.lane.b32.xlu0 %v3380_v19, 272  ;;  %v1583_v19 = vmul.f32 %v1581_v10, %v1577_v26  ;;  %v1617_v29 = vld [vmem:[#allocation14 + $0x60] sm:$0xff]  ;;  %v1618_v10 = vld [vmem:[#allocation14 + $0x68] sm:$0xff] }
 0x318   : >> { %1193 = vst.msk [vmem:[#allocation12 + $0x18] sm:$0xff] %vm409_vm2, %v1177_v45  ;;  %1191 = vst.msk [vmem:[#allocation12 + $0x8] sm:$0xff] %vm409_vm2, %v1175_v39 }
 0x319   : >> { %v1503_v13 = vpop.permute.xlu1 %1502  ;;  %v1499_v21 = vpop.permute.xlu0 %1498  ;;  %2011 = vbcast.lane.b32.xlu1 %v3361_v58, 280 }
 0x31a   : >> { %v1559_v15 = vmul.f32 %v3442_v12, %v1503_v13  ;;  %v1558_v53 = vmul.f32 %v3442_v12, %v1499_v21  ;;  %2007 = vbcast.lane.b32.xlu0 %v3361_v58, 272  ;;  %v1605_v12 = vld [vmem:[#allocation11 + $0x18] sm:$0xff]  ;;  %v1594_v58 = vmul.f32 %v1592_v31, %v1579_v25 }
 0x31b   : >> { %v1584_v42 = vld [vmem:[#allocation12] sm:$0xff]  ;;  %v1609_v37 = vld [vmem:[#allocation12 + $0x10] sm:$0xff] }
 0x31c   : >> { %v1586_v41 = vadd.f32 %v1584_v42, %v1582_v11  ;;  %1575 = vst.msk [vmem:[#allocation15 + $0x78] sm:$0xff] %vm409_vm2, %v1559_v15  ;;  %1574 = vst.msk [vmem:[#allocation15 + $0x70] sm:$0xff] %vm409_vm2, %v1558_v53  ;;  %v1656_v42 = vld [vmem:[#allocation11 + $0x30] sm:$0xff] }
 0x31d   : >> { %2019 = vbcast.lane.b32.xlu1 %v3289_v57, 280  ;;  %v1078_v52 = vpop.permute.xlu1 %1077  ;;  %v1074_v56 = vpop.permute.xlu0 %1073 }
 0x31e   : >> { %v1606_v54 = vmul.f32 %v1604_v24, %v1586_v41  ;;  %1588 = vst.msk [vmem:[#allocation13] sm:$0xff] %vm409_vm2, %v1586_v41  ;;  %2015 = vbcast.lane.b32.xlu0 %v3289_v57, 272  ;;  %v1179_v38 = vmul.f32 %v3408_v55, %v1078_v52  ;;  %v1178_v48 = vmul.f32 %v3408_v55, %v1074_v56  ;;  %v1657_v41 = vld [vmem:[#allocation11 + $0x38] sm:$0xff] }
 0x31f   : >> { %v1585_v36 = vld [vmem:[#allocation12 + $0x8] sm:$0xff]  ;;  %v1610_v62 = vld [vmem:[#allocation12 + $0x18] sm:$0xff] }
 0x320   : >> { %v1587_v43 = vadd.f32 %v1585_v36, %v1583_v19  ;;  %v1611_v20 = vadd.f32 %v1609_v37, %v1606_v54  ;;  %1195 = vst.msk [vmem:[#allocation12 + $0x28] sm:$0xff] %vm409_vm2, %v1179_v38  ;;  %1194 = vst.msk [vmem:[#allocation12 + $0x20] sm:$0xff] %vm409_vm2, %v1178_v48  ;;  %v1643_v38 = vld [vmem:[#allocation14 + $0x50] sm:$0xff] }
 0x321   : >> { %2027 = vbcast.lane.b32.xlu1 %v3270_v44, 280  ;;  %v1492_v14 = vpop.permute.xlu1 %1491  ;;  %v1488_v16 = vpop.permute.xlu0 %1487 }
 0x322   : >> { %v1607_v59 = vmul.f32 %v1605_v12, %v1587_v43  ;;  %1589 = vst.msk [vmem:[#allocation13 + $0x8] sm:$0xff] %vm409_vm2, %v1587_v43  ;;  %1614 = vst.msk [vmem:[#allocation13 + $0x10] sm:$0xff] %vm409_vm2, %v1611_v20  ;;  %2023 = vbcast.lane.b32.xlu0 %v3270_v44, 272  ;;  %v1557_v55 = vmul.f32 %v3426_v8, %v1492_v14  ;;  %v1556_v17 = vmul.f32 %v3426_v8, %v1488_v16  ;;  %v1630_v44 = vld [vmem:[#allocation11 + $0x20] sm:$0xff]  ;;  %v1683_v14 = vld [vmem:[#allocation11 + $0x48] sm:$0xff] }
 0x323   : >> { %v1597_v33 = vld [vmem:[#allocation15 + $0x78] sm:$0xff]  ;;  %v1596_v28 = vld [vmem:[#allocation15 + $0x70] sm:$0xff]  ;;  %v1632_v27 = vmul.f32 %v1630_v44, %v1611_v20 }
 0x324   : >> { %v1599_v63 = vadd.f32 %v1597_v33, %v1594_v58  ;;  %v1612_v57 = vadd.f32 %v1610_v62, %v1607_v59  ;;  %v1598_v7 = vadd.f32 %v1596_v28, %v1593_v47  ;;  %1573 = vst.msk [vmem:[#allocation15 + $0x68] sm:$0xff] %vm409_vm2, %v1557_v55  ;;  %1572 = vst.msk [vmem:[#allocation15 + $0x60] sm:$0xff] %vm409_vm2, %v1556_v17  ;;  %v1644_v59 = vld [vmem:[#allocation14 + $0x58] sm:$0xff] }
 0x325   : >> { %v1089_v22 = vpop.permute.xlu1 %1088  ;;  %v1085_v23 = vpop.permute.xlu0 %1084 }
 0x326   : >> { %1602 = vst.msk [vmem:[#allocation16 + $0x78] sm:$0xff] %vm409_vm2, %v1599_v63  ;;  %1615 = vst.msk [vmem:[#allocation13 + $0x18] sm:$0xff] %vm409_vm2, %v1612_v57  ;;  %v1633_v18 = vmul.f32 %v1631_v35, %v1612_v57  ;;  %v1181_v45 = vmul.f32 %v3419_v5, %v1089_v22  ;;  %v1180_v39 = vmul.f32 %v3419_v5, %v1085_v23  ;;  %v1669_v22 = vld [vmem:[#allocation14 + $0x40] sm:$0xff] }
 0x327   : >> { %1601 = vst.msk [vmem:[#allocation16 + $0x70] sm:$0xff] %vm409_vm2, %v1598_v7  ;;  %v1636_v11 = vld [vmem:[#allocation12 + $0x28] sm:$0xff]  ;;  %v1635_v26 = vld [vmem:[#allocation12 + $0x20] sm:$0xff]  ;;  %v1620_v15 = vmul.f32 %v1618_v10, %v1599_v63  ;;  %v1619_v21 = vmul.f32 %v1617_v29, %v1598_v7 }
 0x328   : >> { %v1638_v8 = vadd.f32 %v1636_v11, %v1633_v18  ;;  %v1637_v13 = vadd.f32 %v1635_v26, %v1632_v27  ;;  %1197 = vst.msk [vmem:[#allocation12 + $0x38] sm:$0xff] %vm409_vm2, %v1181_v45  ;;  %1196 = vst.msk [vmem:[#allocation12 + $0x30] sm:$0xff] %vm409_vm2, %v1180_v39  ;;  %v1682_v63 = vld [vmem:[#allocation11 + $0x40] sm:$0xff]  ;;  %v1670_v45 = vld [vmem:[#allocation14 + $0x48] sm:$0xff] }
 0x32a   : >> { %1641 = vst.msk [vmem:[#allocation13 + $0x28] sm:$0xff] %vm409_vm2, %v1638_v8  ;;  %1640 = vst.msk [vmem:[#allocation13 + $0x20] sm:$0xff] %vm409_vm2, %v1637_v13  ;;  %v1659_v25 = vmul.f32 %v1657_v41, %v1638_v8  ;;  %v1658_v31 = vmul.f32 %v1656_v42, %v1637_v13 }
 0x32b   : >> { %v1623_v24 = vld [vmem:[#allocation15 + $0x68] sm:$0xff]  ;;  %v1622_v53 = vld [vmem:[#allocation15 + $0x60] sm:$0xff] }
 0x32c   : >> { %v1625_v5 = vadd.f32 %v1623_v24, %v1620_v15  ;;  %v1624_v19 = vadd.f32 %v1622_v53, %v1619_v21  ;;  %v1708_v15 = vld [vmem:[#allocation11 + $0x50] sm:$0xff]  ;;  %v1709_v53 = vld [vmem:[#allocation11 + $0x58] sm:$0xff] }
 0x32e   : >> { %1628 = vst.msk [vmem:[#allocation16 + $0x68] sm:$0xff] %vm409_vm2, %v1625_v5  ;;  %1627 = vst.msk [vmem:[#allocation16 + $0x60] sm:$0xff] %vm409_vm2, %v1624_v19  ;;  %v1646_v62 = vmul.f32 %v1644_v59, %v1625_v5  ;;  %v1645_v33 = vmul.f32 %v1643_v38, %v1624_v19  ;;  %v1734_v59 = vld [vmem:[#allocation11 + $0x60] sm:$0xff] }
 0x32f   : >> { %v1481_v54 = vpop.permute.xlu1 %1480  ;;  %v1662_v40 = vld [vmem:[#allocation12 + $0x38] sm:$0xff]  ;;  %v1661_v37 = vld [vmem:[#allocation12 + $0x30] sm:$0xff] }
 0x330   : >> { %v1477_v34 = vpop.permute.xlu0 %1476  ;;  %v1555_v36 = vmul.f32 %v3429_v9, %v1481_v54  ;;  %v1664_v43 = vadd.f32 %v1662_v40, %v1659_v25  ;;  %v1663_v58 = vadd.f32 %v1661_v37, %v1658_v31 }
 0x331   : >> { %v1554_v12 = vmul.f32 %v3429_v9, %v1477_v34  ;;  %v1695_v34 = vld [vmem:[#allocation14 + $0x30] sm:$0xff] }
 0x332   : >> { %1571 = vst.msk [vmem:[#allocation15 + $0x58] sm:$0xff] %vm409_vm2, %v1555_v36  ;;  %1667 = vst.msk [vmem:[#allocation13 + $0x38] sm:$0xff] %vm409_vm2, %v1664_v43  ;;  %v1685_v44 = vmul.f32 %v1683_v14, %v1664_v43  ;;  %v1684_v18 = vmul.f32 %v1682_v63, %v1663_v58  ;;  %v1721_v14 = vld [vmem:[#allocation14 + $0x20] sm:$0xff] }
 0x333   : >> { %1570 = vst.msk [vmem:[#allocation15 + $0x50] sm:$0xff] %vm409_vm2, %v1554_v12  ;;  %1666 = vst.msk [vmem:[#allocation13 + $0x30] sm:$0xff] %vm409_vm2, %v1663_v58  ;;  %v1100_v20 = vpop.permute.xlu1 %1099  ;;  %v1696_v12 = vld [vmem:[#allocation14 + $0x38] sm:$0xff] }
 0x334   : >> { %v1096_v47 = vpop.permute.xlu0 %1095  ;;  %v1183_v52 = vmul.f32 %v3415_v61, %v1100_v20 }
 0x335   : >> { %v1182_v56 = vmul.f32 %v3415_v61, %v1096_v47 }
 0x336   : >> { %1199 = vst.msk [vmem:[#allocation12 + $0x48] sm:$0xff] %vm409_vm2, %v1183_v52 }
 0x337   : >> { %1198 = vst.msk [vmem:[#allocation12 + $0x40] sm:$0xff] %vm409_vm2, %v1182_v56  ;;  %v1470_v9 = vpop.permute.xlu1 %1469 }
 0x338   : >> { %v1466_v48 = vpop.permute.xlu0 %1465  ;;  %v1553_v28 = vmul.f32 %v3422_v6, %v1470_v9 }
 0x339   : >> { %v1552_v57 = vmul.f32 %v3422_v6, %v1466_v48  ;;  %v1649_v7 = vld [vmem:[#allocation15 + $0x58] sm:$0xff] }
 0x33a   : >> { %v1648_v35 = vld [vmem:[#allocation15 + $0x50] sm:$0xff]  ;;  %v1651_v16 = vadd.f32 %v1649_v7, %v1646_v62  ;;  %1569 = vst.msk [vmem:[#allocation15 + $0x48] sm:$0xff] %vm409_vm2, %v1553_v28  ;;  %v1735_v62 = vld [vmem:[#allocation11 + $0x68] sm:$0xff] }
 0x33b   : >> { %v1650_v61 = vadd.f32 %v1648_v35, %v1645_v33  ;;  %1568 = vst.msk [vmem:[#allocation15 + $0x40] sm:$0xff] %vm409_vm2, %v1552_v57  ;;  %v1111_v55 = vpop.permute.xlu1 %1110 }
 0x33c   : >> { %v1107_v17 = vpop.permute.xlu0 %1106  ;;  %1654 = vst.msk [vmem:[#allocation16 + $0x58] sm:$0xff] %vm409_vm2, %v1651_v16  ;;  %v1185_v6 = vmul.f32 %v3447_v30, %v1111_v55  ;;  %v1672_v8 = vmul.f32 %v1670_v45, %v1651_v16 }
 0x33d   : >> { %1653 = vst.msk [vmem:[#allocation16 + $0x50] sm:$0xff] %vm409_vm2, %v1650_v61  ;;  %v1184_v23 = vmul.f32 %v3447_v30, %v1107_v17  ;;  %v1688_v27 = vld [vmem:[#allocation12 + $0x48] sm:$0xff]  ;;  %v1671_v13 = vmul.f32 %v1669_v22, %v1650_v61 }
 0x33e   : >> { %v1687_v29 = vld [vmem:[#allocation12 + $0x40] sm:$0xff]  ;;  %v1690_v39 = vadd.f32 %v1688_v27, %v1685_v44  ;;  %1201 = vst.msk [vmem:[#allocation12 + $0x58] sm:$0xff] %vm409_vm2, %v1185_v6  ;;  %v1722_v17 = vld [vmem:[#allocation14 + $0x28] sm:$0xff] }
 0x33f   : >> { %v1689_v11 = vadd.f32 %v1687_v29, %v1684_v18  ;;  %1200 = vst.msk [vmem:[#allocation12 + $0x50] sm:$0xff] %vm409_vm2, %v1184_v23  ;;  %v1459_v26 = vpop.permute.xlu1 %1458  ;;  %v1761_v29 = vld [vmem:[#allocation11 + $0x78] sm:$0xff] }
 0x340   : >> { %v1455_v10 = vpop.permute.xlu0 %1454  ;;  %1693 = vst.msk [vmem:[#allocation13 + $0x48] sm:$0xff] %vm409_vm2, %v1690_v39  ;;  %v1551_v30 = vmul.f32 %v3469_v50, %v1459_v26  ;;  %v1711_v31 = vmul.f32 %v1709_v53, %v1690_v39  ;;  %v1760_v26 = vld [vmem:[#allocation11 + $0x70] sm:$0xff] }
 0x341   : >> { %1692 = vst.msk [vmem:[#allocation13 + $0x40] sm:$0xff] %vm409_vm2, %v1689_v11  ;;  %v1550_v21 = vmul.f32 %v3469_v50, %v1455_v10  ;;  %v1675_v42 = vld [vmem:[#allocation15 + $0x48] sm:$0xff]  ;;  %v1710_v54 = vmul.f32 %v1708_v15, %v1689_v11 }
 0x342   : >> { %v1674_v24 = vld [vmem:[#allocation15 + $0x40] sm:$0xff]  ;;  %v1677_v41 = vadd.f32 %v1675_v42, %v1672_v8  ;;  %1567 = vst.msk [vmem:[#allocation15 + $0x38] sm:$0xff] %vm409_vm2, %v1551_v30  ;;  %v1748_v42 = vld [vmem:[#allocation14 + $0x18] sm:$0xff] }
 0x343   : >> { %v1676_v5 = vadd.f32 %v1674_v24, %v1671_v13  ;;  %1566 = vst.msk [vmem:[#allocation15 + $0x30] sm:$0xff] %vm409_vm2, %v1550_v21  ;;  %v1122_v19 = vpop.permute.xlu1 %1121 }
 0x344   : >> { %v1118_v25 = vpop.permute.xlu0 %1117  ;;  %1680 = vst.msk [vmem:[#allocation16 + $0x48] sm:$0xff] %vm409_vm2, %v1677_v41  ;;  %v1187_v50 = vmul.f32 %v3451_v32, %v1122_v19  ;;  %v1698_v52 = vmul.f32 %v1696_v12, %v1677_v41 }
 0x345   : >> { %1679 = vst.msk [vmem:[#allocation16 + $0x40] sm:$0xff] %vm409_vm2, %v1676_v5  ;;  %v1186_v40 = vmul.f32 %v3451_v32, %v1118_v25  ;;  %v1714_v37 = vld [vmem:[#allocation12 + $0x58] sm:$0xff]  ;;  %v1697_v56 = vmul.f32 %v1695_v34, %v1676_v5  ;;  %v1747_v5 = vld [vmem:[#allocation14 + $0x10] sm:$0xff] }
 0x346   : >> { %v1713_v36 = vld [vmem:[#allocation12 + $0x50] sm:$0xff]  ;;  %v1716_v43 = vadd.f32 %v1714_v37, %v1711_v31  ;;  %1203 = vst.msk [vmem:[#allocation12 + $0x68] sm:$0xff] %vm409_vm2, %v1187_v50 }
 0x347   : >> { %v1715_v58 = vadd.f32 %v1713_v36, %v1710_v54  ;;  %1202 = vst.msk [vmem:[#allocation12 + $0x60] sm:$0xff] %vm409_vm2, %v1186_v40  ;;  %v1448_v20 = vpop.permute.xlu1 %1447  ;;  %v1772_v40 = vld [vmem:[#allocation14 + $0x8] sm:$0xff]  ;;  %v1771_v36 = vld [vmem:[#allocation14] sm:$0xff] }
 0x348   : >> { %v1444_v47 = vpop.permute.xlu0 %1443  ;;  %1719 = vst.msk [vmem:[#allocation13 + $0x58] sm:$0xff] %vm409_vm2, %v1716_v43  ;;  %v1549_v32 = vmul.f32 %v3465_v46, %v1448_v20  ;;  %v1737_v7 = vmul.f32 %v1735_v62, %v1716_v43  ;;  %v1781_v20 = vld [vmem:[#allocation13] sm:$0xff] }
 0x349   : >> { %1718 = vst.msk [vmem:[#allocation13 + $0x50] sm:$0xff] %vm409_vm2, %v1715_v58  ;;  %v1548_v38 = vmul.f32 %v3465_v46, %v1444_v47  ;;  %v1701_v9 = vld [vmem:[#allocation15 + $0x38] sm:$0xff]  ;;  %v1736_v35 = vmul.f32 %v1734_v59, %v1715_v58  ;;  %v1782_v58 = vld [vmem:[#allocation13 + $0x8] sm:$0xff] }
 0x34a   : >> { %v1700_v48 = vld [vmem:[#allocation15 + $0x30] sm:$0xff]  ;;  %v1703_v33 = vadd.f32 %v1701_v9, %v1698_v52  ;;  %1565 = vst.msk [vmem:[#allocation15 + $0x28] sm:$0xff] %vm409_vm2, %v1549_v32  ;;  %v1784_v59 = vld [vmem:[#allocation13 + $0x18] sm:$0xff] }
 0x34b   : >> { %v1702_v63 = vadd.f32 %v1700_v48, %v1697_v56  ;;  %1564 = vst.msk [vmem:[#allocation15 + $0x20] sm:$0xff] %vm409_vm2, %v1548_v38  ;;  %v1133_v28 = vpop.permute.xlu1 %1132  ;;  %v1783_v38 = vld [vmem:[#allocation13 + $0x10] sm:$0xff] }
 0x34c   : >> { %v1129_v57 = vpop.permute.xlu0 %1128  ;;  %1706 = vst.msk [vmem:[#allocation16 + $0x38] sm:$0xff] %vm409_vm2, %v1703_v33  ;;  %v1189_v46 = vmul.f32 %v3456_v49, %v1133_v28  ;;  %v1724_v23 = vmul.f32 %v1722_v17, %v1703_v33 }
 0x34d   : >> { %1705 = vst.msk [vmem:[#allocation16 + $0x30] sm:$0xff] %vm409_vm2, %v1702_v63  ;;  %v1188_v16 = vmul.f32 %v3456_v49, %v1129_v57  ;;  %v1740_v61 = vld [vmem:[#allocation12 + $0x68] sm:$0xff]  ;;  %v1723_v27 = vmul.f32 %v1721_v14, %v1702_v63 }
 0x34e   : >> { %v1739_v55 = vld [vmem:[#allocation12 + $0x60] sm:$0xff]  ;;  %v1742_v44 = vadd.f32 %v1740_v61, %v1737_v7  ;;  %1205 = vst.msk [vmem:[#allocation12 + $0x78] sm:$0xff] %vm409_vm2, %v1189_v46 }
 0x34f   : >> { %v1741_v18 = vadd.f32 %v1739_v55, %v1736_v35  ;;  %1204 = vst.msk [vmem:[#allocation12 + $0x70] sm:$0xff] %vm409_vm2, %v1188_v16  ;;  %v1437_v22 = vpop.permute.xlu1 %1436  ;;  %v1786_v55 = vld [vmem:[#allocation13 + $0x28] sm:$0xff] }
 0x350   : >> { %v1433_v6 = vpop.permute.xlu0 %1432  ;;  %1745 = vst.msk [vmem:[#allocation13 + $0x68] sm:$0xff] %vm409_vm2, %v1742_v44  ;;  %v1547_v49 = vmul.f32 %v3472_v51, %v1437_v22  ;;  %v1763_v30 = vmul.f32 %v1761_v29, %v1742_v44  ;;  %v1785_v44 = vld [vmem:[#allocation13 + $0x20] sm:$0xff] }
 0x351   : >> { %1744 = vst.msk [vmem:[#allocation13 + $0x60] sm:$0xff] %vm409_vm2, %v1741_v18  ;;  %v1546_v45 = vmul.f32 %v3472_v51, %v1433_v6  ;;  %v1727_v39 = vld [vmem:[#allocation15 + $0x28] sm:$0xff]  ;;  %v1762_v21 = vmul.f32 %v1760_v26, %v1741_v18  ;;  %v1787_v26 = vld [vmem:[#allocation13 + $0x30] sm:$0xff] }
 0x352   : >> { %v1726_v11 = vld [vmem:[#allocation15 + $0x20] sm:$0xff]  ;;  %v1729_v10 = vadd.f32 %v1727_v39, %v1724_v23  ;;  %1563 = vst.msk [vmem:[#allocation15 + $0x18] sm:$0xff] %vm409_vm2, %v1547_v49  ;;  %v1788_v39 = vld [vmem:[#allocation13 + $0x38] sm:$0xff] }
 0x353   : >> { %v1728_v8 = vadd.f32 %v1726_v11, %v1723_v27  ;;  %1562 = vst.msk [vmem:[#allocation15 + $0x10] sm:$0xff] %vm409_vm2, %v1546_v45  ;;  %v1426_v13 = vpop.permute.xlu1 %1425 }
 0x354   : >> { %v1422_v15 = vpop.permute.xlu0 %1421  ;;  %1732 = vst.msk [vmem:[#allocation16 + $0x28] sm:$0xff] %vm409_vm2, %v1729_v10  ;;  %v1545_v51 = vmul.f32 %v3482_v60, %v1426_v13  ;;  %v1750_v34 = vmul.f32 %v1748_v42, %v1729_v10 }
 0x355   : >> { %1731 = vst.msk [vmem:[#allocation16 + $0x20] sm:$0xff] %vm409_vm2, %v1728_v8  ;;  %v1544_v24 = vmul.f32 %v3482_v60, %v1422_v15  ;;  %v1766_v53 = vld [vmem:[#allocation12 + $0x78] sm:$0xff]  ;;  %v1749_v50 = vmul.f32 %v1747_v5, %v1728_v8  ;;  %v1789_v5 = vld [vmem:[#allocation13 + $0x40] sm:$0xff] }
 0x356   : >> { %v1765_v41 = vld [vmem:[#allocation12 + $0x70] sm:$0xff]  ;;  %v1768_v19 = vadd.f32 %v1766_v53, %v1763_v30  ;;  %1561 = vst.msk [vmem:[#allocation15 + $0x8] sm:$0xff] %vm409_vm2, %v1545_v51  ;;  %v1790_v53 = vld [vmem:[#allocation13 + $0x48] sm:$0xff] }
 0x357   : >> { %v1767_v25 = vadd.f32 %v1765_v41, %v1762_v21  ;;  %1560 = vst.msk [vmem:[#allocation15] sm:$0xff] %vm409_vm2, %v1544_v24  ;;  %v1804_v31 = vpop.permute.xlu1 %1803 }
 0x358   : >> { %v1800_v54 = vpop.permute.xlu0 %1799  ;;  %1770 = vst.msk [vmem:[#allocation13 + $0x78] sm:$0xff] %vm409_vm2, %v1768_v19  ;;  %v1862_v47 = vmul.f32 %v1804_v31, %v1782_v58 }
 0x359   : >> { %1769 = vst.msk [vmem:[#allocation13 + $0x70] sm:$0xff] %vm409_vm2, %v1767_v25  ;;  %v1753_v37 = vld [vmem:[#allocation15 + $0x18] sm:$0xff]  ;;  %v1861_v52 = vmul.f32 %v1800_v54, %v1781_v20  ;;  %v1791_v20 = vld [vmem:[#allocation13 + $0x50] sm:$0xff] }
 0x35a   : >> { %v1752_v60 = vld [vmem:[#allocation15 + $0x10] sm:$0xff]  ;;  %v1755_v12 = vadd.f32 %v1753_v37, %v1750_v34  ;;  %v1878_v46 = vsel %vm409_vm2, %v1862_v47, 0.0 }
 0x35b   : >> { %v1754_v43 = vadd.f32 %v1752_v60, %v1749_v50  ;;  %v1812_v56 = vpop.permute.xlu1 %1811  ;;  %v1877_v16 = vsel %vm409_vm2, %v1861_v52, 0.0 }
 0x35c   : >> { %v1808_v32 = vpop.permute.xlu0 %1807  ;;  %1758 = vst.msk [vmem:[#allocation16 + $0x18] sm:$0xff] %vm409_vm2, %v1755_v12  ;;  %v1774_v9 = vmul.f32 %v1772_v40, %v1755_v12  ;;  %v1864_v62 = vmul.f32 %v1812_v56, %v1784_v59  ;;  %v1879_v23 = vadd.f32 %v1878_v46, %v1877_v16 }
 0x35d   : >> { %1757 = vst.msk [vmem:[#allocation16 + $0x10] sm:$0xff] %vm409_vm2, %v1754_v43  ;;  %v1773_v48 = vmul.f32 %v1771_v36, %v1754_v43  ;;  %v1863_v33 = vmul.f32 %v1808_v32, %v1783_v38  ;;  %v1776_v63 = vld [vmem:[#allocation15 + $0x8] sm:$0xff]  ;;  %v1792_v43 = vld [vmem:[#allocation13 + $0x58] sm:$0xff] }
 0x35e   : >> { %v1775_v28 = vld [vmem:[#allocation15] sm:$0xff]  ;;  %v1778_v57 = vadd.f32 %v1776_v63, %v1774_v9  ;;  %v1887_v35 = vsel %vm409_vm2, %v1864_v62, 0.0  ;;  %v1880_v15 = vrot.slane %v1879_v23, 4 }
 0x35f   : >> { %v1777_v7 = vadd.f32 %v1775_v28, %v1773_v48  ;;  %v1886_v14 = vsel %vm409_vm2, %v1863_v33, 0.0  ;;  %v1820_v61 = vpop.permute.xlu1 %1819 }
 0x360   : >> { %v1816_v17 = vpop.permute.xlu0 %1815  ;;  %1780 = vst.msk [vmem:[#allocation16 + $0x8] sm:$0xff] %vm409_vm2, %v1778_v57  ;;  %v1866_v18 = vmul.f32 %v1820_v61, %v1786_v55  ;;  %v1888_v6 = vadd.f32 %v1887_v35, %v1886_v14  ;;  %v1881_v34 = vadd.f32 %v1880_v15, %v1879_v23  ;;  %v1794_v57 = vld [vmem:[#allocation13 + $0x68] sm:$0xff]  ;;  %v1793_v35 = vld [vmem:[#allocation13 + $0x60] sm:$0xff] }
 0x361   : >> { %1779 = vst.msk [vmem:[#allocation16] sm:$0xff] %vm409_vm2, %v1777_v7  ;;  %v1865_v22 = vmul.f32 %v1816_v17, %v1785_v44 }
 0x362   : >> { %v1896_v27 = vsel %vm409_vm2, %v1866_v18, 0.0  ;;  %v1889_v13 = vrot.slane %v1888_v6, 4  ;;  %v1882_v32 = vrot.slane %v1881_v34, 2 }
 0x363   : >> { %v1895_v29 = vsel %vm409_vm2, %v1865_v22, 0.0  ;;  %v1828_v45 = vpop.permute.xlu1 %1827 }
 0x364   : >> { %v1897_v49 = vadd.f32 %v1896_v27, %v1895_v29  ;;  %v1824_v11 = vpop.permute.xlu0 %1823  ;;  %v1868_v10 = vmul.f32 %v1828_v45, %v1788_v39  ;;  %v1890_v31 = vadd.f32 %v1889_v13, %v1888_v6  ;;  %v1883_v17 = vadd.f32 %v1882_v32, %v1881_v34  ;;  %v1795_v39 = vld [vmem:[#allocation13 + $0x70] sm:$0xff] }
 0x365   : >> { %v1867_v8 = vmul.f32 %v1824_v11, %v1787_v26 }
 0x366   : >> { %v1898_v30 = vrot.slane %v1897_v49, 4  ;;  %v1905_v21 = vsel %vm409_vm2, %v1868_v10, 0.0  ;;  %v1891_v56 = vrot.slane %v1890_v31, 2 }
 0x367   : >> { %v1904_v42 = vsel %vm409_vm2, %v1867_v8, 0.0  ;;  %v1836_v24 = vpop.permute.xlu1 %1835 }
 0x368   : >> { %v1906_v51 = vadd.f32 %v1905_v21, %v1904_v42  ;;  %v1832_v41 = vpop.permute.xlu0 %1831  ;;  %v1870_v19 = vmul.f32 %v1836_v24, %v1790_v53  ;;  %v1899_v50 = vadd.f32 %v1898_v30, %v1897_v49  ;;  %v1892_v16 = vadd.f32 %v1891_v56, %v1890_v31  ;;  %v1796_v49 = vld [vmem:[#allocation13 + $0x78] sm:$0xff] }
 0x369   : >> { %v1869_v25 = vmul.f32 %v1832_v41, %v1789_v5  ;;  %v1884_v30 = vrot.slane %v1883_v17, 1 }
 0x36a   : >> { %v1907_v54 = vrot.slane %v1906_v51, 4  ;;  %v1914_v40 = vsel %vm409_vm2, %v1870_v19, 0.0  ;;  %v1900_v38 = vrot.slane %v1899_v50, 2  ;;  %v1893_v10 = vrot.slane %v1892_v16, 1 }
 0x36b   : >> { %v1913_v37 = vsel %vm409_vm2, %v1869_v25, 0.0  ;;  %v1844_v12 = vpop.permute.xlu1 %1843 }
 0x36c   : >> { %v1908_v60 = vadd.f32 %v1907_v54, %v1906_v51  ;;  %v1915_v36 = vadd.f32 %v1914_v40, %v1913_v37  ;;  %v1840_v58 = vpop.permute.xlu0 %1839  ;;  %v1872_v47 = vmul.f32 %v1844_v12, %v1792_v43  ;;  %v1901_v44 = vadd.f32 %v1900_v38, %v1899_v50 }
 0x36d   : >> { %v1871_v52 = vmul.f32 %v1840_v58, %v1791_v20  ;;  %v1894_v31 = vadd.f32 %v1893_v10, %v1892_v16  ;;  %v1885_v40 = vadd.f32 %v1884_v30, %v1883_v17  ;;  %v1952_v58 = vld [vmem:[#allocation16 + $0x18] sm:$0xff]  ;;  %v1954_v16 = vld [vmem:[#allocation16 + $0x28] sm:$0xff]  ;;  %v1955_v30 = vld [vmem:[#allocation16 + $0x30] sm:$0xff] }
 0x36e   : >> { %v1916_v59 = vrot.slane %v1915_v36, 4  ;;  %v1923_v9 = vsel %vm409_vm2, %v1872_v47, 0.0  ;;  %v1909_v62 = vrot.slane %v1908_v60, 2  ;;  %v1902_v21 = vrot.slane %v1901_v44, 1  ;;  %v1951_v47 = vld [vmem:[#allocation16 + $0x10] sm:$0xff] }
 0x36f   : >> { %v1922_v48 = vsel %vm409_vm2, %v1871_v52, 0.0  ;;  %v1852_v28 = vpop.permute.xlu1 %1851  ;;  %v2128_v32 = vsel %vm2127_vm7, %v1894_v31, %v1885_v40 }
 0x370   : >> { %v1917_v33 = vadd.f32 %v1916_v59, %v1915_v36  ;;  %v1924_v63 = vadd.f32 %v1923_v9, %v1922_v48  ;;  %v1848_v7 = vpop.permute.xlu0 %1847  ;;  %v1874_v14 = vmul.f32 %v1852_v28, %v1794_v57  ;;  %v1910_v6 = vadd.f32 %v1909_v62, %v1908_v60  ;;  %v1950_v62 = vld [vmem:[#allocation16 + $0x8] sm:$0xff] }
 0x371   : >> { %v1873_v46 = vmul.f32 %v1848_v7, %v1793_v35  ;;  %v1903_v37 = vadd.f32 %v1902_v21, %v1901_v44 }
 0x372   : >> { %v1918_v61 = vrot.slane %v1917_v33, 2  ;;  %v1925_v55 = vrot.slane %v1924_v63, 4  ;;  %v1932_v18 = vsel %vm409_vm2, %v1874_v14, 0.0  ;;  %v1911_v24 = vrot.slane %v1910_v6, 1 }
 0x373   : >> { %v1931_v22 = vsel %vm409_vm2, %v1873_v46, 0.0  ;;  %v1860_v29 = vpop.permute.xlu1 %1859 }
 0x374   : >> { %v1926_v23 = vadd.f32 %v1925_v55, %v1924_v63  ;;  %v1933_v27 = vadd.f32 %v1932_v18, %v1931_v22  ;;  %v1856_v45 = vpop.permute.xlu0 %1855  ;;  %v1876_v11 = vmul.f32 %v1860_v29, %v1796_v49  ;;  %v1919_v8 = vadd.f32 %v1918_v61, %v1917_v33  ;;  %v1949_v33 = vld [vmem:[#allocation16] sm:$0xff] }
 0x375   : >> { %v1875_v26 = vmul.f32 %v1856_v45, %v1795_v39  ;;  %v1912_v60 = vadd.f32 %v1911_v24, %v1910_v6  ;;  %v2130_v63 = vsel %vm2129_vm8, %v1903_v37, %v2128_v32  ;;  %v1953_v55 = vld [vmem:[#allocation16 + $0x20] sm:$0xff]  ;;  %v1960_v32 = vld [vmem:[#allocation16 + $0x58] sm:$0xff] }
 0x376   : >> { %v1927_v13 = vrot.slane %v1926_v23, 2  ;;  %v1934_v15 = vrot.slane %v1933_v27, 4  ;;  %v1941_v42 = vsel %vm409_vm2, %v1876_v11, 0.0  ;;  %v1920_v54 = vrot.slane %v1919_v8, 1  ;;  %v1957_v37 = vld [vmem:[#allocation16 + $0x40] sm:$0xff] }
 0x377   : >> { %v1940_v51 = vsel %vm409_vm2, %v1875_v26, 0.0  ;;  %v1972_v19 = vpop.permute.xlu1 %1971  ;;  %v2132_v7 = vsel %vm2131_vm9, %v1912_v60, %v2130_v63  ;;  %v2118_v26 = vld [vmem:[%s2117_s14] sm:$0xff] }
 0x378   : >> { %v1928_v53 = vadd.f32 %v1927_v13, %v1926_v23  ;;  %v1935_v41 = vadd.f32 %v1934_v15, %v1933_v27  ;;  %v1942_v5 = vadd.f32 %v1941_v42, %v1940_v51  ;;  %v1968_v25 = vpop.permute.xlu0 %1967  ;;  %v1921_v38 = vadd.f32 %v1920_v54, %v1919_v8  ;;  %v1956_v13 = vld [vmem:[#allocation16 + $0x38] sm:$0xff] }
 0x379   : >> { %v2030_v28 = vmul.f32 %v1972_v19, %v1950_v62  ;;  %v2029_v57 = vmul.f32 %v1968_v25, %v1949_v33 }
 0x37a   : >> { %v1936_v34 = vrot.slane %v1935_v41, 2  ;;  %v1943_v50 = vrot.slane %v1942_v5, 4  ;;  %v1929_v36 = vrot.slane %v1928_v53, 1  ;;  %v2134_v23 = vsel %vm2133_vm10, %v1921_v38, %v2132_v7 }
 0x37b   : >> { %v1980_v20 = vpop.permute.xlu1 %1979  ;;  %v2046_v29 = vsel %vm409_vm2, %v2030_v28, 0.0  ;;  %v2045_v49 = vsel %vm409_vm2, %v2029_v57, 0.0 }
 0x37c   : >> { %v1937_v12 = vadd.f32 %v1936_v34, %v1935_v41  ;;  %v1944_v43 = vadd.f32 %v1943_v50, %v1942_v5  ;;  %v1976_v52 = vpop.permute.xlu0 %1975  ;;  %v2032_v56 = vmul.f32 %v1980_v20, %v1952_v58  ;;  %v1930_v35 = vadd.f32 %v1929_v36, %v1928_v53  ;;  %v1958_v50 = vld [vmem:[#allocation16 + $0x48] sm:$0xff] }
 0x37d   : >> { %v2031_v59 = vmul.f32 %v1976_v52, %v1951_v47  ;;  %v2047_v5 = vadd.f32 %v2046_v29, %v2045_v49 }
 0x37e   : >> { %v1938_v9 = vrot.slane %v1937_v12, 1  ;;  %v1945_v48 = vrot.slane %v1944_v43, 2  ;;  %v2055_v46 = vsel %vm409_vm2, %v2032_v56, 0.0  ;;  %v2136_v11 = vsel %vm2135_vm11, %v1930_v35, %v2134_v23 }
 0x37f   : >> { %v1988_v61 = vpop.permute.xlu1 %1987  ;;  %v2054_v18 = vsel %vm409_vm2, %v2031_v59, 0.0  ;;  %v2048_v58 = vrot.slane %v2047_v5, 4 }
 0x380   : >> { %v1946_v14 = vadd.f32 %v1945_v48, %v1944_v43  ;;  %v1984_v17 = vpop.permute.xlu0 %1983  ;;  %v1939_v44 = vadd.f32 %v1938_v9, %v1937_v12  ;;  %v2034_v22 = vmul.f32 %v1988_v61, %v1954_v16  ;;  %v2056_v8 = vadd.f32 %v2055_v46, %v2054_v18  ;;  %v1959_v9 = vld [vmem:[#allocation16 + $0x50] sm:$0xff] }
 0x381   : >> { %v2033_v6 = vmul.f32 %v1984_v17, %v1953_v55  ;;  %v2049_v28 = vadd.f32 %v2048_v58, %v2047_v5  ;;  %v1962_v55 = vld [vmem:[#allocation16 + $0x68] sm:$0xff] }
 0x382   : >> { %v1947_v27 = vrot.slane %v1946_v14, 1  ;;  %v2064_v45 = vsel %vm409_vm2, %v2034_v22, 0.0  ;;  %v2138_v42 = vsel %vm2137_vm12, %v1939_v44, %v2136_v11  ;;  %v2057_v54 = vrot.slane %v2056_v8, 4  ;;  %v1961_v44 = vld [vmem:[#allocation16 + $0x60] sm:$0xff] }
 0x383   : >> { %v2063_v39 = vsel %vm409_vm2, %v2033_v6, 0.0  ;;  %v1996_v15 = vpop.permute.xlu1 %1995 }
 0x384   : >> { %v1948_v10 = vadd.f32 %v1947_v27, %v1946_v14  ;;  %v1992_v21 = vpop.permute.xlu0 %1991  ;;  %v2065_v51 = vadd.f32 %v2064_v45, %v2063_v39  ;;  %v2036_v24 = vmul.f32 %v1996_v15, %v1956_v13  ;;  %v2058_v56 = vadd.f32 %v2057_v54, %v2056_v8  ;;  %v1964_v13 = vld [vmem:[#allocation16 + $0x78] sm:$0xff] }
 0x385   : >> { %v2035_v53 = vmul.f32 %v1992_v21, %v1955_v30  ;;  %v2050_v27 = vrot.slane %v2049_v28, 2  ;;  %v1963_v30 = vld [vmem:[#allocation16 + $0x70] sm:$0xff] }
 0x386   : >> { %v2140_v41 = vsel %vm2139_vm13, %v1948_v10, %v2138_v42  ;;  %v2073_v25 = vsel %vm409_vm2, %v2036_v24, 0.0  ;;  %v2066_v36 = vrot.slane %v2065_v51, 4  ;;  %v2059_v46 = vrot.slane %v2058_v56, 2 }
 0x387   : >> { %v2142_v19 = vadd.f32 %v2140_v41, %v2118_v26  ;;  %v2072_v31 = vsel %vm409_vm2, %v2035_v53, 0.0  ;;  %v2004_v40 = vpop.permute.xlu1 %2003  ;;  %v2051_v53 = vadd.f32 %v2050_v27, %v2049_v28  ;;  %v2164_v27 = vld [vmem:[#allocation3] sm:$0xff] (%p829_p2) }
 0x388   : >> { %v2074_v34 = vadd.f32 %v2073_v25, %v2072_v31  ;;  %v2000_v60 = vpop.permute.xlu0 %1999  ;;  %v2038_v12 = vmul.f32 %v2004_v40, %v1958_v50  ;;  %v2067_v62 = vadd.f32 %v2066_v36, %v2065_v51  ;;  %v2060_v26 = vadd.f32 %v2059_v46, %v2058_v56 }
 0x389   : >> { %2143 = vst.msk [vmem:[%s2117_s14] sm:$0xff] %vm409_vm2, %v2142_v19  ;;  %v2037_v43 = vmul.f32 %v2000_v60, %v1957_v37  ;;  %v2052_v36 = vrot.slane %v2051_v53, 1 }
 0x38a   : >> { %v2075_v20 = vrot.slane %v2074_v34, 4  ;;  %v2082_v47 = vsel %vm409_vm2, %v2038_v12, 0.0  ;;  %v2068_v22 = vrot.slane %v2067_v62, 2 }
 0x38b   : >> { %v2081_v52 = vsel %vm409_vm2, %v2037_v43, 0.0  ;;  %v2012_v38 = vpop.permute.xlu1 %2011 }
 0x38c   : >> { %v2083_v59 = vadd.f32 %v2082_v47, %v2081_v52  ;;  %v2008_v48 = vpop.permute.xlu0 %2007  ;;  %v2040_v33 = vmul.f32 %v2012_v38, %v1960_v32  ;;  %v2076_v57 = vadd.f32 %v2075_v20, %v2074_v34  ;;  %v2069_v42 = vadd.f32 %v2068_v22, %v2067_v62 }
 0x38d   : >> { %v2039_v63 = vmul.f32 %v2008_v48, %v1959_v9  ;;  %v2061_v34 = vrot.slane %v2060_v26, 1  ;;  %v2053_v38 = vadd.f32 %v2052_v36, %v2051_v53 }
 0x38e   : >> { %v2084_v7 = vrot.slane %v2083_v59, 4  ;;  %v2091_v35 = vsel %vm409_vm2, %v2040_v33, 0.0  ;;  %v2077_v29 = vrot.slane %v2076_v57, 2  ;;  %v2070_v60 = vrot.slane %v2069_v42, 1 }
 0x38f   : >> { %v2090_v14 = vsel %vm409_vm2, %v2039_v63, 0.0  ;;  %v2020_v17 = vpop.permute.xlu1 %2019  ;;  %v2062_v47 = vadd.f32 %v2061_v34, %v2060_v26 }
 0x390   : >> { %v2085_v16 = vadd.f32 %v2084_v7, %v2083_v59  ;;  %v2092_v61 = vadd.f32 %v2091_v35, %v2090_v14  ;;  %v2016_v18 = vpop.permute.xlu0 %2015  ;;  %v2042_v6 = vmul.f32 %v2020_v17, %v1962_v55  ;;  %v2078_v41 = vadd.f32 %v2077_v29, %v2076_v57  ;;  %v2165_v29 = vld [vmem:[#allocation3 + $0x8] sm:$0xff] (%p829_p2) }
 0x391   : >> { %v2041_v23 = vmul.f32 %v2016_v18, %v1961_v44  ;;  %v2071_v32 = vadd.f32 %v2070_v60, %v2069_v42  ;;  %v2154_v63 = vsel %vm2127_vm7, %v2062_v47, %v2053_v38  ;;  %v2145_v44 = vld [vmem:[%s2144_s20] sm:$0xff] }
 0x392   : >> { %v2093_v49 = vrot.slane %v2092_v61, 4  ;;  %v2086_v45 = vrot.slane %v2085_v16, 2  ;;  %v2100_v39 = vsel %vm409_vm2, %v2042_v6, 0.0  ;;  %v2079_v12 = vrot.slane %v2078_v41, 1  ;;  %v2732_v6 = vld [vmem:[%s3743_s2 + $0x18] sm:$0xff] (%p829_p2)  }
 0x393   : >> { %v2099_v11 = vsel %vm409_vm2, %v2041_v23, 0.0  ;;  %v2028_v15 = vpop.permute.xlu1 %2027  ;;  %v2155_v7 = vsel %vm2129_vm8, %v2071_v32, %v2154_v63  ;;  %2514 = vmatpush3.bf16.msra.mxu1 (%p829_p2), %v2732_v6  ;;  %v2733_v23 = vld [vmem:[%s3743_s2 + $0x10] sm:$0xff] (%p829_p2)  }
 0x394   : >> { %v2094_v10 = vadd.f32 %v2093_v49, %v2092_v61  ;;  %v2101_v8 = vadd.f32 %v2100_v39, %v2099_v11  ;;  %v2024_v21 = vpop.permute.xlu0 %2023  ;;  %v2044_v51 = vmul.f32 %v2028_v15, %v1964_v13  ;;  %v2087_v25 = vadd.f32 %v2086_v45, %v2085_v16  ;;  %2515 = vmatprep.subr.bf16.mxu1 (%p829_p2), %v2938_v0 }
 0x395   : >> { %v2043_v24 = vmul.f32 %v2024_v21, %v1963_v30  ;;  %v2080_v9 = vadd.f32 %v2079_v12, %v2078_v41  ;;  %v2449_v49 = vmul.f32 (%p829_p2), -1.442695, %v2164_v27  ;;  %v2450_v45 = vmul.f32 (%p829_p2), -1.442695, %v2165_v29 }
 0x396   : >> { %v2095_v5 = vrot.slane %v2094_v10, 2  ;;  %v2102_v19 = vrot.slane %v2101_v8, 4  ;;  %v2109_v31 = vsel %vm409_vm2, %v2044_v51, 0.0  ;;  %v2088_v20 = vrot.slane %v2087_v25, 1 }
 0x397   : >> { %v2108_v54 = vsel %vm409_vm2, %v2043_v24, 0.0  ;;  %v2156_v14 = vsel %vm2131_vm9, %v2080_v9, %v2155_v7  ;;  %2516 = vmatpush3.bf16.msra.mxu1 (%p829_p2), %v2733_v23  ;;  %2736 = vpow2.f32 (%p829_p2), %v2449_v49 }
 0x398   : >> { %v2096_v50 = vadd.f32 %v2095_v5, %v2094_v10  ;;  %v2103_v40 = vadd.f32 %v2102_v19, %v2101_v8  ;;  %v2110_v37 = vadd.f32 %v2109_v31, %v2108_v54  ;;  %v2089_v33 = vadd.f32 %v2088_v20, %v2087_v25  ;;  %2517 = vmatprep.subr.bf16.mxu1 (%p829_p2), %v2938_v0 }
 0x399   : > { %2738 = vpow2.f32 (%p829_p2), %v2450_v45 }
 0x39a   : >> { %v2104_v43 = vrot.slane %v2103_v40, 2  ;;  %v2111_v58 = vrot.slane %v2110_v37, 4  ;;  %v2097_v52 = vrot.slane %v2096_v50, 1  ;;  %v2157_v16 = vsel %vm2133_vm10, %v2089_v33, %v2156_v14 }
 0x39b   : > { %2518 = vmatpush3.bf16.msra.mxu1 (%p829_p2), %v2734_v1 }
 0x39c   : >> { %v2105_v56 = vadd.f32 %v2104_v43, %v2103_v40  ;;  %v2112_v59 = vadd.f32 %v2111_v58, %v2110_v37  ;;  %v2098_v28 = vadd.f32 %v2097_v52, %v2096_v50  ;;  %2519 = vmatprep.subr.bf16.mxu1 (%p829_p2), %v2938_v0 }
 0x39e   : >> { %v2106_v48 = vrot.slane %v2105_v56, 1  ;;  %v2113_v62 = vrot.slane %v2112_v59, 2  ;;  %v2158_v61 = vsel %vm2135_vm11, %v2098_v28, %v2157_v16 }
 0x39f   : > { %2520 = vmatpush3.bf16.msra.mxu1 (%p829_p2), %v2735_v2 }
 0x3a0   : >> { %v2114_v57 = vadd.f32 %v2113_v62, %v2112_v59  ;;  %v2107_v35 = vadd.f32 %v2106_v48, %v2105_v56 }
 0x3a2   : >> { %v2115_v46 = vrot.slane %v2114_v57, 1  ;;  %v2159_v17 = vsel %vm2137_vm12, %v2107_v35, %v2158_v61 }
 0x3a4   : >> { %v2116_v55 = vadd.f32 %v2115_v46, %v2114_v57  ;;  %v2737_v3 = vpop.eup (%p829_p2), %2736 }
 0x3a5   : > { %831 = sbr.rel (!%p829_p2) target bundleno = 663 (0x297), region = 157  ;;  %v2174_v39 = vadd.f32 (%p829_p2), 1.0, %v2737_v3 }
 0x3a6   : >> { %v2160_v18 = vsel %vm2139_vm13, %v2116_v55, %v2159_v17  ;;  %v2739_v4 = vpop.eup (%p829_p2), %2738 }
 0x3a7   : >> { %v2162_v22 = vadd.f32 %v2160_v18, %v2145_v44  ;;  %v2175_v11 = vadd.f32 (%p829_p2), 1.0, %v2739_v4  ;;  %2740 = vrcp.f32 (%p829_p2), %v2174_v39 }
 0x3a9   : >> { %2163 = vst.msk [vmem:[%s2144_s20] sm:$0xff] %vm409_vm2, %v2162_v22  ;;  %2742 = vrcp.f32 (%p829_p2), %v2175_v11 }
 0x3b0   : > { %v2166_v10 = vld [vmem:[#allocation4] sm:$0xff]  ;;  %v2167_v13 = vld [vmem:[#allocation4 + $0x8] sm:$0xff] }
 0x3b4   : > { %v2741_v26 = vpop.eup %2740 }
 0x3b5   : > { %v2180_v15 = vmul.f32 %v2741_v26, %v2164_v27 }
 0x3b6   : > { %v2743_v8 = vpop.eup %2742 }
 0x3b7   : > { %v2181_v30 = vmul.f32 %v2743_v8, %v2165_v29  ;;  %v2182_v21 = vmul.f32 %v2180_v15, %v2166_v10 }
 0x3b9   : > { %v2183_v0 = vmul.f32 %v2181_v30, %v2167_v13 }
 0x3bb   : > { %v2184_v42 = vpack.c.bf16 %v2183_v0, %v2182_v21 }
 0x3bd   : > { %2522 = vmatmul.mubr.msk.bf16.vlgmr.msra.gmra.mxu1 %vm409_vm2, %v2184_v42 }
 0x47d   : > { %v2254_v51 = vpop.f32.mrf.mxu1 }
 0x47e   : > { %2261 = vst.msk [vmem:[%s3216_s17] sm:$0xff] %vm356_vm1, %v2254_v51 }
 0x47f   : > { %v2523_v24 = vpop.f32.mrf.mxu1 }
 0x481   : > { %v2257_v53 = vpop.f32.mrf.mxu1 }
 0x482   : > { %2262 = vst.msk [vmem:[%s3216_s17 + $0x8] sm:$0xff] %vm356_vm1, %v2257_v53 }
 0x483   : > { %v2524_v41 = vpop.f32.mrf.mxu1 }
 0x484   : > { %2861 = shalt.err (!%p2858_p9)
}
 0x485   : > { %s2862_s13 = scalar_lea.hbm %s3693_s21, 256  ;;  %s2866_s22 = scalar_lea.hbm %s3748_s7, 512 }
 0x486   : > { %p2863_p5 = scmp.ne.s32.totalorder %s3693_s21, %s2862_s13  ;;  %p2867_p12 = scmp.lt.s32.totalorder %s3693_s21, %s3748_s7 }
 0x487   : > { %p2868_p1 = scmp.lt.s32.totalorder %s2866_s22, %s2862_s13 }
 0x488   : > { %p2864_p6 = pnand %p2863_p5, %p3765_p4 }
 0x489   : > { %p2869_p2 = por %p2868_p1, %p2867_p12 }
 0x48a   : > { %p2865_p10 = pneg %p2864_p6 }
 0x48c   : > { %p2870_p3 = pnand %p2869_p2, %p2865_p10 }
 0x48e   : > { %2873 = shalt.err (!%p2870_p3)
}
 0x48f   : > { %s2943_s14 = smov 128   ;;  %s2944_s20 = smov 8  }
 0x490   : > { %2541 = dma.vmem_to_hbm [thread:$0]  (%p3765_p4), %s3695_s29, 256, %s3693_s21, %s3701_s28, %s2943_s14, %s2943_s14, %s2944_s20  }
 0x491 PF: > { %p2568_p7 = scmp.ge.s32.totalorder %s2924_s27, 2  ;;  %s2292_s16 = sand.u32 1, %s2912_s24  }
 0x492   : > { %p3766_p8 = scmp.ne.s32.totalorder %s3754_s12, 0  ;;  %s2293_s8 = scalar_lea.sflag [#allocation19], %s2292_s16 }
 0x494   : > { %p2557_p11 = pnand %p2568_p7, %p3766_p8 }
 0x496   : > { %p2558_p0 = pneg %p2557_p11 }
 0x498   : > { %2907 = dma.done.wait (%p2558_p0), %s2293_s8, 256  }
 0x499   : > { %2909 = vsyncadd (%p2558_p0), %s2293_s8, 4294967040  ;;  %p20_p13 = scmp.ge.s32.totalorder %s3010_s30, 4   ;;  %s3767_s24 = smov %s2916_s25 }
 0x49a   : > { %s3768_s25 = smov %s2920_s26  ;;  %s3769_s26 = smov %s3021_s10 }
 0x49b   : > { %s3770_s27 = smov %s3010_s30  ;;  %22 = sbr.rel (!%p20_p13) target bundleno = 6 (0x6), region = 168 }
 0x4a0   :  { %2298 = vsyncpa [#allocation18], 1 }
 0x4a1   :  { %2300 = vsyncpa [#allocation18 + $0x1], 1 }
 0x4a2   :  { %2301 = vsyncpa [#allocation21], 1 }
 0x4a3   :  { %2302 = vsyncpa [#allocation24], 1 }
 0x4a4   :  { %2303 = vsyncpa [#allocation19], 1 }
 0x4a5   :  { %2305 = vsyncpa [#allocation19 + $0x1], 1 }

</bundles_post_ra>
